<compile_context>
chip_gen: v7x
topology: tpu7x:2x2x1
jax: 0.10.0
libtpu: 0.0.40
codegen_flags: <defaults>
</compile_context>

<pallas_src>
import functools

import jax
import jax.numpy as jnp
from jax.experimental import pallas as pl
from jax.experimental.pallas import tpu as pltpu

_EPS = 1e-5  # torch.nn.InstanceNorm2d default eps


def _residual_block_kernel(H, W, C, matmul_dtype,
                           x_ref, w1_ref, w2_ref, affine_ref, o_ref):
    """Fused conv3x3+IN+ReLU -> conv3x3+IN -> +residual for one batch element.

    x_ref:         (1, H, W, C)  input activation (C already lane-padded)
    w1_ref/w2_ref: (9*C, C)      conv weights, rows ordered (kh, kw, cin)
    affine_ref:    (4, C)        [gamma1, beta1, gamma2, beta2] (f32)
    o_ref:         (1, H, W, C)  output
    """
    inv_hw = 1.0 / (H * W)

    def conv3x3(t, w_ref):
        # t: (H, W, C) in matmul_dtype.  ReflectionPad2d(1) + 3x3 conv as nine
        # accumulated K=C matmuls.  Only three copies of the activation are
        # materialized (H reflect-pad, left shift, right shift); every per-tap
        # window is a leading-dim row slice of one of them.
        tp = jnp.concatenate([t[1:2], t, t[H - 2:H - 1]], axis=0)           # (H+2, W, C)
        left = jnp.concatenate([tp[:, 1:2], tp[:, :W - 1]], axis=1)          # col j-1 (reflected)
        right = jnp.concatenate([tp[:, 1:], tp[:, W - 2:W - 1]], axis=1)     # col j+1 (reflected)
        shifted = (left, tp, right)                                           # dw = 0, 1, 2

        acc = None
        for dh in range(3):
            for dw in range(3):
                win = shifted[dw][dh:dh + H]                 # (H, W, C) row slice: copy-free
                tap = w_ref[(dh * 3 + dw) * C:(dh * 3 + dw + 1) * C, :]       # (C, C)
                d = jnp.dot(win.reshape(H * W, C), tap,
                            preferred_element_type=jnp.float32)
                acc = d if acc is None else acc + d
        return acc                                                            # (H*W, C) f32

    def instance_norm(y, gamma, beta):
        # One-pass per-(instance, channel) stats over H*W, f32, biased variance
        # (torch default).  Clamp var >= 0 against cancellation.
        mean = jnp.sum(y, axis=0, keepdims=True) * inv_hw                     # (1, C)
        ex2 = jnp.sum(y * y, axis=0, keepdims=True) * inv_hw                  # (1, C)
        var = jnp.maximum(ex2 - mean * mean, 0.0)
        return (y - mean) * jax.lax.rsqrt(var + _EPS) * gamma + beta

    # Cast to matmul_dtype at load, before any pad/shift copies.
    xm = x_ref[0].astype(matmul_dtype)                                        # (H, W, C)

    h = conv3x3(xm, w1_ref)
    h = instance_norm(h, affine_ref[0:1, :], affine_ref[1:2, :])
    h = jnp.maximum(h, 0.0)                                                   # ReLU (f32)

    h = conv3x3(h.astype(matmul_dtype).reshape(H, W, C), w2_ref)
    h = instance_norm(h, affine_ref[2:3, :], affine_ref[3:4, :])

    # Residual: re-read x here (no long-lived f32 copy of x across both convs).
    out = h + x_ref[0].reshape(H * W, C).astype(jnp.float32)
    o_ref[0] = out.reshape(H, W, C).astype(o_ref.dtype)


def _round_up(v, m):
    return (v + m - 1) // m * m


def _pick_vmem_limit():
    """~85% of physical per-core VMEM: ~54 MiB on v7x, 100 MiB on v5e/v6e."""
    cap = 64 * 1024 * 1024  # conservative fallback (v7x-sized)
    try:
        cap = int(pltpu.get_tpu_info().vmem_capacity_bytes)
    except Exception:
        pass
    return min(100 * 1024 * 1024, int(0.85 * cap))


def residual_block(x_nchw, params, *, matmul_dtype=jnp.bfloat16):
    """Pallas ResidualBlock.forward.  Input/output NCHW, params in torch layout.

    params = (w1, b1, gamma1, beta1, w2, b2, gamma2, beta2), w* in OIHW.
    Conv biases are accepted but unused: InstanceNorm's mean subtraction
    cancels a per-channel conv bias exactly.
    matmul_dtype=bfloat16 (default) for production; float32 for parity tests.
    """
    w1, _b1, g1, bt1, w2, _b2, g2, bt2 = params
    N, C, H, W = x_nchw.shape
    CP = _round_up(C, 128)                    # lane-dense channel padding

    x = jnp.transpose(x_nchw, (0, 2, 3, 1))   # NHWC
    if CP != C:
        x = jnp.pad(x, ((0, 0), (0, 0), (0, 0), (0, CP - C)))

    def prep_w(w):
        # OIHW (C, C, 3, 3) -> (9*CP, CP) with rows ordered (kh, kw, cin).
        w = jnp.transpose(w, (2, 3, 1, 0))    # (kh, kw, cin, cout)
        w = jnp.pad(w, ((0, 0), (0, 0), (0, CP - C), (0, CP - C)))
        return w.reshape(9 * CP, CP).astype(matmul_dtype)

    w1p, w2p = prep_w(w1), prep_w(w2)
    affine = jnp.stack([g1, bt1, g2, bt2]).astype(jnp.float32)   # (4, C)
    affine = jnp.pad(affine, ((0, 0), (0, CP - C)))

    kernel = functools.partial(_residual_block_kernel, H, W, CP, matmul_dtype)
    out = pl.pallas_call(
        kernel,
        out_shape=jax.ShapeDtypeStruct((N, H, W, CP), x.dtype),
        grid=(N,),
        in_specs=[
            pl.BlockSpec((1, H, W, CP), lambda n: (n, 0, 0, 0)),
            pl.BlockSpec((9 * CP, CP), lambda n: (0, 0)),   # constant index_map: DMA'd once
            pl.BlockSpec((9 * CP, CP), lambda n: (0, 0)),
            pl.BlockSpec((4, CP), lambda n: (0, 0)),
        ],
        out_specs=pl.BlockSpec((1, H, W, CP), lambda n: (n, 0, 0, 0)),
        compiler_params=pltpu.CompilerParams(
            dimension_semantics=("parallel",),   # batch sharded across TCs (v7x)
            vmem_limit_bytes=_pick_vmem_limit(),
        ),
    )(x, w1p, w2p, affine)

    out = out[..., :C]                          # drop padded channels
    return jnp.transpose(out, (0, 3, 1, 2))     # back to NCHW


# ----------------------------- pure-JAX reference ---------------------------
def _ref_residual_block(x, params):
    (w1, b1, g1, bt1, w2, b2, g2, bt2) = params

    def conv(z, w, b):
        zp = jnp.pad(z, ((0, 0), (0, 0), (1, 1), (1, 1)), mode="reflect")
        y = jax.lax.conv_general_dilated(
            zp, w, (1, 1), "VALID", dimension_numbers=("NCHW", "OIHW", "NCHW"))
        return y + b[None, :, None, None]

    def inorm(z, g, bt):
        mean = z.mean(axis=(2, 3), keepdims=True)
        var = ((z - mean) ** 2).mean(axis=(2, 3), keepdims=True)
        zn = (z - mean) / jnp.sqrt(var + _EPS)
        return zn * g[None, :, None, None] + bt[None, :, None, None]

    out = jax.nn.relu(inorm(conv(x, w1, b1), g1, bt1))
    out = inorm(conv(out, w2, b2), g2, bt2)
    return out + x


# ----------------------------------- main ------------------------------------
if __name__ == "__main__":
    N, C, H, W = 2, 4, 16, 16
    key = jax.random.PRNGKey(0)
    kx, k1, k2, k3, k4, k5, k6, k7, k8 = jax.random.split(key, 9)

    x = jax.random.normal(kx, (N, C, H, W), jnp.float32)

    # Conv2d weights in PyTorch OIHW layout; InstanceNorm affine params per-channel.
    w1 = jax.random.normal(k1, (C, C, 3, 3), jnp.float32) * 0.2
    b1 = jax.random.normal(k2, (C,), jnp.float32) * 0.1
    g1 = 1.0 + 0.1 * jax.random.normal(k3, (C,), jnp.float32)
    bt1 = 0.1 * jax.random.normal(k4, (C,), jnp.float32)
    w2 = jax.random.normal(k5, (C, C, 3, 3), jnp.float32) * 0.2
    b2 = jax.random.normal(k6, (C,), jnp.float32) * 0.1
    g2 = 1.0 + 0.1 * jax.random.normal(k7, (C,), jnp.float32)
    bt2 = 0.1 * jax.random.normal(k8, (C,), jnp.float32)

    params = (w1, b1, g1, bt1, w2, b2, g2, bt2)

    ref = jax.block_until_ready(_ref_residual_block(x, params))

    # f32-matmul parity check (tight tolerance).
    out_f32 = jax.block_until_ready(
        residual_block(x, params, matmul_dtype=jnp.float32))
    assert out_f32.shape == (N, C, H, W), out_f32.shape
    err32 = float(jnp.max(jnp.abs(out_f32 - ref)))
    assert jnp.allclose(out_f32, ref, rtol=1e-4, atol=1e-4), err32

    # Production path: bf16 matmuls (looser tolerance by design).
    out_bf16 = jax.block_until_ready(residual_block(x, params))
    assert out_bf16.shape == (N, C, H, W), out_bf16.shape
    err16 = float(jnp.max(jnp.abs(out_bf16 - ref)))
    assert jnp.allclose(out_bf16, ref, rtol=5e-2, atol=5e-2), err16

    print("KERNEL_OK")
</pallas_src>

<mosaic_0001>
module attributes {stable_mosaic.version = 11 : i64} {
  func.func @_residual_block_kernel(%arg0: i32, %arg1: memref<1x16x16x128xf32, #tpu.memory_space<vmem>>, %arg2: memref<1152x128xf32, #tpu.memory_space<vmem>>, %arg3: memref<1152x128xf32, #tpu.memory_space<vmem>>, %arg4: memref<4x128xf32, #tpu.memory_space<vmem>>, %arg5: memref<1x16x16x128xf32, #tpu.memory_space<vmem>>) attributes {dimension_semantics = [#tpu.dimension_semantics<parallel>], iteration_bounds = array<i64: 2>, scalar_prefetch = 0 : i64, scratch_operands = 0 : i64, tpu.core_type = #tpu.core_type<tc>, window_params = [{transform_indices = @transform_0, window_bounds = array<i64: 1, 16, 16, 128>}, {pipeline_mode = #tpu.pipeline_mode<synchronous>, transform_indices = @transform_1, window_bounds = array<i64: 1152, 128>}, {pipeline_mode = #tpu.pipeline_mode<synchronous>, transform_indices = @transform_2, window_bounds = array<i64: 1152, 128>}, {pipeline_mode = #tpu.pipeline_mode<synchronous>, transform_indices = @transform_3, window_bounds = array<i64: 4, 128>}, {transform_indices = @transform_4, window_bounds = array<i64: 1, 16, 16, 128>}]} {
    %c0 = arith.constant 0 : index
    %c0_0 = arith.constant 0 : index
    %c0_1 = arith.constant 0 : index
    %c0_2 = arith.constant 0 : index
    %0 = vector.load %arg1[%c0, %c0_0, %c0_1, %c0_2] : memref<1x16x16x128xf32, #tpu.memory_space<vmem>>, vector<1x16x16x128xf32>
    %1 = vector.shape_cast %0 : vector<1x16x16x128xf32> to vector<16x16x128xf32>
    %2 = vector.extract_strided_slice %1 {offsets = [1, 0, 0], sizes = [1, 16, 128], strides = [1, 1, 1]} : vector<16x16x128xf32> to vector<1x16x128xf32>
    %3 = vector.extract_strided_slice %1 {offsets = [14, 0, 0], sizes = [1, 16, 128], strides = [1, 1, 1]} : vector<16x16x128xf32> to vector<1x16x128xf32>
    %4 = tpu.concatenate %2, %1, %3 in 0 : vector<1x16x128xf32>, vector<16x16x128xf32>, vector<1x16x128xf32> -> vector<18x16x128xf32>
    %5 = vector.extract_strided_slice %4 {offsets = [0, 1, 0], sizes = [18, 1, 128], strides = [1, 1, 1]} : vector<18x16x128xf32> to vector<18x1x128xf32>
    %6 = vector.extract_strided_slice %4 {offsets = [0, 0, 0], sizes = [18, 15, 128], strides = [1, 1, 1]} : vector<18x16x128xf32> to vector<18x15x128xf32>
    %7 = tpu.concatenate %5, %6 in 1 : vector<18x1x128xf32>, vector<18x15x128xf32> -> vector<18x16x128xf32>
    %8 = vector.extract_strided_slice %4 {offsets = [0, 1, 0], sizes = [18, 15, 128], strides = [1, 1, 1]} : vector<18x16x128xf32> to vector<18x15x128xf32>
    %9 = vector.extract_strided_slice %4 {offsets = [0, 14, 0], sizes = [18, 1, 128], strides = [1, 1, 1]} : vector<18x16x128xf32> to vector<18x1x128xf32>
    %10 = tpu.concatenate %8, %9 in 1 : vector<18x15x128xf32>, vector<18x1x128xf32> -> vector<18x16x128xf32>
    %11 = vector.extract_strided_slice %7 {offsets = [0, 0, 0], sizes = [16, 16, 128], strides = [1, 1, 1]} : vector<18x16x128xf32> to vector<16x16x128xf32>
    %c0_3 = arith.constant 0 : index
    %c0_4 = arith.constant 0 : index
    %12 = vector.load %arg2[%c0_3, %c0_4] : memref<1152x128xf32, #tpu.memory_space<vmem>>, vector<128x128xf32>
    %13 = vector.shape_cast %11 : vector<16x16x128xf32> to vector<256x128xf32>
    %cst = arith.constant dense<0.000000e+00> : vector<256x128xf32>
    %14 = tpu.matmul %13, %12, %cst {dimension_numbers = #tpu.dot_dimension_numbers<[1], [0], [0], [1], [0, 0, 1, 1], [], []>} : vector<256x128xf32>, vector<128x128xf32>, vector<256x128xf32> -> vector<256x128xf32>
    %15 = vector.extract_strided_slice %4 {offsets = [0, 0, 0], sizes = [16, 16, 128], strides = [1, 1, 1]} : vector<18x16x128xf32> to vector<16x16x128xf32>
    %c128 = arith.constant 128 : index
    %c0_5 = arith.constant 0 : index
    %16 = vector.load %arg2[%c128, %c0_5] : memref<1152x128xf32, #tpu.memory_space<vmem>>, vector<128x128xf32>
    %17 = vector.shape_cast %15 : vector<16x16x128xf32> to vector<256x128xf32>
    %cst_6 = arith.constant dense<0.000000e+00> : vector<256x128xf32>
    %18 = tpu.matmul %17, %16, %cst_6 {dimension_numbers = #tpu.dot_dimension_numbers<[1], [0], [0], [1], [0, 0, 1, 1], [], []>} : vector<256x128xf32>, vector<128x128xf32>, vector<256x128xf32> -> vector<256x128xf32>
    %19 = arith.addf %14, %18 : vector<256x128xf32>
    %20 = vector.extract_strided_slice %10 {offsets = [0, 0, 0], sizes = [16, 16, 128], strides = [1, 1, 1]} : vector<18x16x128xf32> to vector<16x16x128xf32>
    %c256 = arith.constant 256 : index
    %c0_7 = arith.constant 0 : index
    %21 = vector.load %arg2[%c256, %c0_7] : memref<1152x128xf32, #tpu.memory_space<vmem>>, vector<128x128xf32>
    %22 = vector.shape_cast %20 : vector<16x16x128xf32> to vector<256x128xf32>
    %cst_8 = arith.constant dense<0.000000e+00> : vector<256x128xf32>
    %23 = tpu.matmul %22, %21, %cst_8 {dimension_numbers = #tpu.dot_dimension_numbers<[1], [0], [0], [1], [0, 0, 1, 1], [], []>} : vector<256x128xf32>, vector<128x128xf32>, vector<256x128xf32> -> vector<256x128xf32>
    %24 = arith.addf %19, %23 : vector<256x128xf32>
    %25 = vector.extract_strided_slice %7 {offsets = [1, 0, 0], sizes = [16, 16, 128], strides = [1, 1, 1]} : vector<18x16x128xf32> to vector<16x16x128xf32>
    %c384 = arith.constant 384 : index
    %c0_9 = arith.constant 0 : index
    %26 = vector.load %arg2[%c384, %c0_9] : memref<1152x128xf32, #tpu.memory_space<vmem>>, vector<128x128xf32>
    %27 = vector.shape_cast %25 : vector<16x16x128xf32> to vector<256x128xf32>
    %cst_10 = arith.constant dense<0.000000e+00> : vector<256x128xf32>
    %28 = tpu.matmul %27, %26, %cst_10 {dimension_numbers = #tpu.dot_dimension_numbers<[1], [0], [0], [1], [0, 0, 1, 1], [], []>} : vector<256x128xf32>, vector<128x128xf32>, vector<256x128xf32> -> vector<256x128xf32>
    %29 = arith.addf %24, %28 : vector<256x128xf32>
    %30 = vector.extract_strided_slice %4 {offsets = [1, 0, 0], sizes = [16, 16, 128], strides = [1, 1, 1]} : vector<18x16x128xf32> to vector<16x16x128xf32>
    %c512 = arith.constant 512 : index
    %c0_11 = arith.constant 0 : index
    %31 = vector.load %arg2[%c512, %c0_11] : memref<1152x128xf32, #tpu.memory_space<vmem>>, vector<128x128xf32>
    %32 = vector.shape_cast %30 : vector<16x16x128xf32> to vector<256x128xf32>
    %cst_12 = arith.constant dense<0.000000e+00> : vector<256x128xf32>
    %33 = tpu.matmul %32, %31, %cst_12 {dimension_numbers = #tpu.dot_dimension_numbers<[1], [0], [0], [1], [0, 0, 1, 1], [], []>} : vector<256x128xf32>, vector<128x128xf32>, vector<256x128xf32> -> vector<256x128xf32>
    %34 = arith.addf %29, %33 : vector<256x128xf32>
    %35 = vector.extract_strided_slice %10 {offsets = [1, 0, 0], sizes = [16, 16, 128], strides = [1, 1, 1]} : vector<18x16x128xf32> to vector<16x16x128xf32>
    %c640 = arith.constant 640 : index
    %c0_13 = arith.constant 0 : index
    %36 = vector.load %arg2[%c640, %c0_13] : memref<1152x128xf32, #tpu.memory_space<vmem>>, vector<128x128xf32>
    %37 = vector.shape_cast %35 : vector<16x16x128xf32> to vector<256x128xf32>
    %cst_14 = arith.constant dense<0.000000e+00> : vector<256x128xf32>
    %38 = tpu.matmul %37, %36, %cst_14 {dimension_numbers = #tpu.dot_dimension_numbers<[1], [0], [0], [1], [0, 0, 1, 1], [], []>} : vector<256x128xf32>, vector<128x128xf32>, vector<256x128xf32> -> vector<256x128xf32>
    %39 = arith.addf %34, %38 : vector<256x128xf32>
    %40 = vector.extract_strided_slice %7 {offsets = [2, 0, 0], sizes = [16, 16, 128], strides = [1, 1, 1]} : vector<18x16x128xf32> to vector<16x16x128xf32>
    %c768 = arith.constant 768 : index
    %c0_15 = arith.constant 0 : index
    %41 = vector.load %arg2[%c768, %c0_15] : memref<1152x128xf32, #tpu.memory_space<vmem>>, vector<128x128xf32>
    %42 = vector.shape_cast %40 : vector<16x16x128xf32> to vector<256x128xf32>
    %cst_16 = arith.constant dense<0.000000e+00> : vector<256x128xf32>
    %43 = tpu.matmul %42, %41, %cst_16 {dimension_numbers = #tpu.dot_dimension_numbers<[1], [0], [0], [1], [0, 0, 1, 1], [], []>} : vector<256x128xf32>, vector<128x128xf32>, vector<256x128xf32> -> vector<256x128xf32>
    %44 = arith.addf %39, %43 : vector<256x128xf32>
    %45 = vector.extract_strided_slice %4 {offsets = [2, 0, 0], sizes = [16, 16, 128], strides = [1, 1, 1]} : vector<18x16x128xf32> to vector<16x16x128xf32>
    %c896 = arith.constant 896 : index
    %c0_17 = arith.constant 0 : index
    %46 = vector.load %arg2[%c896, %c0_17] : memref<1152x128xf32, #tpu.memory_space<vmem>>, vector<128x128xf32>
    %47 = vector.shape_cast %45 : vector<16x16x128xf32> to vector<256x128xf32>
    %cst_18 = arith.constant dense<0.000000e+00> : vector<256x128xf32>
    %48 = tpu.matmul %47, %46, %cst_18 {dimension_numbers = #tpu.dot_dimension_numbers<[1], [0], [0], [1], [0, 0, 1, 1], [], []>} : vector<256x128xf32>, vector<128x128xf32>, vector<256x128xf32> -> vector<256x128xf32>
    %49 = arith.addf %44, %48 : vector<256x128xf32>
    %50 = vector.extract_strided_slice %10 {offsets = [2, 0, 0], sizes = [16, 16, 128], strides = [1, 1, 1]} : vector<18x16x128xf32> to vector<16x16x128xf32>
    %c1024 = arith.constant 1024 : index
    %c0_19 = arith.constant 0 : index
    %51 = vector.load %arg2[%c1024, %c0_19] : memref<1152x128xf32, #tpu.memory_space<vmem>>, vector<128x128xf32>
    %52 = vector.shape_cast %50 : vector<16x16x128xf32> to vector<256x128xf32>
    %cst_20 = arith.constant dense<0.000000e+00> : vector<256x128xf32>
    %53 = tpu.matmul %52, %51, %cst_20 {dimension_numbers = #tpu.dot_dimension_numbers<[1], [0], [0], [1], [0, 0, 1, 1], [], []>} : vector<256x128xf32>, vector<128x128xf32>, vector<256x128xf32> -> vector<256x128xf32>
    %54 = arith.addf %49, %53 : vector<256x128xf32>
    %c0_21 = arith.constant 0 : index
    %c0_22 = arith.constant 0 : index
    %55 = vector.load %arg4[%c0_21, %c0_22] : memref<4x128xf32, #tpu.memory_space<vmem>>, vector<1x128xf32>
    %c1 = arith.constant 1 : index
    %c0_23 = arith.constant 0 : index
    %56 = vector.load %arg4[%c1, %c0_23] : memref<4x128xf32, #tpu.memory_space<vmem>>, vector<1x128xf32>
    %cst_24 = arith.constant dense<0.000000e+00> : vector<128xf32>
    %57 = vector.multi_reduction <add>, %54, %cst_24 [0] : vector<256x128xf32> to vector<128xf32>
    %58 = vector.shape_cast %57 : vector<128xf32> to vector<1x128xf32>
    %cst_25 = arith.constant 3.906250e-03 : f32
    %59 = vector.broadcast %cst_25 : f32 to vector<1x128xf32>
    %60 = arith.mulf %58, %59 : vector<1x128xf32>
    %61 = arith.mulf %54, %54 : vector<256x128xf32>
    %cst_26 = arith.constant dense<0.000000e+00> : vector<128xf32>
    %62 = vector.multi_reduction <add>, %61, %cst_26 [0] : vector<256x128xf32> to vector<128xf32>
    %63 = vector.shape_cast %62 : vector<128xf32> to vector<1x128xf32>
    %cst_27 = arith.constant 3.906250e-03 : f32
    %64 = vector.broadcast %cst_27 : f32 to vector<1x128xf32>
    %65 = arith.mulf %63, %64 : vector<1x128xf32>
    %66 = arith.mulf %60, %60 : vector<1x128xf32>
    %67 = arith.subf %65, %66 : vector<1x128xf32>
    %cst_28 = arith.constant 0.000000e+00 : f32
    %68 = vector.broadcast %cst_28 : f32 to vector<1x128xf32>
    %69 = arith.maximumf %67, %68 : vector<1x128xf32>
    %70 = vector.broadcast %60 : vector<1x128xf32> to vector<256x128xf32>
    %71 = arith.subf %54, %70 : vector<256x128xf32>
    %cst_29 = arith.constant 9.99999974E-6 : f32
    %72 = vector.broadcast %cst_29 : f32 to vector<1x128xf32>
    %73 = arith.addf %69, %72 : vector<1x128xf32>
    %74 = math.rsqrt %73 : vector<1x128xf32>
    %75 = vector.broadcast %74 : vector<1x128xf32> to vector<256x128xf32>
    %76 = arith.mulf %71, %75 : vector<256x128xf32>
    %77 = vector.broadcast %55 : vector<1x128xf32> to vector<256x128xf32>
    %78 = arith.mulf %76, %77 : vector<256x128xf32>
    %79 = vector.broadcast %56 : vector<1x128xf32> to vector<256x128xf32>
    %80 = arith.addf %78, %79 : vector<256x128xf32>
    %cst_30 = arith.constant 0.000000e+00 : f32
    %81 = vector.broadcast %cst_30 : f32 to vector<256x128xf32>
    %82 = arith.maximumf %80, %81 : vector<256x128xf32>
    %83 = vector.shape_cast %82 : vector<256x128xf32> to vector<16x16x128xf32>
    %84 = vector.extract_strided_slice %83 {offsets = [1, 0, 0], sizes = [1, 16, 128], strides = [1, 1, 1]} : vector<16x16x128xf32> to vector<1x16x128xf32>
    %85 = vector.extract_strided_slice %83 {offsets = [14, 0, 0], sizes = [1, 16, 128], strides = [1, 1, 1]} : vector<16x16x128xf32> to vector<1x16x128xf32>
    %86 = tpu.concatenate %84, %83, %85 in 0 : vector<1x16x128xf32>, vector<16x16x128xf32>, vector<1x16x128xf32> -> vector<18x16x128xf32>
    %87 = vector.extract_strided_slice %86 {offsets = [0, 1, 0], sizes = [18, 1, 128], strides = [1, 1, 1]} : vector<18x16x128xf32> to vector<18x1x128xf32>
    %88 = vector.extract_strided_slice %86 {offsets = [0, 0, 0], sizes = [18, 15, 128], strides = [1, 1, 1]} : vector<18x16x128xf32> to vector<18x15x128xf32>
    %89 = tpu.concatenate %87, %88 in 1 : vector<18x1x128xf32>, vector<18x15x128xf32> -> vector<18x16x128xf32>
    %90 = vector.extract_strided_slice %86 {offsets = [0, 1, 0], sizes = [18, 15, 128], strides = [1, 1, 1]} : vector<18x16x128xf32> to vector<18x15x128xf32>
    %91 = vector.extract_strided_slice %86 {offsets = [0, 14, 0], sizes = [18, 1, 128], strides = [1, 1, 1]} : vector<18x16x128xf32> to vector<18x1x128xf32>
    %92 = tpu.concatenate %90, %91 in 1 : vector<18x15x128xf32>, vector<18x1x128xf32> -> vector<18x16x128xf32>
    %93 = vector.extract_strided_slice %89 {offsets = [0, 0, 0], sizes = [16, 16, 128], strides = [1, 1, 1]} : vector<18x16x128xf32> to vector<16x16x128xf32>
    %c0_31 = arith.constant 0 : index
    %c0_32 = arith.constant 0 : index
    %94 = vector.load %arg3[%c0_31, %c0_32] : memref<1152x128xf32, #tpu.memory_space<vmem>>, vector<128x128xf32>
    %95 = vector.shape_cast %93 : vector<16x16x128xf32> to vector<256x128xf32>
    %cst_33 = arith.constant dense<0.000000e+00> : vector<256x128xf32>
    %96 = tpu.matmul %95, %94, %cst_33 {dimension_numbers = #tpu.dot_dimension_numbers<[1], [0], [0], [1], [0, 0, 1, 1], [], []>} : vector<256x128xf32>, vector<128x128xf32>, vector<256x128xf32> -> vector<256x128xf32>
    %97 = vector.extract_strided_slice %86 {offsets = [0, 0, 0], sizes = [16, 16, 128], strides = [1, 1, 1]} : vector<18x16x128xf32> to vector<16x16x128xf32>
    %c128_34 = arith.constant 128 : index
    %c0_35 = arith.constant 0 : index
    %98 = vector.load %arg3[%c128_34, %c0_35] : memref<1152x128xf32, #tpu.memory_space<vmem>>, vector<128x128xf32>
    %99 = vector.shape_cast %97 : vector<16x16x128xf32> to vector<256x128xf32>
    %cst_36 = arith.constant dense<0.000000e+00> : vector<256x128xf32>
    %100 = tpu.matmul %99, %98, %cst_36 {dimension_numbers = #tpu.dot_dimension_numbers<[1], [0], [0], [1], [0, 0, 1, 1], [], []>} : vector<256x128xf32>, vector<128x128xf32>, vector<256x128xf32> -> vector<256x128xf32>
    %101 = arith.addf %96, %100 : vector<256x128xf32>
    %102 = vector.extract_strided_slice %92 {offsets = [0, 0, 0], sizes = [16, 16, 128], strides = [1, 1, 1]} : vector<18x16x128xf32> to vector<16x16x128xf32>
    %c256_37 = arith.constant 256 : index
    %c0_38 = arith.constant 0 : index
    %103 = vector.load %arg3[%c256_37, %c0_38] : memref<1152x128xf32, #tpu.memory_space<vmem>>, vector<128x128xf32>
    %104 = vector.shape_cast %102 : vector<16x16x128xf32> to vector<256x128xf32>
    %cst_39 = arith.constant dense<0.000000e+00> : vector<256x128xf32>
    %105 = tpu.matmul %104, %103, %cst_39 {dimension_numbers = #tpu.dot_dimension_numbers<[1], [0], [0], [1], [0, 0, 1, 1], [], []>} : vector<256x128xf32>, vector<128x128xf32>, vector<256x128xf32> -> vector<256x128xf32>
    %106 = arith.addf %101, %105 : vector<256x128xf32>
    %107 = vector.extract_strided_slice %89 {offsets = [1, 0, 0], sizes = [16, 16, 128], strides = [1, 1, 1]} : vector<18x16x128xf32> to vector<16x16x128xf32>
    %c384_40 = arith.constant 384 : index
    %c0_41 = arith.constant 0 : index
    %108 = vector.load %arg3[%c384_40, %c0_41] : memref<1152x128xf32, #tpu.memory_space<vmem>>, vector<128x128xf32>
    %109 = vector.shape_cast %107 : vector<16x16x128xf32> to vector<256x128xf32>
    %cst_42 = arith.constant dense<0.000000e+00> : vector<256x128xf32>
    %110 = tpu.matmul %109, %108, %cst_42 {dimension_numbers = #tpu.dot_dimension_numbers<[1], [0], [0], [1], [0, 0, 1, 1], [], []>} : vector<256x128xf32>, vector<128x128xf32>, vector<256x128xf32> -> vector<256x128xf32>
    %111 = arith.addf %106, %110 : vector<256x128xf32>
    %112 = vector.extract_strided_slice %86 {offsets = [1, 0, 0], sizes = [16, 16, 128], strides = [1, 1, 1]} : vector<18x16x128xf32> to vector<16x16x128xf32>
    %c512_43 = arith.constant 512 : index
    %c0_44 = arith.constant 0 : index
    %113 = vector.load %arg3[%c512_43, %c0_44] : memref<1152x128xf32, #tpu.memory_space<vmem>>, vector<128x128xf32>
    %114 = vector.shape_cast %112 : vector<16x16x128xf32> to vector<256x128xf32>
    %cst_45 = arith.constant dense<0.000000e+00> : vector<256x128xf32>
    %115 = tpu.matmul %114, %113, %cst_45 {dimension_numbers = #tpu.dot_dimension_numbers<[1], [0], [0], [1], [0, 0, 1, 1], [], []>} : vector<256x128xf32>, vector<128x128xf32>, vector<256x128xf32> -> vector<256x128xf32>
    %116 = arith.addf %111, %115 : vector<256x128xf32>
    %117 = vector.extract_strided_slice %92 {offsets = [1, 0, 0], sizes = [16, 16, 128], strides = [1, 1, 1]} : vector<18x16x128xf32> to vector<16x16x128xf32>
    %c640_46 = arith.constant 640 : index
    %c0_47 = arith.constant 0 : index
    %118 = vector.load %arg3[%c640_46, %c0_47] : memref<1152x128xf32, #tpu.memory_space<vmem>>, vector<128x128xf32>
    %119 = vector.shape_cast %117 : vector<16x16x128xf32> to vector<256x128xf32>
    %cst_48 = arith.constant dense<0.000000e+00> : vector<256x128xf32>
    %120 = tpu.matmul %119, %118, %cst_48 {dimension_numbers = #tpu.dot_dimension_numbers<[1], [0], [0], [1], [0, 0, 1, 1], [], []>} : vector<256x128xf32>, vector<128x128xf32>, vector<256x128xf32> -> vector<256x128xf32>
    %121 = arith.addf %116, %120 : vector<256x128xf32>
    %122 = vector.extract_strided_slice %89 {offsets = [2, 0, 0], sizes = [16, 16, 128], strides = [1, 1, 1]} : vector<18x16x128xf32> to vector<16x16x128xf32>
    %c768_49 = arith.constant 768 : index
    %c0_50 = arith.constant 0 : index
    %123 = vector.load %arg3[%c768_49, %c0_50] : memref<1152x128xf32, #tpu.memory_space<vmem>>, vector<128x128xf32>
    %124 = vector.shape_cast %122 : vector<16x16x128xf32> to vector<256x128xf32>
    %cst_51 = arith.constant dense<0.000000e+00> : vector<256x128xf32>
    %125 = tpu.matmul %124, %123, %cst_51 {dimension_numbers = #tpu.dot_dimension_numbers<[1], [0], [0], [1], [0, 0, 1, 1], [], []>} : vector<256x128xf32>, vector<128x128xf32>, vector<256x128xf32> -> vector<256x128xf32>
    %126 = arith.addf %121, %125 : vector<256x128xf32>
    %127 = vector.extract_strided_slice %86 {offsets = [2, 0, 0], sizes = [16, 16, 128], strides = [1, 1, 1]} : vector<18x16x128xf32> to vector<16x16x128xf32>
    %c896_52 = arith.constant 896 : index
    %c0_53 = arith.constant 0 : index
    %128 = vector.load %arg3[%c896_52, %c0_53] : memref<1152x128xf32, #tpu.memory_space<vmem>>, vector<128x128xf32>
    %129 = vector.shape_cast %127 : vector<16x16x128xf32> to vector<256x128xf32>
    %cst_54 = arith.constant dense<0.000000e+00> : vector<256x128xf32>
    %130 = tpu.matmul %129, %128, %cst_54 {dimension_numbers = #tpu.dot_dimension_numbers<[1], [0], [0], [1], [0, 0, 1, 1], [], []>} : vector<256x128xf32>, vector<128x128xf32>, vector<256x128xf32> -> vector<256x128xf32>
    %131 = arith.addf %126, %130 : vector<256x128xf32>
    %132 = vector.extract_strided_slice %92 {offsets = [2, 0, 0], sizes = [16, 16, 128], strides = [1, 1, 1]} : vector<18x16x128xf32> to vector<16x16x128xf32>
    %c1024_55 = arith.constant 1024 : index
    %c0_56 = arith.constant 0 : index
    %133 = vector.load %arg3[%c1024_55, %c0_56] : memref<1152x128xf32, #tpu.memory_space<vmem>>, vector<128x128xf32>
    %134 = vector.shape_cast %132 : vector<16x16x128xf32> to vector<256x128xf32>
    %cst_57 = arith.constant dense<0.000000e+00> : vector<256x128xf32>
    %135 = tpu.matmul %134, %133, %cst_57 {dimension_numbers = #tpu.dot_dimension_numbers<[1], [0], [0], [1], [0, 0, 1, 1], [], []>} : vector<256x128xf32>, vector<128x128xf32>, vector<256x128xf32> -> vector<256x128xf32>
    %136 = arith.addf %131, %135 : vector<256x128xf32>
    %c2 = arith.constant 2 : index
    %c0_58 = arith.constant 0 : index
    %137 = vector.load %arg4[%c2, %c0_58] : memref<4x128xf32, #tpu.memory_space<vmem>>, vector<1x128xf32>
    %c3 = arith.constant 3 : index
    %c0_59 = arith.constant 0 : index
    %138 = vector.load %arg4[%c3, %c0_59] : memref<4x128xf32, #tpu.memory_space<vmem>>, vector<1x128xf32>
    %cst_60 = arith.constant dense<0.000000e+00> : vector<128xf32>
    %139 = vector.multi_reduction <add>, %136, %cst_60 [0] : vector<256x128xf32> to vector<128xf32>
    %140 = vector.shape_cast %139 : vector<128xf32> to vector<1x128xf32>
    %cst_61 = arith.constant 3.906250e-03 : f32
    %141 = vector.broadcast %cst_61 : f32 to vector<1x128xf32>
    %142 = arith.mulf %140, %141 : vector<1x128xf32>
    %143 = arith.mulf %136, %136 : vector<256x128xf32>
    %cst_62 = arith.constant dense<0.000000e+00> : vector<128xf32>
    %144 = vector.multi_reduction <add>, %143, %cst_62 [0] : vector<256x128xf32> to vector<128xf32>
    %145 = vector.shape_cast %144 : vector<128xf32> to vector<1x128xf32>
    %cst_63 = arith.constant 3.906250e-03 : f32
    %146 = vector.broadcast %cst_63 : f32 to vector<1x128xf32>
    %147 = arith.mulf %145, %146 : vector<1x128xf32>
    %148 = arith.mulf %142, %142 : vector<1x128xf32>
    %149 = arith.subf %147, %148 : vector<1x128xf32>
    %cst_64 = arith.constant 0.000000e+00 : f32
    %150 = vector.broadcast %cst_64 : f32 to vector<1x128xf32>
    %151 = arith.maximumf %149, %150 : vector<1x128xf32>
    %152 = vector.broadcast %142 : vector<1x128xf32> to vector<256x128xf32>
    %153 = arith.subf %136, %152 : vector<256x128xf32>
    %cst_65 = arith.constant 9.99999974E-6 : f32
    %154 = vector.broadcast %cst_65 : f32 to vector<1x128xf32>
    %155 = arith.addf %151, %154 : vector<1x128xf32>
    %156 = math.rsqrt %155 : vector<1x128xf32>
    %157 = vector.broadcast %156 : vector<1x128xf32> to vector<256x128xf32>
    %158 = arith.mulf %153, %157 : vector<256x128xf32>
    %159 = vector.broadcast %137 : vector<1x128xf32> to vector<256x128xf32>
    %160 = arith.mulf %158, %159 : vector<256x128xf32>
    %161 = vector.broadcast %138 : vector<1x128xf32> to vector<256x128xf32>
    %162 = arith.addf %160, %161 : vector<256x128xf32>
    %c0_66 = arith.constant 0 : index
    %c0_67 = arith.constant 0 : index
    %c0_68 = arith.constant 0 : index
    %c0_69 = arith.constant 0 : index
    %163 = vector.load %arg1[%c0_66, %c0_67, %c0_68, %c0_69] : memref<1x16x16x128xf32, #tpu.memory_space<vmem>>, vector<1x16x16x128xf32>
    %164 = vector.shape_cast %163 : vector<1x16x16x128xf32> to vector<16x16x128xf32>
    %165 = vector.shape_cast %164 : vector<16x16x128xf32> to vector<256x128xf32>
    %166 = arith.addf %162, %165 : vector<256x128xf32>
    %167 = vector.shape_cast %166 : vector<256x128xf32> to vector<16x16x128xf32>
    %c0_70 = arith.constant 0 : index
    %c0_71 = arith.constant 0 : index
    %c0_72 = arith.constant 0 : index
    %c0_73 = arith.constant 0 : index
    %168 = vector.load %arg5[%c0_70, %c0_71, %c0_72, %c0_73] : memref<1x16x16x128xf32, #tpu.memory_space<vmem>>, vector<1x16x16x128xf32>
    %169 = vector.shape_cast %168 : vector<1x16x16x128xf32> to vector<16x16x128xf32>
    %170 = vector.shape_cast %167 : vector<16x16x128xf32> to vector<1x16x16x128xf32>
    tpu.vector_store %arg5[%c0_70, %c0_71, %c0_72, %c0_73], %170 {strides = array<i32>} : memref<1x16x16x128xf32, #tpu.memory_space<vmem>>, vector<1x16x16x128xf32>,
    return
  }
  func.func @transform_0(%arg0: i32) -> (i32, i32, i32, i32) {
    %c0_i32 = arith.constant 0 : i32
    %c0_i32_0 = arith.constant 0 : i32
    %c0_i32_1 = arith.constant 0 : i32
    %c0_i32_2 = arith.constant 0 : i32
    return %arg0, %c0_i32, %c0_i32_0, %c0_i32_1 : i32, i32, i32, i32
  }
  func.func @transform_1(%arg0: i32) -> (i32, i32) {
    %c0_i32 = arith.constant 0 : i32
    %c0_i32_0 = arith.constant 0 : i32
    %c0_i32_1 = arith.constant 0 : i32
    return %c0_i32, %c0_i32_0 : i32, i32
  }
  func.func @transform_2(%arg0: i32) -> (i32, i32) {
    %c0_i32 = arith.constant 0 : i32
    %c0_i32_0 = arith.constant 0 : i32
    %c0_i32_1 = arith.constant 0 : i32
    return %c0_i32, %c0_i32_0 : i32, i32
  }
  func.func @transform_3(%arg0: i32) -> (i32, i32) {
    %c0_i32 = arith.constant 0 : i32
    %c0_i32_0 = arith.constant 0 : i32
    %c0_i32_1 = arith.constant 0 : i32
    return %c0_i32, %c0_i32_0 : i32, i32
  }
  func.func @transform_4(%arg0: i32) -> (i32, i32, i32, i32) {
    %c0_i32 = arith.constant 0 : i32
    %c0_i32_0 = arith.constant 0 : i32
    %c0_i32_1 = arith.constant 0 : i32
    %c0_i32_2 = arith.constant 0 : i32
    return %arg0, %c0_i32, %c0_i32_0, %c0_i32_1 : i32, i32, i32, i32
  }
}

</mosaic_0001>

<bundles_post_ra>
// kernel: tpu_custom_call.1
= control target key start
LH: loop header
LB: loop body
LE: loop exit
PB: predicated region body
PF: predicated region fallthrough
CT: control target
= control target key end

     0   :  { %9 = vsyncpa [#allocation3], 0  ;;  %s12570_s0 = inlined_call_operand.hbm [shape: f32[2,16,16,128], index: 0, kind: input, shape index: {}]   ;;  %s12571_s1 = inlined_call_operand.hbm [shape: f32[1152,128], index: 1, kind: input, shape index: {}]   ;;  %s12572_s2 = inlined_call_operand.hbm [shape: f32[1152,128], index: 2, kind: input, shape index: {}]   ;;  %s12573_s3 = inlined_call_operand.vmem [shape: f32[4,128], index: 3, kind: input, shape index: {}]   ;;  %s12574_s4 = inlined_call_operand.hbm [shape: f32[2,16,16,128], index: 4, kind: output, shape index: {}]  }
   0x1   :  { %11 = vsyncpa [#allocation3 + $0x1], 0 }
   0x2   :  { %12 = vsyncpa [#allocation6], 0 }
   0x3   :  { %13 = vsyncpa [#allocation4], 0 }
   0x4   :  { %15 = vsyncpa [#allocation4 + $0x1], 0  ;;  %s10023_s15 = smov 0   ;;  %s10025_s16 = smov 0  }
   0x5   :  { %s10027_s17 = smov 0   ;;  %s10029_s18 = smov 0  }
   0x6 LB: > { %s10044_s19 = sadd.s32 4294967295, %s9988_s18   ;;  %s6281_s20 = sadd.s32 4294967294, %s9988_s18   ;;  %s9988_s18 = sphi %s10029_s18, %s13096_s18   ;;  %s9984_s17 = sphi %s10027_s17, %s13095_s17   ;;  %s9980_s16 = sphi %s10025_s16, %s13094_s16   ;;  %s9976_s15 = sphi %s10023_s15, %s13093_s15  }
   0x7   : > { %p41_p0 = scmp.ne.s32.totalorder %s9980_s16, %s9976_s15  ;;  %p12575_p1 = scmp.eq.s32.totalorder %s10044_s19, 0 }
   0x8   : > { %p134_p3 = scmp.eq.s32.totalorder %s6281_s20, 1  ;;  %p6282_p5 = scmp.ge.s32.totalorder %s9988_s18, 1 }
   0x9   : > { %p10053_p4 = por %p12575_p1, %p41_p0  ;;  %p141_p7 = scmp.lt.s32.totalorder %s9988_s18, 3 }
   0xa   : > { %p10058_p6 = por %p134_p3, %p41_p0  ;;  %s9990_s24 = smov [#allocation5]  }
   0xb   : > { %s12800_s21 = scalar_select %p10053_p4, 1, 0 }
   0xc   : > { %s12801_s22 = scalar_select %p10058_p6, 1, 0 }
   0xd   : > { %p10063_p8 = pnand %p6282_p5, %p141_p7  ;;  %s153_s25 = sshll.u32 %s9990_s24, 4  ;;  %s10067_s25 = int_to_ptr.vmem [resolvable:$true] %s153_s25 }
   0xe   : > { %s9991_s27 = smov [#allocation7]   ;;  %s9832_s5 = scalar_lea.hbm %s12571_s1, 18432 }
   0xf   : > { %p9709_p9 = pneg %p10063_p8  ;;  %s166_s28 = sshll.u32 %s9991_s27, 4  ;;  %s10078_s28 = int_to_ptr.vmem [resolvable:$true] %s166_s28 }
  0x10   : > { %p9833_p12 = scmp.ne.s32.totalorder %s12571_s1, %s9832_s5  ;;  %p9839_p5 = scmp.lt.u32.totalorder %s9832_s5, %s12571_s1 }
  0x11   : > { %p10074_p11 = pnand %p9709_p9, %p12575_p1 }
  0x13   : > { %p9834_p13 = pneg %p10074_p11 }
  0x15   : > { %p9835_p0 = pnand %p9834_p13, %p9833_p12 }
  0x17   : > { %p9836_p3 = pneg %p9835_p0 }
  0x19   : > { %p9841_p7 = pnand %p9839_p5, %p9836_p3 }
  0x1b   : > { %9844 = shalt.err (!%p9841_p7)
}
  0x1c   : > { %s9845_s10 = scalar_lea.vmem %s10067_s25, 18432  ;;  %p9853_p2 = scmp.lt.s32.totalorder %s10067_s25, %s10067_s25 }
  0x1d   : > { %p9846_p9 = scmp.ne.s32.totalorder %s10067_s25, %s9845_s10  ;;  %p9854_p12 = scmp.lt.s32.totalorder %s9845_s10, %s9845_s10 }
  0x1f   : > { %p9848_p10 = pnand %p9846_p9, %p9834_p13  ;;  %p9855_p0 = por %p9854_p12, %p9853_p2 }
  0x21   : > { %p9849_p1 = pneg %p9848_p10 }
  0x23   : > { %p9856_p6 = pnand %p9855_p0, %p9849_p1 }
  0x25   : > { %9859 = shalt.err (!%p9856_p6)
}
  0x26   : > { %s9992_s11 = smov 128   ;;  %s9993_s12 = smov 8  }
  0x27   : > { %9712 = dma.hbm_to_vmem [thread:$0]  (!%p10074_p11), %s12571_s1, 18432, %s10067_s25, [#allocation6], %s9992_s11, %s9992_s11, %s9993_s12  }
  0x28   : > { %s9860_s27 = scalar_lea.hbm %s12572_s2, 18432 }
  0x29   : > { %p9861_p1 = scmp.ne.s32.totalorder %s12572_s2, %s9860_s27  ;;  %p9867_p10 = scmp.lt.u32.totalorder %s9860_s27, %s12572_s2 }
  0x2b   : > { %p9863_p2 = pnand %p9861_p1, %p9834_p13 }
  0x2d   : > { %p9864_p6 = pneg %p9863_p2 }
  0x2f   : > { %p9869_p3 = pnand %p9867_p10, %p9864_p6 }
  0x31   : > { %9872 = shalt.err (!%p9869_p3)
}
  0x32   : > { %s9873_s25 = scalar_lea.vmem %s10078_s28, 18432  ;;  %p9881_p12 = scmp.lt.s32.totalorder %s10078_s28, %s10078_s28 }
  0x33   : > { %p9874_p5 = scmp.ne.s32.totalorder %s10078_s28, %s9873_s25  ;;  %p9882_p0 = scmp.lt.s32.totalorder %s9873_s25, %s9873_s25 }
  0x35   : > { %p9876_p7 = pnand %p9874_p5, %p9834_p13  ;;  %p9883_p1 = por %p9882_p0, %p9881_p12 }
  0x37   : > { %p9877_p9 = pneg %p9876_p7 }
  0x39   : > { %p9884_p2 = pnand %p9883_p1, %p9877_p9 }
  0x3b   : > { %9887 = shalt.err (!%p9884_p2)
}
  0x3c   : > { %9715 = dma.hbm_to_vmem [thread:$0]  (!%p10074_p11), %s12572_s2, 18432, %s10078_s28, [#allocation6], %s9992_s11, %s9992_s11, %s9993_s12  }
  0x3d   : > { %s10139_s26 = sadd.s32 1, %s9988_s18   ;;  %s28_s9 = sadd.s32 1, %s9984_s17 }
  0x3e   : > { %s25_s10 = ssub.s32 %s9988_s18, %s10139_s26  ;;  %p35_p13 = scmp.ne.s32.totalorder %s9984_s17, %s9980_s16 }
  0x3f   : > { %p26_p6 = scmp.eq.s32.totalorder %s25_s10, 0  ;;  %p36_p10 = scmp.eq.s32.totalorder %s9988_s18, 0 }
  0x40   : > { %p12804_p3 = scmp.eq.s32.totalorder %s10044_s19, 1  ;;  %p9726_p7 = scmp.lt.s32.totalorder %s9988_s18, 2 }
  0x41   : > { %s10155_s14 = scalar_select %p26_p6, %s9984_s17, %s28_s9  }
  0x42   : > { %p10149_p5 = por %p12804_p3, %p35_p13  ;;  %p37_p9 = por %p36_p10, %p35_p13 }
  0x43   : > { %s183_s20 = sand.u32 1, %s9984_s17   ;;  %s6303_s28 = sshll.u32 %s9988_s18, 12 }
  0x44   : > { %s12805_s13 = scalar_select %p10149_p5, 1, 0 }
  0x45   : > { %s6286_s24 = sshll.u32 %s183_s20, 8  ;;  %s10162_s30 = scalar_lea.hbm %s12570_s0, %s6303_s28 }
  0x46   : > { %s187_s5 = scalar_lea.vmem [#allocation2], %s6286_s24  ;;  %p10166_p11 = pnand %p9726_p7, %p37_p9 }
  0x47   : > { %s194_s6 = sshll.u32 %s187_s5, 4  ;;  %s10170_s7 = scalar_lea.sflag [#allocation3], %s183_s20  ;;  %s10164_s6 = int_to_ptr.vmem [resolvable:$true] %s194_s6 }
  0x48   : > { %s9888_s8 = scalar_lea.hbm %s10162_s30, 4096  ;;  %p9890_p0 = pneg %p10166_p11 }
  0x49   : > { %p9889_p12 = scmp.ne.s32.totalorder %s10162_s30, %s9888_s8  ;;  %s9893_s24 = scalar_lea.hbm %s12570_s0, 8192 }
  0x4a   : > { %p9894_p13 = scmp.lt.u32.totalorder %s10162_s30, %s12570_s0  ;;  %p9895_p6 = scmp.lt.u32.totalorder %s9893_s24, %s9888_s8 }
  0x4b   : > { %p9891_p1 = pnand %p9890_p0, %p9889_p12  ;;  %p9897_p3 = scmp.lt.u32.totalorder %s9888_s8, %s10162_s30 }
  0x4c   : > { %p9896_p10 = por %p9895_p6, %p9894_p13 }
  0x4d   : > { %p9892_p2 = pneg %p9891_p1 }
  0x4e   : > { %p9898_p7 = por %p9897_p3, %p9896_p10 }
  0x50   : > { %p9899_p9 = pnand %p9898_p7, %p9892_p2 }
  0x52   : > { %9902 = shalt.err (!%p9899_p9)
}
  0x53   : > { %s9903_s20 = scalar_lea.vmem %s10164_s6, 4096  ;;  %s9994_s29 = smov [#allocation2]  }
  0x54   : > { %p9904_p12 = scmp.ne.s32.totalorder %s10164_s6, %s9903_s20  ;;  %s9908_s5 = sshll.u32 %s9994_s29, 4  ;;  %s9909_s5 = int_to_ptr.vmem [resolvable:$false] %s9908_s5 }
  0x55   : > { %s9910_s9 = scalar_lea.vmem %s9909_s5, 8192  ;;  %p9911_p4 = scmp.lt.s32.totalorder %s10164_s6, %s9909_s5 }
  0x56   : > { %p9906_p1 = pnand %p9904_p12, %p9890_p0  ;;  %p9912_p13 = scmp.lt.s32.totalorder %s9910_s9, %s9903_s20 }
  0x58   : > { %p9907_p5 = pneg %p9906_p1  ;;  %p9913_p6 = por %p9912_p13, %p9911_p4 }
  0x5a   : > { %p9914_p10 = pnand %p9913_p6, %p9907_p5 }
  0x5c   : > { %9917 = shalt.err (!%p9914_p10)
}
  0x5d   : > { %9719 = dma.hbm_to_vmem [thread:$0]  (!%p10166_p11), %s10162_s30, 4096, %s10164_s6, %s10170_s7, %s9992_s11, %s9992_s11, %s9993_s12  }
  0x5e   : > { %206 = sbr.rel (%p10063_p8) target bundleno = 1858 (0x742), region = 36 }
  0x65   : > { %s10204_s8 = sand.u32 1, %s9980_s16   ;;  %p12807_p4 = scmp.ne.s32.totalorder %s12800_s21, 0 }
  0x66   : > { %s6290_s10 = sshll.u32 %s10204_s8, 8  ;;  %s209_s24 = scalar_lea.sflag [#allocation3], %s10204_s8 }
  0x67   : > { %s10210_s25 = scalar_lea.vmem [#allocation2], %s6290_s10 }
  0x68   : > { %9963 = dma.done.wait (%p12807_p4), %s209_s24, 4096  }
  0x69   : > { %9965 = vsyncadd (%p12807_p4), %s209_s24, 4294963200  ;;  %p12808_p5 = scmp.eq.s32.totalorder %s10044_s19, 0 }
  0x6b   : > { %9967 = dma.done.wait (%p12808_p5), [#allocation6], 36864   ;;  %p12809_p8 = pmov %p12808_p5 }
  0x6c   : > { %v551_v0 = vld [vmem:[#allocation5 + $0x80] sm:$0xff]  ;;  %v552_v1 = vld [vmem:[#allocation5 + $0x88] sm:$0xff]  ;;  %v553_v2 = vld [vmem:[#allocation5 + $0x90] sm:$0xff]  ;;  %vm341_vm0 = vcmask 1040384   ;;  %vm438_vm1 = vcmask 1046528   ;;  %s12352_s27 = scalar_lea.vmem [#allocation8], %s6290_s10 }
  0x6d   : > { %9969 = vsyncadd (%p12809_p8), [#allocation6], 4294930432  ;;  %v8609_v3 = vpack.c.bf16 %v552_v1, %v551_v0  ;;  %v554_v4 = vld [vmem:[#allocation5 + $0x98] sm:$0xff]  ;;  %v555_v6 = vld [vmem:[#allocation5 + $0xa0] sm:$0xff]  ;;  %s6304_s20 = sshll.u32 %s10044_s19, 12  ;;  %s6189_s29 = sshll.u32 %s12352_s27, 4  ;;  %s12506_s29 = int_to_ptr.vmem [resolvable:$true] %s6189_s29 }
  0x6e   : > { %v8613_v5 = vpack.c.bf16 %v554_v4, %v553_v2  ;;  %v556_v7 = vld [vmem:[#allocation5 + $0xa8] sm:$0xff]  ;;  %v10221_v9 = vld [vmem:[%s10210_s25 + $0x10] sm:$0xff]  ;;  %v558_v11 = vld [vmem:[#allocation5 + $0xb8] sm:$0xff]  ;;  %s12502_s10 = scalar_lea.hbm %s12574_s4, %s6304_s20  ;;  %s6176_s19 = scalar_lea.sflag [#allocation4], %s10204_s8 }
  0x6f   : > { %8610 = vmatprep.subr.bf16.mxu0 %v8609_v3  ;;  %v8617_v8 = vpack.c.bf16 %v556_v7, %v555_v6  ;;  %12810 = vst [vmem:[#allocation12_spill] sm:$0xff] %v10221_v9  ;;  %v557_v10 = vld [vmem:[#allocation5 + $0xb0] sm:$0xff]  ;;  %7201 = vmatprep.mubr.f32.mxu0 %v10221_v9  ;;  %v559_v13 = vld [vmem:[#allocation5 + $0xc0] sm:$0xff]  ;;  %v560_v14 = vld [vmem:[#allocation5 + $0xc8] sm:$0xff]  ;;  %s9918_s24 = scalar_lea.vmem %s12506_s29, 4096  ;;  %p13090_p0 = scmp.ne.s32.totalorder %s12805_s13, 0 }
  0x70   : > { %8612 = vmatpush3.bf16.msra.mxu0 %v8609_v3  ;;  %v8621_v12 = vpack.c.bf16 %v558_v11, %v557_v10  ;;  %v8625_v15 = vpack.c.bf16 %v560_v14, %v559_v13  ;;  %v561_v16 = vld [vmem:[#allocation5 + $0xd0] sm:$0xff]  ;;  %v562_v17 = vld [vmem:[#allocation5 + $0xd8] sm:$0xff]  ;;  %v563_v19 = vld [vmem:[#allocation5 + $0xe0] sm:$0xff]  ;;  %p9919_p11 = scmp.ne.s32.totalorder %s12506_s29, %s9918_s24 }
  0x71   : > { %8614 = vmatprep.subr.bf16.mxu0 %v8613_v5  ;;  %v8629_v18 = vpack.c.bf16 %v562_v17, %v561_v16  ;;  %v564_v20 = vld [vmem:[#allocation5 + $0xe8] sm:$0xff]  ;;  %v565_v22 = vld [vmem:[#allocation5 + $0xf0] sm:$0xff]  ;;  %v566_v23 = vld [vmem:[#allocation5 + $0xf8] sm:$0xff]  ;;  %v12602_v17 = vrot.slane %v10221_v9, 1 }
  0x72   : > { %v8633_v21 = vpack.c.bf16 %v564_v20, %v563_v19  ;;  %v8637_v24 = vpack.c.bf16 %v566_v23, %v565_v22  ;;  %v535_v25 = vld [vmem:[#allocation5] sm:$0xff]  ;;  %v536_v26 = vld [vmem:[#allocation5 + $0x8] sm:$0xff]  ;;  %v537_v28 = vld [vmem:[#allocation5 + $0x10] sm:$0xff]  ;;  %p9920_p2 = pnand %p9919_p11, %p13090_p0 }
  0x73   : > { %v8641_v27 = vpack.c.bf16 %v536_v26, %v535_v25  ;;  %v538_v29 = vld [vmem:[#allocation5 + $0x18] sm:$0xff]  ;;  %v10228_v31 = vld [vmem:[%s10210_s25] sm:$0xff]  ;;  %v540_v34 = vld [vmem:[#allocation5 + $0x28] sm:$0xff] }
  0x74   : > { %8616 = vmatpush3.bf16.msra.mxu0 %v8613_v5  ;;  %v10225_v30 = vld [vmem:[%s10210_s25 + $0x18] sm:$0xff]  ;;  %12812 = vst [vmem:[#allocation14_spill] sm:$0xff] %v10228_v31  ;;  %v8645_v32 = vpack.c.bf16 %v538_v29, %v537_v28  ;;  %v539_v33 = vld [vmem:[#allocation5 + $0x20] sm:$0xff]  ;;  %v10233_v35 = vld [vmem:[%s10210_s25 + $0x8] sm:$0xff]  ;;  %v12598_v22 = vrot.slane %v10228_v31, 1  ;;  %v345_v23 = vrot.slane %v10228_v31, 7  ;;  %p9921_p3 = pneg %p9920_p2 }
  0x75   : > { %8618 = vmatprep.subr.bf16.mxu0 %v8617_v8  ;;  %12811 = vst [vmem:[#allocation13_spill] sm:$0xff] %v10225_v30  ;;  %v8649_v36 = vpack.c.bf16 %v540_v34, %v539_v33  ;;  %v541_v37 = vld [vmem:[#allocation5 + $0x30] sm:$0xff]  ;;  %v542_v38 = vld [vmem:[#allocation5 + $0x38] sm:$0xff]  ;;  %v10238_v39 = vld [vmem:[%s10210_s25 + $0x20] sm:$0xff]  ;;  %v12599_v20 = vrot.slane %v10225_v30, 7 }
  0x76   : > { %v8653_v40 = vpack.c.bf16 %v542_v38, %v541_v37  ;;  %v543_v41 = vld [vmem:[#allocation5 + $0x40] sm:$0xff]  ;;  %v544_v42 = vld [vmem:[#allocation5 + $0x48] sm:$0xff]  ;;  %v10246_v44 = vld [vmem:[%s10210_s25 + $0x30] sm:$0xff]  ;;  %v10362_v28 = vsel %vm341_vm0, %v12598_v22, %v345_v23  ;;  %v348_v37 = vrot.slane %v10238_v39, 7 }
  0x77   : > { %v10243_v43 = vld [vmem:[%s10210_s25 + $0x28] sm:$0xff]  ;;  %v8657_v45 = vpack.c.bf16 %v544_v42, %v543_v41  ;;  %v545_v46 = vld [vmem:[#allocation5 + $0x50] sm:$0xff]  ;;  %v546_v47 = vld [vmem:[#allocation5 + $0x58] sm:$0xff] }
  0x78   : > { %8620 = vmatpush3.bf16.msra.mxu0 %v8617_v8  ;;  %v10251_v48 = vld [vmem:[%s10210_s25 + $0x38] sm:$0xff]  ;;  %v10254_v49 = vld [vmem:[%s10210_s25 + $0x40] sm:$0xff]  ;;  %v8661_v50 = vpack.c.bf16 %v546_v47, %v545_v46  ;;  %v548_v52 = vld [vmem:[#allocation5 + $0x68] sm:$0xff]  ;;  %v12591_v42 = vrot.slane %v10243_v43, 7  ;;  %v12590_v46 = vrot.slane %v10246_v44, 1  ;;  %v351_v47 = vrot.slane %v10246_v44, 7 }
  0x79   : > { %8622 = vmatprep.subr.bf16.mxu0 %v8621_v12  ;;  %v547_v51 = vld [vmem:[#allocation5 + $0x60] sm:$0xff]  ;;  %v10259_v53 = vld [vmem:[%s10210_s25 + $0x48] sm:$0xff]  ;;  %v10262_v54 = vld [vmem:[%s10210_s25 + $0x50] sm:$0xff] }
  0x7a   : > { %v8665_v55 = vpack.c.bf16 %v548_v52, %v547_v51  ;;  %v549_v56 = vld [vmem:[#allocation5 + $0x70] sm:$0xff]  ;;  %v550_v57 = vld [vmem:[#allocation5 + $0x78] sm:$0xff]  ;;  %v10270_v59 = vld [vmem:[%s10210_s25 + $0x60] sm:$0xff] }
  0x7b   : > { %v10267_v58 = vld [vmem:[%s10210_s25 + $0x58] sm:$0xff]  ;;  %v8669_v60 = vpack.c.bf16 %v550_v57, %v549_v56  ;;  %v1017_v61 = vld [vmem:[#allocation5 + $0x100] sm:$0xff]  ;;  %v1018_v62 = vld [vmem:[#allocation5 + $0x108] sm:$0xff]  ;;  %v12581_v56 = vrot.slane %v10251_v48, 7  ;;  %v10394_v57 = vsel %vm341_vm0, %v12590_v46, %v351_v47 }
  0x7c   : > { %8624 = vmatpush3.bf16.msra.mxu0 %v8621_v12  ;;  %v10275_v63 = vld [vmem:[%s10210_s25 + $0x68] sm:$0xff]  ;;  %v10278_v0 = vld [vmem:[%s10210_s25 + $0x70] sm:$0xff]  ;;  %v8673_v1 = vpack.c.bf16 %v1018_v62, %v1017_v61  ;;  %v10283_v2 = vld [vmem:[%s10210_s25 + $0x78] sm:$0xff]  ;;  %v354_v61 = vrot.slane %v10254_v49, 7 }
  0x7d   : > { %8626 = vmatprep.subr.bf16.mxu0 %v8625_v15  ;;  %v10286_v3 = vld [vmem:[%s10210_s25 + $0x80] sm:$0xff]  ;;  %v10291_v4 = vld [vmem:[%s10210_s25 + $0x88] sm:$0xff]  ;;  %v10294_v5 = vld [vmem:[%s10210_s25 + $0x90] sm:$0xff] }
  0x7e   : > { %v10299_v6 = vld [vmem:[%s10210_s25 + $0x98] sm:$0xff]  ;;  %v10302_v7 = vld [vmem:[%s10210_s25 + $0xa0] sm:$0xff]  ;;  %v10307_v8 = vld [vmem:[%s10210_s25 + $0xa8] sm:$0xff] }
  0x7f   : > { %v10310_v10 = vld [vmem:[%s10210_s25 + $0xb0] sm:$0xff]  ;;  %v10315_v11 = vld [vmem:[%s10210_s25 + $0xb8] sm:$0xff]  ;;  %v10318_v12 = vld [vmem:[%s10210_s25 + $0xc0] sm:$0xff] }
  0x80   : > { %8628 = vmatpush3.bf16.msra.mxu0 %v8625_v15  ;;  %v10323_v13 = vld [vmem:[%s10210_s25 + $0xc8] sm:$0xff]  ;;  %v10326_v14 = vld [vmem:[%s10210_s25 + $0xd0] sm:$0xff]  ;;  %v10331_v15 = vld [vmem:[%s10210_s25 + $0xd8] sm:$0xff]  ;;  %v12597_v46 = vrot.slane %v10310_v10, 1 }
  0x81   : > { %8630 = vmatprep.subr.bf16.mxu0 %v8629_v18  ;;  %v10334_v16 = vld [vmem:[%s10210_s25 + $0xe0] sm:$0xff]  ;;  %v10341_v19 = vld [vmem:[%s10210_s25 + $0xe8] sm:$0xff]  ;;  %v1020_v25 = vld [vmem:[#allocation5 + $0x118] sm:$0xff]  ;;  %v12606_v22 = vrot.slane %v10326_v14, 1 }
  0x82   : > { %v1022_v33 = vld [vmem:[#allocation5 + $0x128] sm:$0xff]  ;;  %v1024_v41 = vld [vmem:[#allocation5 + $0x138] sm:$0xff]  ;;  %v1025_v51 = vld [vmem:[#allocation5 + $0x140] sm:$0xff] }
  0x83   : > { %v1026_v52 = vld [vmem:[#allocation5 + $0x148] sm:$0xff] }
  0x84   : > { %8632 = vmatpush3.bf16.msra.mxu0 %v8629_v18  ;;  %v342_v18 = vrot.slane %v10221_v9, 7  ;;  %v8689_v62 = vpack.c.bf16 %v1026_v52, %v1025_v51  ;;  %v360_v51 = vrot.slane %v10270_v59, 7 }
  0x85   : > { %8634 = vmatprep.subr.bf16.mxu0 %v8633_v21 }
  0x86   : > { %v10356_v26 = vsel %vm341_vm0, %v342_v18, %v12599_v20  ;;  %v381_v20 = vrot.slane %v10326_v14, 7 }
  0x88   : > { %8636 = vmatpush3.bf16.msra.mxu0 %v8633_v21  ;;  %v10347_v21 = vsel %vm341_vm0, %v12602_v17, %v342_v18  ;;  %v1028_v18 = vld [vmem:[#allocation5 + $0x158] sm:$0xff]  ;;  %v12612_v17 = vrot.slane %v10334_v16, 1 }
  0x89   : > { %8638 = vmatprep.subr.bf16.mxu0 %v8637_v24 }
  0x8c   : > { %8640 = vmatpush3.bf16.msra.mxu0 %v8637_v24  ;;  %v1019_v24 = vld [vmem:[#allocation5 + $0x110] sm:$0xff] }
  0x8d   : > { %8642 = vmatprep.subr.bf16.mxu0 %v8641_v27  ;;  %v8677_v29 = vpack.c.bf16 %v1020_v25, %v1019_v24  ;;  %v12579_v24 = vrot.slane %v10259_v53, 7 }
  0x8f   : > { %7202 = vmatmul.mubr.f32.vlgmr.msra.gmra.mrb[0].mxu0 %v10225_v30 }
  0x90   : > { %8644 = vmatpush3.bf16.msra.mxu0 %v8641_v27  ;;  %7204 = vmatprep.mubr.f32.mxu0 %v10228_v31  ;;  %v12595_v27 = vrot.slane %v10233_v35, 7 }
  0x91   : > { %8646 = vmatprep.subr.bf16.mxu0 %v8645_v32 }
  0x92   : > { %v10369_v34 = vsel %vm341_vm0, %v345_v23, %v12595_v27  ;;  %v10403_v23 = vsel %vm341_vm0, %v351_v47, %v12581_v56  ;;  %v1291_v56 = vld [vmem:[#allocation5 + $0x188] sm:$0xff]  ;;  %v378_v27 = vrot.slane %v10318_v12, 7 }
  0x93   : > { %7205 = vmatmul.mubr.f32.gmra.mrb[2].mxu0 %v10233_v35 }
  0x94   : > { %7207 = vmatprep.mubr.f32.mxu0 %v10221_v9  ;;  %8648 = vmatpush3.bf16.msra.mxu0 %v8645_v32  ;;  %v1021_v32 = vld [vmem:[#allocation5 + $0x120] sm:$0xff] }
  0x95   : > { %8650 = vmatprep.subr.bf16.mxu0 %v8649_v36  ;;  %v8681_v38 = vpack.c.bf16 %v1022_v33, %v1021_v32  ;;  %v357_v32 = vrot.slane %v10262_v54, 7 }
  0x97   : > { %7208 = vmatmul.mubr.f32.gmra.mrb[4].mxu0 %v10225_v30 }
  0x98   : > { %7210 = vmatprep.mubr.f32.mxu0 %v10238_v39  ;;  %8652 = vmatpush3.bf16.msra.mxu0 %v8649_v36  ;;  %v12594_v36 = vrot.slane %v10238_v39, 1 }
  0x99   : > { %8654 = vmatprep.subr.bf16.mxu0 %v8653_v40 }
  0x9b   : > { %7211 = vmatmul.mubr.f32.gmra.mrb[6].mxu0 %v10243_v43 }
  0x9c   : > { %7213 = vmatprep.mubr.f32.mxu0 %v10246_v44  ;;  %8656 = vmatpush3.bf16.msra.mxu0 %v8653_v40  ;;  %v1023_v40 = vld [vmem:[#allocation5 + $0x130] sm:$0xff] }
  0x9d   : > { %8658 = vmatprep.subr.bf16.mxu0 %v8657_v45 }
  0x9f   : > { %7214 = vmatmul.mubr.f32.gmra.mrb[8].mxu0 %v10251_v48 }
  0xa0   : > { %7216 = vmatprep.mubr.f32.mxu0 %v10254_v49  ;;  %8660 = vmatpush3.bf16.msra.mxu0 %v8657_v45  ;;  %v10379_v45 = vsel %vm341_vm0, %v12594_v36, %v348_v37  ;;  %v12601_v36 = vrot.slane %v10318_v12, 1 }
  0xa1   : > { %8662 = vmatprep.subr.bf16.mxu0 %v8661_v50 }
  0xa3   : > { %7217 = vmatmul.mubr.f32.gmra.mrb[10].mxu0 %v10259_v53 }
  0xa4   : > { %7219 = vmatprep.mubr.f32.mxu0 %v10262_v54  ;;  %8664 = vmatpush3.bf16.msra.mxu0 %v8661_v50  ;;  %v8685_v50 = vpack.c.bf16 %v1024_v41, %v1023_v40  ;;  %v10418_v40 = vsel %vm341_vm0, %v354_v61, %v12579_v24  ;;  %v12583_v41 = vrot.slane %v10267_v58, 7 }
  0xa5   : > { %8666 = vmatprep.subr.bf16.mxu0 %v8665_v55 }
  0xa7   : > { %7220 = vmatmul.mubr.f32.gmra.mrb[12].mxu0 %v10267_v58 }
  0xa8   : > { %7222 = vmatprep.mubr.f32.mxu0 %v10270_v59  ;;  %8668 = vmatpush3.bf16.msra.mxu0 %v8665_v55  ;;  %v10388_v55 = vsel %vm341_vm0, %v348_v37, %v12591_v42  ;;  %v1029_v37 = vld [vmem:[#allocation5 + $0x160] sm:$0xff]  ;;  %v375_v42 = vrot.slane %v10310_v10, 7 }
  0xa9   : > { %8670 = vmatprep.subr.bf16.mxu0 %v8669_v60 }
  0xab   : > { %7223 = vmatmul.mubr.f32.gmra.mrb[14].mxu0 %v10275_v63 }
  0xac   : > { %7225 = vmatprep.mubr.f32.mxu0 %v10278_v0  ;;  %8672 = vmatpush3.bf16.msra.mxu0 %v8669_v60  ;;  %v12580_v60 = vrot.slane %v10254_v49, 1 }
  0xad   : > { %8674 = vmatprep.subr.bf16.mxu0 %v8673_v1 }
  0xae   : > { %v10409_v25 = vsel %vm341_vm0, %v12580_v60, %v354_v61  ;;  %v10433_v61 = vsel %vm341_vm0, %v357_v32, %v12583_v41  ;;  %v1290_v60 = vld [vmem:[#allocation5 + $0x180] sm:$0xff] }
  0xaf   : > { %7226 = vmatmul.mubr.f32.gmra.mrb[16].mxu0 %v10283_v2  ;;  %v10458_v41 = vpack.c.bf16 %v1291_v56, %v1290_v60  ;;  %v12589_v56 = vrot.slane %v10294_v5, 1  ;;  %v369_v60 = vrot.slane %v10294_v5, 7 }
  0xb0   : > { %7228 = vmatprep.mubr.f32.mxu0 %v10286_v3 }
  0xb3   : > { %7229 = vmatmul.mubr.f32.gmra.mrb[18].mxu0 %v10291_v4 }
  0xb4   : > { %7231 = vmatprep.mubr.f32.mxu0 %v10294_v5 }
  0xb7   : > { %7232 = vmatmul.mubr.f32.gmra.mrb[20].mxu0 %v10299_v6 }
  0xb8   : > { %7234 = vmatprep.mubr.f32.mxu0 %v10302_v7 }
  0xbb   : > { %7235 = vmatmul.mubr.f32.gmra.mrb[22].mxu0 %v10307_v8 }
  0xbc   : > { %7237 = vmatprep.mubr.f32.mxu0 %v10310_v10 }
  0xbf   : > { %7238 = vmatmul.mubr.f32.gmra.mrb[24].mxu0 %v10315_v11 }
  0xc0   : > { %7240 = vmatprep.mubr.f32.mxu0 %v10318_v12 }
  0xc3   : > { %7241 = vmatmul.mubr.f32.gmra.mrb[26].mxu0 %v10323_v13 }
  0xc4   : > { %7243 = vmatprep.mubr.f32.mxu0 %v10326_v14 }
  0xc7   : > { %7244 = vmatmul.mubr.f32.gmra.mrb[28].mxu0 %v10331_v15 }
  0xc8   : > { %7246 = vmatprep.mubr.f32.mxu0 %v10334_v16 }
  0xcb   : > { %7247 = vmatmul.mubr.f32.gmra.mrb[30].mxu0 %v10341_v19 }
  0xcc   : > { %7281 = vmatprep.mubr.f32.mxu0 %v10347_v21 }
  0xcf   : > { %7282 = vmatmul.mubr.f32.vlgmr.msra.gmra.mrb[0].mxu0 %v10356_v26 }
  0xd0   : > { %8676 = vmatpush3.bf16.msra.mxu0 %v8673_v1  ;;  %7284 = vmatprep.mubr.f32.mxu0 %v10362_v28  ;;  %v1027_v1 = vld [vmem:[#allocation5 + $0x150] sm:$0xff] }
  0xd1   : > { %8678 = vmatprep.subr.bf16.mxu0 %v8677_v29  ;;  %v8693_v33 = vpack.c.bf16 %v1028_v18, %v1027_v1  ;;  %v1031_v1 = vld [vmem:[#allocation5 + $0x170] sm:$0xff]  ;;  %v1032_v18 = vld [vmem:[#allocation5 + $0x178] sm:$0xff] }
  0xd2   : > { %v8701_v24 = vpack.c.bf16 %v1032_v18, %v1031_v1  ;;  %v12585_v1 = vrot.slane %v10286_v3, 1  ;;  %v366_v18 = vrot.slane %v10286_v3, 7 }
  0xd3   : > { %7285 = vmatmul.mubr.f32.gmra.mrb[2].mxu0 %v10369_v34 }
  0xd4   : > { %7287 = vmatprep.mubr.f32.mxu0 %v10347_v21  ;;  %8680 = vmatpush3.bf16.msra.mxu0 %v8677_v29  ;;  %v12578_v29 = vrot.slane %v10262_v54, 1 }
  0xd5   : > { %8682 = vmatprep.subr.bf16.mxu0 %v8681_v38 }
  0xd6   : > { %v10424_v47 = vsel %vm341_vm0, %v12578_v29, %v357_v32 }
  0xd7   : > { %7288 = vmatmul.mubr.f32.gmra.mrb[4].mxu0 %v10356_v26 }
  0xd8   : > { %7290 = vmatprep.mubr.f32.mxu0 %v10379_v45  ;;  %8684 = vmatpush3.bf16.msra.mxu0 %v8681_v38  ;;  %v1030_v38 = vld [vmem:[#allocation5 + $0x168] sm:$0xff] }
  0xd9   : > { %8686 = vmatprep.subr.bf16.mxu0 %v8685_v50  ;;  %v8697_v52 = vpack.c.bf16 %v1030_v38, %v1029_v37  ;;  %v12584_v37 = vrot.slane %v10278_v0, 1  ;;  %v363_v38 = vrot.slane %v10278_v0, 7 }
  0xdb   : > { %7291 = vmatmul.mubr.f32.gmra.mrb[6].mxu0 %v10388_v55 }
  0xdc   : > { %7293 = vmatprep.mubr.f32.mxu0 %v10394_v57  ;;  %8688 = vmatpush3.bf16.msra.mxu0 %v8685_v50  ;;  %v12582_v50 = vrot.slane %v10270_v59, 1 }
  0xdd   : > { %8690 = vmatprep.subr.bf16.mxu0 %v8689_v62 }
  0xde   : > { %v10439_v29 = vsel %vm341_vm0, %v12582_v50, %v360_v51  ;;  %v10454_v50 = vsel %vm341_vm0, %v12584_v37, %v363_v38  ;;  %v10471_v37 = vsel %vm341_vm0, %v12585_v1, %v366_v18  ;;  %v10487_v1 = vsel %vm341_vm0, %v12589_v56, %v369_v60 }
  0xdf   : > { %7294 = vmatmul.mubr.f32.gmra.mrb[8].mxu0 %v10403_v23  ;;  %12813 = vst [vmem:[#allocation15_spill] sm:$0xff] %v10487_v1 }
  0xe0   : > { %7296 = vmatprep.mubr.f32.mxu0 %v10409_v25  ;;  %8692 = vmatpush3.bf16.msra.mxu0 %v8689_v62  ;;  %v12587_v62 = vrot.slane %v10275_v63, 7 }
  0xe1   : > { %8694 = vmatprep.subr.bf16.mxu0 %v8693_v33 }
  0xe2   : > { %v10448_v32 = vsel %vm341_vm0, %v360_v51, %v12587_v62  ;;  %v372_v62 = vrot.slane %v10302_v7, 7 }
  0xe3   : > { %7297 = vmatmul.mubr.f32.gmra.mrb[10].mxu0 %v10418_v40 }
  0xe4   : > { %7299 = vmatprep.mubr.f32.mxu0 %v10424_v47  ;;  %8696 = vmatpush3.bf16.msra.mxu0 %v8693_v33  ;;  %v12586_v33 = vrot.slane %v10283_v2, 7 }
  0xe5   : > { %8698 = vmatprep.subr.bf16.mxu0 %v8697_v52 }
  0xe6   : > { %v10465_v51 = vsel %vm341_vm0, %v363_v38, %v12586_v33  ;;  %v12593_v33 = vrot.slane %v10302_v7, 1 }
  0xe7   : > { %7300 = vmatmul.mubr.f32.gmra.mrb[12].mxu0 %v10433_v61 }
  0xe8   : > { %7302 = vmatprep.mubr.f32.mxu0 %v10439_v29  ;;  %8700 = vmatpush3.bf16.msra.mxu0 %v8697_v52  ;;  %v12588_v52 = vrot.slane %v10291_v4, 7  ;;  %v10502_v56 = vsel %vm341_vm0, %v12593_v33, %v372_v62  ;;  %v10517_v33 = vsel %vm341_vm0, %v12597_v46, %v375_v42  ;;  %v10532_v46 = vsel %vm341_vm0, %v12601_v36, %v378_v27 }
  0xe9   : > { %8702 = vmatprep.subr.bf16.mxu0 %v8701_v24  ;;  %12815 = vst [vmem:[#allocation17_spill] sm:$0xff] %v10502_v56  ;;  %12817 = vst [vmem:[#allocation19_spill] sm:$0xff] %v10517_v33  ;;  %v10547_v36 = vsel %vm341_vm0, %v12606_v22, %v381_v20 }
  0xea   : > { %v10481_v38 = vsel %vm341_vm0, %v366_v18, %v12588_v52  ;;  %v12596_v52 = vrot.slane %v10307_v8, 7  ;;  %12819 = vst [vmem:[#allocation21_spill] sm:$0xff] %v10532_v46  ;;  %12821 = vst [vmem:[#allocation23_spill] sm:$0xff] %v10547_v36 }
  0xeb   : > { %7303 = vmatmul.mubr.f32.gmra.mrb[14].mxu0 %v10448_v32 }
  0xec   : > { %7305 = vmatprep.mubr.f32.mxu0 %v10454_v50  ;;  %8704 = vmatpush3.bf16.msra.mxu0 %v8701_v24  ;;  %v12592_v24 = vrot.slane %v10299_v6, 7 }
  0xed   : > { %8706 = vmatprep.subr.bf16.mxu0 %v10458_v41 }
  0xee   : > { %v10496_v18 = vsel %vm341_vm0, %v369_v60, %v12592_v24  ;;  %v10511_v60 = vsel %vm341_vm0, %v372_v62, %v12596_v52  ;;  %v12600_v24 = vrot.slane %v10315_v11, 7  ;;  %v12605_v52 = vrot.slane %v10323_v13, 7 }
  0xef   : > { %7306 = vmatmul.mubr.f32.gmra.mrb[16].mxu0 %v10465_v51  ;;  %12814 = vst [vmem:[#allocation16_spill] sm:$0xff] %v10496_v18  ;;  %12816 = vst [vmem:[#allocation18_spill] sm:$0xff] %v10511_v60 }
  0xf0   : > { %7308 = vmatprep.mubr.f32.mxu0 %v10471_v37  ;;  %v10526_v62 = vsel %vm341_vm0, %v375_v42, %v12600_v24  ;;  %v10541_v42 = vsel %vm341_vm0, %v378_v27, %v12605_v52  ;;  %v12611_v24 = vrot.slane %v10331_v15, 7  ;;  %v12621_v52 = vrot.slane %v10341_v19, 7 }
  0xf1   : > { %12818 = vst [vmem:[#allocation20_spill] sm:$0xff] %v10526_v62  ;;  %12820 = vst [vmem:[#allocation22_spill] sm:$0xff] %v10541_v42 }
  0xf2   : > { %v10556_v27 = vsel %vm341_vm0, %v381_v20, %v12611_v24  ;;  %v12825_v20 = vrot.slane %v10221_v9, 1  ;;  %v1294_v9 = vld [vmem:[#allocation5 + $0x1a0] sm:$0xff] }
  0xf3   : > { %7309 = vmatmul.mubr.f32.gmra.mrb[18].mxu0 %v10481_v38  ;;  %12822 = vst [vmem:[#allocation24_spill] sm:$0xff] %v10556_v27 }
  0xf4   : > { %7311 = vmatprep.mubr.f32.mxu0 %v10487_v1 }
  0xf7   : > { %7312 = vmatmul.mubr.f32.gmra.mrb[20].mxu0 %v10496_v18 }
  0xf8   : > { %7314 = vmatprep.mubr.f32.mxu0 %v10502_v56 }
  0xfb   : > { %7315 = vmatmul.mubr.f32.gmra.mrb[22].mxu0 %v10511_v60  ;;  %v1295_v60 = vld [vmem:[#allocation5 + $0x1a8] sm:$0xff] }
  0xfc   : > { %7317 = vmatprep.mubr.f32.mxu0 %v10517_v33  ;;  %v384_v33 = vrot.slane %v10334_v16, 7 }
  0xfe   : > { %v10562_v22 = vsel %vm341_vm0, %v12612_v17, %v384_v33  ;;  %v441_v17 = vrot.slane %v10233_v35, 1 }
  0xff   : > { %7318 = vmatmul.mubr.f32.gmra.mrb[24].mxu0 %v10526_v62  ;;  %12823 = vst [vmem:[#allocation25_spill] sm:$0xff] %v10562_v22  ;;  %v1293_v62 = vld [vmem:[#allocation5 + $0x198] sm:$0xff] }
 0x100   : > { %7320 = vmatprep.mubr.f32.mxu0 %v10532_v46  ;;  %v439_v46 = vrot.slane %v10225_v30, 1 }
 0x102   : > { %v10575_v24 = vsel %vm438_vm1, %v12825_v20, %v439_v46 }
 0x103   : > { %7321 = vmatmul.mubr.f32.gmra.mrb[26].mxu0 %v10541_v42  ;;  %12826 = vst [vmem:[#allocation27_spill] sm:$0xff] %v10575_v24  ;;  %v1292_v42 = vld [vmem:[#allocation5 + $0x190] sm:$0xff] }
 0x104   : > { %7323 = vmatprep.mubr.f32.mxu0 %v10547_v36  ;;  %v10570_v36 = vsel %vm341_vm0, %v384_v33, %v12621_v52  ;;  %v12829_v33 = vrot.slane %v10228_v31, 1  ;;  %v8709_v20 = vpack.c.bf16 %v1293_v62, %v1292_v42  ;;  %v1297_v31 = vld [vmem:[#allocation5 + $0x1b8] sm:$0xff]  ;;  %v445_v42 = vrot.slane %v10251_v48, 1 }
 0x105   : > { %12824 = vst [vmem:[#allocation26_spill] sm:$0xff] %v10570_v36 }
 0x106   : > { %v10588_v52 = vsel %vm438_vm1, %v12829_v33, %v441_v17  ;;  %v1296_v33 = vld [vmem:[#allocation5 + $0x1b0] sm:$0xff] }
 0x107   : > { %7324 = vmatmul.mubr.f32.gmra.mrb[28].mxu0 %v10556_v27  ;;  %12830 = vst [vmem:[#allocation29_spill] sm:$0xff] %v10588_v52 }
 0x108   : > { %7326 = vmatprep.mubr.f32.mxu0 %v10562_v22  ;;  %v12827_v22 = vrot.slane %v10225_v30, 7 }
 0x10a   : > { %v10583_v27 = vsel %vm438_vm1, %v439_v46, %v12827_v22  ;;  %v443_v22 = vrot.slane %v10243_v43, 1  ;;  %v8713_v46 = vpack.c.bf16 %v1295_v60, %v1294_v9  ;;  %v12835_v9 = vrot.slane %v10243_v43, 7 }
 0x10b   : > { %7327 = vmatmul.mubr.f32.gmra.mrb[30].mxu0 %v10570_v36  ;;  %12828 = vst [vmem:[#allocation28_spill] sm:$0xff] %v10583_v27  ;;  %v12831_v36 = vrot.slane %v10233_v35, 7 }
 0x10c   : > { %7361 = vmatprep.mubr.f32.mxu0 %v10575_v24  ;;  %v10612_v60 = vsel %vm438_vm1, %v443_v22, %v12835_v9 }
 0x10d   : > { %v10596_v30 = vsel %vm438_vm1, %v441_v17, %v12831_v36  ;;  %v8717_v17 = vpack.c.bf16 %v1297_v31, %v1296_v33  ;;  %v1298_v36 = vld [vmem:[#allocation5 + $0x1c0] sm:$0xff]  ;;  %12836 = vst [vmem:[#allocation32_spill] sm:$0xff] %v10612_v60  ;;  %v1300_v33 = vld [vmem:[#allocation5 + $0x1d0] sm:$0xff] }
 0x10e   : > { %12832 = vst [vmem:[#allocation30_spill] sm:$0xff] %v10596_v30 }
 0x10f   : > { %7362 = vmatmul.mubr.f32.vlgmr.msra.gmra.mrb[0].mxu0 %v10583_v27 }
 0x110   : > { %8708 = vmatpush3.bf16.msra.mxu0 %v10458_v41  ;;  %7364 = vmatprep.mubr.f32.mxu0 %v10588_v52  ;;  %v12833_v41 = vrot.slane %v10238_v39, 1  ;;  %v1299_v52 = vld [vmem:[#allocation5 + $0x1c8] sm:$0xff] }
 0x111   : > { %8710 = vmatprep.subr.bf16.mxu0 %v8709_v20  ;;  %v8721_v31 = vpack.c.bf16 %v1299_v52, %v1298_v36  ;;  %v1302_v36 = vld [vmem:[#allocation5 + $0x1e0] sm:$0xff] }
 0x112   : > { %v10604_v62 = vsel %vm438_vm1, %v12833_v41, %v443_v22 }
 0x113   : > { %7365 = vmatmul.mubr.f32.gmra.mrb[2].mxu0 %v10596_v30  ;;  %12834 = vst [vmem:[#allocation31_spill] sm:$0xff] %v10604_v62  ;;  %v1301_v30 = vld [vmem:[#allocation5 + $0x1d8] sm:$0xff] }
 0x114   : > { %7367 = vmatprep.mubr.f32.mxu0 %v10575_v24  ;;  %8712 = vmatpush3.bf16.msra.mxu0 %v8709_v20  ;;  %v12837_v20 = vrot.slane %v10246_v44, 1  ;;  %v447_v24 = vrot.slane %v10259_v53, 1  ;;  %v8725_v52 = vpack.c.bf16 %v1301_v30, %v1300_v33  ;;  %v1304_v33 = vld [vmem:[#allocation5 + $0x1f0] sm:$0xff] }
 0x115   : > { %8714 = vmatprep.subr.bf16.mxu0 %v8713_v46 }
 0x116   : > { %v10617_v41 = vsel %vm438_vm1, %v12837_v20, %v445_v42  ;;  %v449_v20 = vrot.slane %v10267_v58, 1 }
 0x117   : > { %7368 = vmatmul.mubr.f32.gmra.mrb[4].mxu0 %v10583_v27  ;;  %12838 = vst [vmem:[#allocation33_spill] sm:$0xff] %v10617_v41  ;;  %v1303_v27 = vld [vmem:[#allocation5 + $0x1e8] sm:$0xff] }
 0x118   : > { %7370 = vmatprep.mubr.f32.mxu0 %v10604_v62  ;;  %8716 = vmatpush3.bf16.msra.mxu0 %v8713_v46  ;;  %v12839_v62 = vrot.slane %v10251_v48, 7  ;;  %v12841_v46 = vrot.slane %v10254_v49, 1  ;;  %v8729_v30 = vpack.c.bf16 %v1303_v27, %v1302_v36  ;;  %v1563_v36 = vld [vmem:[#allocation5 + $0x200] sm:$0xff] }
 0x119   : > { %8718 = vmatprep.subr.bf16.mxu0 %v8717_v17 }
 0x11a   : > { %v10625_v22 = vsel %vm438_vm1, %v445_v42, %v12839_v62  ;;  %v10630_v9 = vsel %vm438_vm1, %v12841_v46, %v447_v24  ;;  %v12844_v42 = vrot.slane %v10262_v54, 1  ;;  %v451_v46 = vrot.slane %v10275_v63, 1 }
 0x11b   : > { %7371 = vmatmul.mubr.f32.gmra.mrb[6].mxu0 %v10612_v60  ;;  %12840 = vst [vmem:[#allocation34_spill] sm:$0xff] %v10625_v22  ;;  %12842 = vst [vmem:[#allocation35_spill] sm:$0xff] %v10630_v9  ;;  %v1305_v60 = vld [vmem:[#allocation5 + $0x1f8] sm:$0xff] }
 0x11c   : > { %7373 = vmatprep.mubr.f32.mxu0 %v10617_v41  ;;  %8720 = vmatpush3.bf16.msra.mxu0 %v8717_v17  ;;  %v12843_v41 = vrot.slane %v10259_v53, 7  ;;  %v10643_v17 = vsel %vm438_vm1, %v12844_v42, %v449_v20  ;;  %v453_v42 = vrot.slane %v10283_v2, 1  ;;  %v8733_v27 = vpack.c.bf16 %v1305_v60, %v1304_v33 }
 0x11d   : > { %8722 = vmatprep.subr.bf16.mxu0 %v8721_v31  ;;  %12845 = vst [vmem:[#allocation36_spill] sm:$0xff] %v10643_v17  ;;  %v12851_v33 = vrot.slane %v10283_v2, 7 }
 0x11e   : > { %v10638_v62 = vsel %vm438_vm1, %v447_v24, %v12843_v41  ;;  %v12847_v41 = vrot.slane %v10270_v59, 1 }
 0x11f   : > { %7374 = vmatmul.mubr.f32.gmra.mrb[8].mxu0 %v10625_v22  ;;  %v1564_v22 = vld [vmem:[#allocation5 + $0x208] sm:$0xff] }
 0x120   : > { %7376 = vmatprep.mubr.f32.mxu0 %v10630_v9  ;;  %8724 = vmatpush3.bf16.msra.mxu0 %v8721_v31  ;;  %v12846_v9 = vrot.slane %v10267_v58, 7  ;;  %v10656_v31 = vsel %vm438_vm1, %v12847_v41, %v451_v46  ;;  %v455_v41 = vrot.slane %v10291_v4, 1  ;;  %v8737_v60 = vpack.c.bf16 %v1564_v22, %v1563_v36 }
 0x121   : > { %8726 = vmatprep.subr.bf16.mxu0 %v8725_v52  ;;  %12848 = vst [vmem:[#allocation37_spill] sm:$0xff] %v10656_v31  ;;  %v12855_v22 = vrot.slane %v10291_v4, 7 }
 0x122   : > { %v10651_v24 = vsel %vm438_vm1, %v449_v20, %v12846_v9  ;;  %v12850_v20 = vrot.slane %v10278_v0, 1 }
 0x123   : > { %7377 = vmatmul.mubr.f32.gmra.mrb[10].mxu0 %v10638_v62  ;;  %v10690_v36 = vsel %vm438_vm1, %v455_v41, %v12855_v22  ;;  %v461_v22 = vrot.slane %v10315_v11, 1 }
 0x124   : > { %7379 = vmatprep.mubr.f32.mxu0 %v10643_v17  ;;  %8728 = vmatpush3.bf16.msra.mxu0 %v8725_v52  ;;  %v12849_v17 = vrot.slane %v10275_v63, 7  ;;  %v10669_v52 = vsel %vm438_vm1, %v12850_v20, %v453_v42  ;;  %12856 = vst [vmem:[#allocation40_spill] sm:$0xff] %v10690_v36  ;;  %v459_v20 = vrot.slane %v10307_v8, 1 }
 0x125   : > { %8730 = vmatprep.subr.bf16.mxu0 %v8729_v30 }
 0x126   : > { %v10664_v9 = vsel %vm438_vm1, %v451_v46, %v12849_v17  ;;  %v12853_v17 = vrot.slane %v10286_v3, 1 }
 0x127   : > { %7380 = vmatmul.mubr.f32.gmra.mrb[12].mxu0 %v10651_v24 }
 0x128   : > { %7382 = vmatprep.mubr.f32.mxu0 %v10656_v31  ;;  %8732 = vmatpush3.bf16.msra.mxu0 %v8729_v30  ;;  %v10677_v31 = vsel %vm438_vm1, %v453_v42, %v12851_v33  ;;  %v10682_v46 = vsel %vm438_vm1, %v12853_v17, %v455_v41  ;;  %v457_v30 = vrot.slane %v10299_v6, 1  ;;  %v12857_v42 = vrot.slane %v10294_v5, 1 }
 0x129   : > { %8734 = vmatprep.subr.bf16.mxu0 %v8733_v27  ;;  %12852 = vst [vmem:[#allocation38_spill] sm:$0xff] %v10677_v31  ;;  %12854 = vst [vmem:[#allocation39_spill] sm:$0xff] %v10682_v46  ;;  %v12859_v33 = vrot.slane %v10299_v6, 7 }
 0x12b   : > { %7383 = vmatmul.mubr.f32.gmra.mrb[14].mxu0 %v10664_v9  ;;  %v10703_v17 = vsel %vm438_vm1, %v457_v30, %v12859_v33  ;;  %v463_v33 = vrot.slane %v10323_v13, 1 }
 0x12c   : > { %7385 = vmatprep.mubr.f32.mxu0 %v10669_v52  ;;  %8736 = vmatpush3.bf16.msra.mxu0 %v8733_v27  ;;  %v10695_v27 = vsel %vm438_vm1, %v12857_v42, %v457_v30  ;;  %12860 = vst [vmem:[#allocation42_spill] sm:$0xff] %v10703_v17  ;;  %v12863_v42 = vrot.slane %v10307_v8, 7 }
 0x12d   : > { %8738 = vmatprep.subr.bf16.mxu0 %v8737_v60  ;;  %12858 = vst [vmem:[#allocation41_spill] sm:$0xff] %v10695_v27 }
 0x12f   : > { %7386 = vmatmul.mubr.f32.gmra.mrb[16].mxu0 %v10677_v31  ;;  %v1568_v31 = vld [vmem:[#allocation5 + $0x228] sm:$0xff] }
 0x130   : > { %7388 = vmatprep.mubr.f32.mxu0 %v10682_v46  ;;  %v12861_v46 = vrot.slane %v10302_v7, 1 }
 0x132   : > { %v10708_v41 = vsel %vm438_vm1, %v12861_v46, %v459_v20  ;;  %v12867_v46 = vrot.slane %v10315_v11, 7 }
 0x133   : > { %7389 = vmatmul.mubr.f32.gmra.mrb[18].mxu0 %v10690_v36  ;;  %12862 = vst [vmem:[#allocation43_spill] sm:$0xff] %v10708_v41  ;;  %v12865_v36 = vrot.slane %v10310_v10, 1 }
 0x134   : > { %7391 = vmatprep.mubr.f32.mxu0 %v10695_v27  ;;  %v10716_v27 = vsel %vm438_vm1, %v459_v20, %v12863_v42  ;;  %v465_v42 = vrot.slane %v10331_v15, 1 }
 0x135   : > { %12864 = vst [vmem:[#allocation44_spill] sm:$0xff] %v10716_v27  ;;  %v10721_v30 = vsel %vm438_vm1, %v12865_v36, %v461_v22  ;;  %v12871_v36 = vrot.slane %v10323_v13, 7 }
 0x136   : > { %12866 = vst [vmem:[#allocation45_spill] sm:$0xff] %v10721_v30 }
 0x137   : > { %7392 = vmatmul.mubr.f32.gmra.mrb[20].mxu0 %v10703_v17  ;;  %v12869_v17 = vrot.slane %v10318_v12, 1 }
 0x138   : > { %7394 = vmatprep.mubr.f32.mxu0 %v10708_v41  ;;  %v10729_v41 = vsel %vm438_vm1, %v461_v22, %v12867_v46  ;;  %v467_v46 = vrot.slane %v10341_v19, 1 }
 0x139   : > { %12868 = vst [vmem:[#allocation46_spill] sm:$0xff] %v10729_v41  ;;  %v10734_v20 = vsel %vm438_vm1, %v12869_v17, %v463_v33  ;;  %v12875_v17 = vrot.slane %v10331_v15, 7 }
 0x13a   : > { %12870 = vst [vmem:[#allocation47_spill] sm:$0xff] %v10734_v20 }
 0x13b   : > { %7395 = vmatmul.mubr.f32.gmra.mrb[22].mxu0 %v10716_v27  ;;  %v12873_v27 = vrot.slane %v10326_v14, 1 }
 0x13c   : > { %7397 = vmatprep.mubr.f32.mxu0 %v10721_v30  ;;  %v10742_v30 = vsel %vm438_vm1, %v463_v33, %v12871_v36 }
 0x13d   : > { %12872 = vst [vmem:[#allocation48_spill] sm:$0xff] %v10742_v30  ;;  %v10747_v22 = vsel %vm438_vm1, %v12873_v27, %v465_v42  ;;  %v12879_v27 = vrot.slane %v10341_v19, 7 }
 0x13e   : > { %12874 = vst [vmem:[#allocation49_spill] sm:$0xff] %v10747_v22 }
 0x13f   : > { %7398 = vmatmul.mubr.f32.gmra.mrb[24].mxu0 %v10729_v41  ;;  %v12877_v41 = vrot.slane %v10334_v16, 1  ;;  %v10767_v36 = vsel %vm438_vm1, %v467_v46, %v12879_v27  ;;  %v1575_v27 = vld [vmem:[#allocation5 + $0x260] sm:$0xff] }
 0x140   : > { %7400 = vmatprep.mubr.f32.mxu0 %v10734_v20  ;;  %v10755_v20 = vsel %vm438_vm1, %v465_v42, %v12875_v17  ;;  %v1567_v17 = vld [vmem:[#allocation5 + $0x220] sm:$0xff] }
 0x141   : > { %12876 = vst [vmem:[#allocation50_spill] sm:$0xff] %v10755_v20  ;;  %v10760_v33 = vsel %vm438_vm1, %v12877_v41, %v467_v46  ;;  %v8745_v41 = vpack.c.bf16 %v1568_v31, %v1567_v17  ;;  %v1574_v31 = vld [vmem:[#allocation5 + $0x258] sm:$0xff] }
 0x142   : > { %12878 = vst [vmem:[#allocation51_spill] sm:$0xff] %v10760_v33  ;;  %v1578_v17 = vld [vmem:[#allocation5 + $0x278] sm:$0xff] }
 0x143   : > { %7401 = vmatmul.mubr.f32.gmra.mrb[26].mxu0 %v10742_v30  ;;  %v1566_v30 = vld [vmem:[#allocation5 + $0x218] sm:$0xff] }
 0x144   : > { %7403 = vmatprep.mubr.f32.mxu0 %v10747_v22  ;;  %v1565_v22 = vld [vmem:[#allocation5 + $0x210] sm:$0xff] }
 0x145   : > { %v8741_v42 = vpack.c.bf16 %v1566_v30, %v1565_v22  ;;  %v1572_v30 = vld [vmem:[#allocation5 + $0x248] sm:$0xff] }
 0x147   : > { %7404 = vmatmul.mubr.f32.gmra.mrb[28].mxu0 %v10755_v20  ;;  %v1570_v20 = vld [vmem:[#allocation5 + $0x238] sm:$0xff] }
 0x148   : > { %7406 = vmatprep.mubr.f32.mxu0 %v10760_v33  ;;  %v1569_v33 = vld [vmem:[#allocation5 + $0x230] sm:$0xff] }
 0x149   : > { %v8749_v46 = vpack.c.bf16 %v1570_v20, %v1569_v33  ;;  %v1576_v20 = vld [vmem:[#allocation5 + $0x268] sm:$0xff] }
 0x14a   : > { %v8761_v33 = vpack.c.bf16 %v1576_v20, %v1575_v27  ;;  %v10796_v27 = vld [vmem:[%s10210_s25 + $0xf0] sm:$0xff] }
 0x14b   : > { %7407 = vmatmul.mubr.f32.gmra.mrb[30].mxu0 %v10767_v36  ;;  %v12884_v20 = vld [vmem:[#allocation22_spill] sm:$0xff] }
 0x14c   : > { %7441 = vmatprep.mubr.f32.mxu0 %v10362_v28  ;;  %v1571_v28 = vld [vmem:[#allocation5 + $0x240] sm:$0xff] }
 0x14f   : > { %7442 = vmatmul.mubr.f32.vlgmr.msra.gmra.mrb[0].mxu0 %v10369_v34  ;;  %v8753_v34 = vpack.c.bf16 %v1572_v30, %v1571_v28  ;;  %v1837_v28 = vld [vmem:[#allocation5 + $0x288] sm:$0xff] }
 0x150   : > { %8740 = vmatpush3.bf16.msra.mxu0 %v8737_v60  ;;  %7444 = vmatprep.mubr.f32.mxu0 %v10347_v21  ;;  %v1573_v60 = vld [vmem:[#allocation5 + $0x250] sm:$0xff] }
 0x151   : > { %8742 = vmatprep.subr.bf16.mxu0 %v8741_v42  ;;  %v8757_v22 = vpack.c.bf16 %v1574_v31, %v1573_v60  ;;  %v12881_v60 = vld [vmem:[#allocation19_spill] sm:$0xff]  ;;  %v12882_v31 = vld [vmem:[#allocation20_spill] sm:$0xff] }
 0x153   : > { %7445 = vmatmul.mubr.f32.gmra.mrb[2].mxu0 %v10356_v26 }
 0x154   : > { %7447 = vmatprep.mubr.f32.mxu0 %v10379_v45  ;;  %8744 = vmatpush3.bf16.msra.mxu0 %v8741_v42  ;;  %v1577_v42 = vld [vmem:[#allocation5 + $0x270] sm:$0xff] }
 0x155   : > { %8746 = vmatprep.subr.bf16.mxu0 %v8745_v41 }
 0x157   : > { %7448 = vmatmul.mubr.f32.gmra.mrb[4].mxu0 %v10388_v55 }
 0x158   : > { %7450 = vmatprep.mubr.f32.mxu0 %v10394_v57  ;;  %8748 = vmatpush3.bf16.msra.mxu0 %v8745_v41  ;;  %v8765_v41 = vpack.c.bf16 %v1578_v17, %v1577_v42  ;;  %v12679_v42 = vrot.slane %v10796_v27, 1  ;;  %v387_v17 = vrot.slane %v10796_v27, 7 }
 0x159   : > { %8750 = vmatprep.subr.bf16.mxu0 %v8749_v46 }
 0x15b   : > { %7451 = vmatmul.mubr.f32.gmra.mrb[6].mxu0 %v10403_v23 }
 0x15c   : > { %7453 = vmatprep.mubr.f32.mxu0 %v10409_v25  ;;  %8752 = vmatpush3.bf16.msra.mxu0 %v8749_v46  ;;  %v1836_v46 = vld [vmem:[#allocation5 + $0x280] sm:$0xff] }
 0x15d   : > { %8754 = vmatprep.subr.bf16.mxu0 %v8753_v34  ;;  %v8769_v30 = vpack.c.bf16 %v1837_v28, %v1836_v46  ;;  %v12886_v46 = vld [vmem:[#allocation24_spill] sm:$0xff]  ;;  %v12887_v28 = vld [vmem:[#allocation25_spill] sm:$0xff] }
 0x15f   : > { %7454 = vmatmul.mubr.f32.gmra.mrb[8].mxu0 %v10418_v40 }
 0x160   : > { %7456 = vmatprep.mubr.f32.mxu0 %v10424_v47  ;;  %8756 = vmatpush3.bf16.msra.mxu0 %v8753_v34  ;;  %v12880_v34 = vld [vmem:[#allocation18_spill] sm:$0xff] }
 0x161   : > { %8758 = vmatprep.subr.bf16.mxu0 %v8757_v22 }
 0x163   : > { %7457 = vmatmul.mubr.f32.gmra.mrb[10].mxu0 %v10433_v61 }
 0x164   : > { %7459 = vmatprep.mubr.f32.mxu0 %v10439_v29  ;;  %8760 = vmatpush3.bf16.msra.mxu0 %v8757_v22  ;;  %v12883_v22 = vld [vmem:[#allocation21_spill] sm:$0xff] }
 0x165   : > { %8762 = vmatprep.subr.bf16.mxu0 %v8761_v33 }
 0x167   : > { %7460 = vmatmul.mubr.f32.gmra.mrb[12].mxu0 %v10448_v32 }
 0x168   : > { %7462 = vmatprep.mubr.f32.mxu0 %v10454_v50  ;;  %8764 = vmatpush3.bf16.msra.mxu0 %v8761_v33  ;;  %v12885_v33 = vld [vmem:[#allocation23_spill] sm:$0xff] }
 0x169   : > { %8766 = vmatprep.subr.bf16.mxu0 %v8765_v41 }
 0x16b   : > { %7463 = vmatmul.mubr.f32.gmra.mrb[14].mxu0 %v10465_v51 }
 0x16c   : > { %7465 = vmatprep.mubr.f32.mxu0 %v10471_v37  ;;  %8768 = vmatpush3.bf16.msra.mxu0 %v8765_v41  ;;  %v10803_v41 = vld [vmem:[%s10210_s25 + $0xf8] sm:$0xff] }
 0x16d   : > { %8770 = vmatprep.subr.bf16.mxu0 %v8769_v30 }
 0x16f   : > { %7466 = vmatmul.mubr.f32.gmra.mrb[16].mxu0 %v10481_v38 }
 0x170   : > { %7468 = vmatprep.mubr.f32.mxu0 %v10487_v1  ;;  %v1843_v1 = vld [vmem:[#allocation5 + $0x2b8] sm:$0xff] }
 0x173   : > { %7469 = vmatmul.mubr.f32.gmra.mrb[18].mxu0 %v10496_v18  ;;  %v1841_v18 = vld [vmem:[#allocation5 + $0x2a8] sm:$0xff] }
 0x174   : > { %7471 = vmatprep.mubr.f32.mxu0 %v10502_v56  ;;  %v1840_v56 = vld [vmem:[#allocation5 + $0x2a0] sm:$0xff] }
 0x177   : > { %7472 = vmatmul.mubr.f32.gmra.mrb[20].mxu0 %v12880_v34 }
 0x178   : > { %7474 = vmatprep.mubr.f32.mxu0 %v12881_v60  ;;  %v1838_v60 = vld [vmem:[#allocation5 + $0x290] sm:$0xff] }
 0x17b   : > { %7475 = vmatmul.mubr.f32.gmra.mrb[22].mxu0 %v12882_v31  ;;  %v12682_v31 = vrot.slane %v10803_v41, 7 }
 0x17c   : > { %7477 = vmatprep.mubr.f32.mxu0 %v12883_v22  ;;  %v10811_v22 = vsel %vm341_vm0, %v12679_v42, %v387_v17  ;;  %v12891_v42 = vld [vmem:[#allocation12_spill] sm:$0xff] }
 0x17d   : > { %12888 = vst [vmem:[#allocation52_spill] sm:$0xff] %v10811_v22 }
 0x17f   : > { %7478 = vmatmul.mubr.f32.gmra.mrb[24].mxu0 %v12884_v20  ;;  %v12889_v20 = vld [vmem:[#allocation26_spill] sm:$0xff] }
 0x180   : > { %7480 = vmatprep.mubr.f32.mxu0 %v12885_v33  ;;  %v10818_v33 = vsel %vm341_vm0, %v387_v17, %v12682_v31  ;;  %v12892_v17 = vld [vmem:[#allocation13_spill] sm:$0xff] }
 0x183   : > { %7481 = vmatmul.mubr.f32.gmra.mrb[26].mxu0 %v12886_v46  ;;  %v1839_v46 = vld [vmem:[#allocation5 + $0x298] sm:$0xff] }
 0x184   : > { %7483 = vmatprep.mubr.f32.mxu0 %v12887_v28  ;;  %v12890_v28 = vld [vmem:[#allocation14_spill] sm:$0xff]  ;;  %v8773_v34 = vpack.c.bf16 %v1839_v46, %v1838_v60  ;;  %v1845_v60 = vld [vmem:[#allocation5 + $0x2c8] sm:$0xff] }
 0x187   : > { %7484 = vmatmul.mubr.f32.gmra.mrb[28].mxu0 %v12889_v20  ;;  %v1842_v20 = vld [vmem:[#allocation5 + $0x2b0] sm:$0xff] }
 0x188   : > { %7486 = vmatprep.mubr.f32.mxu0 %v10811_v22  ;;  %v8777_v22 = vpack.c.bf16 %v1841_v18, %v1840_v56  ;;  %v8781_v31 = vpack.c.bf16 %v1843_v1, %v1842_v20  ;;  %v1847_v56 = vld [vmem:[#allocation5 + $0x2d8] sm:$0xff]  ;;  %v1848_v18 = vld [vmem:[#allocation5 + $0x2e0] sm:$0xff]  ;;  %v1849_v1 = vld [vmem:[#allocation5 + $0x2e8] sm:$0xff] }
 0x189   : > { %v12900_v20 = vld [vmem:[#allocation34_spill] sm:$0xff] }
 0x18b   : > { %7487 = vmatmul.mubr.f32.gmra.mrb[30].mxu0 %v10818_v33 }
 0x18c   : > { %7521 = vmatprep.mubr.f32.mxu0 %v12890_v28  ;;  %v1844_v28 = vld [vmem:[#allocation5 + $0x2c0] sm:$0xff] }
 0x18f   : > { %7522 = vmatmul.mubr.f32.vlgmr.msra.gmra.mrb[0].mxu0 %v10233_v35  ;;  %v8785_v35 = vpack.c.bf16 %v1845_v60, %v1844_v28  ;;  %v2122_v28 = vld [vmem:[#allocation5 + $0x368] sm:$0xff]  ;;  %v12902_v60 = vld [vmem:[#allocation36_spill] sm:$0xff] }
 0x190   : > { %8772 = vmatpush3.bf16.msra.mxu0 %v8769_v30  ;;  %7524 = vmatprep.mubr.f32.mxu0 %v12891_v42  ;;  %v1846_v30 = vld [vmem:[#allocation5 + $0x2d0] sm:$0xff]  ;;  %v12901_v42 = vld [vmem:[#allocation35_spill] sm:$0xff] }
 0x191   : > { %8774 = vmatprep.subr.bf16.mxu0 %v8773_v34 }
 0x193   : > { %7525 = vmatmul.mubr.f32.gmra.mrb[2].mxu0 %v12892_v17  ;;  %v2121_v17 = vld [vmem:[#allocation5 + $0x360] sm:$0xff] }
 0x194   : > { %7527 = vmatprep.mubr.f32.mxu0 %v10238_v39  ;;  %8776 = vmatpush3.bf16.msra.mxu0 %v8773_v34  ;;  %v8789_v39 = vpack.c.bf16 %v1847_v56, %v1846_v30  ;;  %v1851_v34 = vld [vmem:[#allocation5 + $0x2f8] sm:$0xff]  ;;  %v2123_v30 = vld [vmem:[#allocation5 + $0x370] sm:$0xff] }
 0x195   : > { %8778 = vmatprep.subr.bf16.mxu0 %v8777_v22  ;;  %v2124_v56 = vld [vmem:[#allocation5 + $0x378] sm:$0xff] }
 0x197   : > { %7528 = vmatmul.mubr.f32.gmra.mrb[4].mxu0 %v10243_v43  ;;  %v8793_v43 = vpack.c.bf16 %v1849_v1, %v1848_v18  ;;  %v8829_v18 = vpack.c.bf16 %v2124_v56, %v2123_v30  ;;  %v2382_v1 = vld [vmem:[#allocation5 + $0x380] sm:$0xff]  ;;  %v2388_v30 = vld [vmem:[#allocation5 + $0x3b0] sm:$0xff]  ;;  %v2389_v56 = vld [vmem:[#allocation5 + $0x3b8] sm:$0xff] }
 0x198   : > { %7530 = vmatprep.mubr.f32.mxu0 %v10246_v44  ;;  %8780 = vmatpush3.bf16.msra.mxu0 %v8777_v22  ;;  %v1850_v44 = vld [vmem:[#allocation5 + $0x2f0] sm:$0xff]  ;;  %v2120_v22 = vld [vmem:[#allocation5 + $0x358] sm:$0xff] }
 0x199   : > { %8782 = vmatprep.subr.bf16.mxu0 %v8781_v31 }
 0x19b   : > { %7531 = vmatmul.mubr.f32.gmra.mrb[6].mxu0 %v10251_v48  ;;  %v8797_v48 = vpack.c.bf16 %v1851_v34, %v1850_v44  ;;  %v12904_v34 = vld [vmem:[#allocation38_spill] sm:$0xff] }
 0x19c   : > { %7533 = vmatprep.mubr.f32.mxu0 %v10254_v49  ;;  %8784 = vmatpush3.bf16.msra.mxu0 %v8781_v31  ;;  %v2109_v49 = vld [vmem:[#allocation5 + $0x300] sm:$0xff]  ;;  %v2110_v31 = vld [vmem:[#allocation5 + $0x308] sm:$0xff] }
 0x19d   : > { %8786 = vmatprep.subr.bf16.mxu0 %v8785_v35 }
 0x19f   : > { %7534 = vmatmul.mubr.f32.gmra.mrb[8].mxu0 %v10259_v53  ;;  %v8801_v53 = vpack.c.bf16 %v2110_v31, %v2109_v49  ;;  %v12906_v49 = vld [vmem:[#allocation40_spill] sm:$0xff]  ;;  %v12907_v31 = vld [vmem:[#allocation41_spill] sm:$0xff] }
 0x1a0   : > { %7536 = vmatprep.mubr.f32.mxu0 %v10262_v54  ;;  %8788 = vmatpush3.bf16.msra.mxu0 %v8785_v35  ;;  %v2111_v54 = vld [vmem:[#allocation5 + $0x310] sm:$0xff]  ;;  %v8825_v35 = vpack.c.bf16 %v2122_v28, %v2121_v17  ;;  %v2386_v17 = vld [vmem:[#allocation5 + $0x3a0] sm:$0xff]  ;;  %v2387_v28 = vld [vmem:[#allocation5 + $0x3a8] sm:$0xff] }
 0x1a1   : > { %8790 = vmatprep.subr.bf16.mxu0 %v8789_v39 }
 0x1a3   : > { %7537 = vmatmul.mubr.f32.gmra.mrb[10].mxu0 %v10267_v58  ;;  %v2112_v58 = vld [vmem:[#allocation5 + $0x318] sm:$0xff] }
 0x1a4   : > { %7539 = vmatprep.mubr.f32.mxu0 %v10270_v59  ;;  %8792 = vmatpush3.bf16.msra.mxu0 %v8789_v39  ;;  %v12893_v59 = vld [vmem:[#allocation29_spill] sm:$0xff] }
 0x1a5   : > { %8794 = vmatprep.subr.bf16.mxu0 %v8793_v43  ;;  %v12903_v39 = vld [vmem:[#allocation37_spill] sm:$0xff] }
 0x1a7   : > { %7540 = vmatmul.mubr.f32.gmra.mrb[12].mxu0 %v10275_v63  ;;  %v8805_v63 = vpack.c.bf16 %v2112_v58, %v2111_v54  ;;  %v12909_v54 = vld [vmem:[#allocation43_spill] sm:$0xff]  ;;  %v12910_v58 = vld [vmem:[#allocation44_spill] sm:$0xff] }
 0x1a8   : > { %7542 = vmatprep.mubr.f32.mxu0 %v10278_v0  ;;  %8796 = vmatpush3.bf16.msra.mxu0 %v8793_v43  ;;  %v2113_v0 = vld [vmem:[#allocation5 + $0x320] sm:$0xff]  ;;  %v2383_v43 = vld [vmem:[#allocation5 + $0x388] sm:$0xff] }
 0x1a9   : > { %8798 = vmatprep.subr.bf16.mxu0 %v8797_v48  ;;  %v8833_v44 = vpack.c.bf16 %v2383_v43, %v2382_v1  ;;  %v2391_v1 = vld [vmem:[#allocation5 + $0x3c8] sm:$0xff]  ;;  %v2393_v43 = vld [vmem:[#allocation5 + $0x3d8] sm:$0xff] }
 0x1ab   : > { %7543 = vmatmul.mubr.f32.gmra.mrb[14].mxu0 %v10283_v2  ;;  %v2114_v2 = vld [vmem:[#allocation5 + $0x328] sm:$0xff] }
 0x1ac   : > { %7545 = vmatprep.mubr.f32.mxu0 %v10286_v3  ;;  %8800 = vmatpush3.bf16.msra.mxu0 %v8797_v48  ;;  %v12894_v3 = vld [vmem:[#allocation30_spill] sm:$0xff]  ;;  %v12905_v48 = vld [vmem:[#allocation39_spill] sm:$0xff] }
 0x1ad   : > { %8802 = vmatprep.subr.bf16.mxu0 %v8801_v53 }
 0x1af   : > { %7546 = vmatmul.mubr.f32.gmra.mrb[16].mxu0 %v10291_v4  ;;  %v12895_v4 = vld [vmem:[#allocation27_spill] sm:$0xff] }
 0x1b0   : > { %7548 = vmatprep.mubr.f32.mxu0 %v10294_v5  ;;  %v8809_v5 = vpack.c.bf16 %v2114_v2, %v2113_v0  ;;  %v12913_v0 = vld [vmem:[#allocation47_spill] sm:$0xff]  ;;  %v12914_v2 = vld [vmem:[#allocation48_spill] sm:$0xff] }
 0x1b3   : > { %7549 = vmatmul.mubr.f32.gmra.mrb[18].mxu0 %v10299_v6  ;;  %v2115_v6 = vld [vmem:[#allocation5 + $0x330] sm:$0xff] }
 0x1b4   : > { %7551 = vmatprep.mubr.f32.mxu0 %v10302_v7  ;;  %v2116_v7 = vld [vmem:[#allocation5 + $0x338] sm:$0xff] }
 0x1b7   : > { %7552 = vmatmul.mubr.f32.gmra.mrb[20].mxu0 %v10307_v8  ;;  %v12896_v8 = vld [vmem:[#allocation28_spill] sm:$0xff] }
 0x1b8   : > { %7554 = vmatprep.mubr.f32.mxu0 %v10310_v10  ;;  %v12897_v10 = vld [vmem:[#allocation31_spill] sm:$0xff] }
 0x1bb   : > { %7555 = vmatmul.mubr.f32.gmra.mrb[22].mxu0 %v10315_v11  ;;  %v8813_v11 = vpack.c.bf16 %v2116_v7, %v2115_v6  ;;  %v12916_v6 = vld [vmem:[#allocation50_spill] sm:$0xff]  ;;  %v12917_v7 = vld [vmem:[#allocation51_spill] sm:$0xff] }
 0x1bc   : > { %7557 = vmatprep.mubr.f32.mxu0 %v10318_v12  ;;  %v2117_v12 = vld [vmem:[#allocation5 + $0x340] sm:$0xff] }
 0x1bf   : > { %7558 = vmatmul.mubr.f32.gmra.mrb[24].mxu0 %v10323_v13  ;;  %v2118_v13 = vld [vmem:[#allocation5 + $0x348] sm:$0xff] }
 0x1c0   : > { %7560 = vmatprep.mubr.f32.mxu0 %v10326_v14  ;;  %v12898_v14 = vld [vmem:[#allocation32_spill] sm:$0xff] }
 0x1c3   : > { %7561 = vmatmul.mubr.f32.gmra.mrb[26].mxu0 %v10331_v15  ;;  %v12899_v15 = vld [vmem:[#allocation33_spill] sm:$0xff] }
 0x1c4   : > { %7563 = vmatprep.mubr.f32.mxu0 %v10334_v16  ;;  %v8817_v16 = vpack.c.bf16 %v2118_v13, %v2117_v12  ;;  %v12919_v13 = vrot.slane %v10803_v41, 7 }
 0x1c7   : > { %7564 = vmatmul.mubr.f32.gmra.mrb[28].mxu0 %v10341_v19  ;;  %v2119_v19 = vld [vmem:[#allocation5 + $0x350] sm:$0xff] }
 0x1c8   : > { %7566 = vmatprep.mubr.f32.mxu0 %v10796_v27  ;;  %v8821_v46 = vpack.c.bf16 %v2120_v22, %v2119_v19  ;;  %v2384_v19 = vld [vmem:[#allocation5 + $0x390] sm:$0xff]  ;;  %v2385_v22 = vld [vmem:[#allocation5 + $0x398] sm:$0xff] }
 0x1cb   : > { %7567 = vmatmul.mubr.f32.gmra.mrb[30].mxu0 %v10803_v41 }
 0x1cc   : > { %7601 = vmatprep.mubr.f32.mxu0 %v12893_v59  ;;  %v12911_v59 = vld [vmem:[#allocation45_spill] sm:$0xff] }
 0x1cf   : > { %7602 = vmatmul.mubr.f32.vlgmr.msra.gmra.mrb[0].mxu0 %v12894_v3  ;;  %v12915_v3 = vld [vmem:[#allocation49_spill] sm:$0xff] }
 0x1d0   : > { %8804 = vmatpush3.bf16.msra.mxu0 %v8801_v53  ;;  %7604 = vmatprep.mubr.f32.mxu0 %v12895_v4  ;;  %v12908_v53 = vld [vmem:[#allocation42_spill] sm:$0xff] }
 0x1d1   : > { %8806 = vmatprep.subr.bf16.mxu0 %v8805_v63 }
 0x1d3   : > { %7605 = vmatmul.mubr.f32.gmra.mrb[2].mxu0 %v12896_v8 }
 0x1d4   : > { %7607 = vmatprep.mubr.f32.mxu0 %v12897_v10  ;;  %8808 = vmatpush3.bf16.msra.mxu0 %v8805_v63  ;;  %v12912_v63 = vld [vmem:[#allocation46_spill] sm:$0xff] }
 0x1d5   : > { %8810 = vmatprep.subr.bf16.mxu0 %v8809_v5 }
 0x1d7   : > { %7608 = vmatmul.mubr.f32.gmra.mrb[4].mxu0 %v12898_v14 }
 0x1d8   : > { %7610 = vmatprep.mubr.f32.mxu0 %v12899_v15  ;;  %8812 = vmatpush3.bf16.msra.mxu0 %v8809_v5  ;;  %v469_v5 = vrot.slane %v10803_v41, 1 }
 0x1d9   : > { %8814 = vmatprep.subr.bf16.mxu0 %v8813_v11 }
 0x1db   : > { %7611 = vmatmul.mubr.f32.gmra.mrb[6].mxu0 %v12900_v20 }
 0x1dc   : > { %7613 = vmatprep.mubr.f32.mxu0 %v12901_v42  ;;  %8816 = vmatpush3.bf16.msra.mxu0 %v8813_v11  ;;  %v12918_v11 = vrot.slane %v10796_v27, 1 }
 0x1dd   : > { %8818 = vmatprep.subr.bf16.mxu0 %v8817_v16 }
 0x1de   : > { %v10886_v12 = vsel %vm438_vm1, %v12918_v11, %v469_v5  ;;  %v2656_v11 = vld [vmem:[#allocation5 + $0x408] sm:$0xff] }
 0x1df   : > { %7614 = vmatmul.mubr.f32.gmra.mrb[8].mxu0 %v10638_v62 }
 0x1e0   : > { %7616 = vmatprep.mubr.f32.mxu0 %v12902_v60  ;;  %8820 = vmatpush3.bf16.msra.mxu0 %v8817_v16  ;;  %v10893_v16 = vsel %vm438_vm1, %v469_v5, %v12919_v13  ;;  %v2397_v5 = vld [vmem:[#allocation5 + $0x3f8] sm:$0xff]  ;;  %v12923_v13 = vld [vmem:[#allocation18_spill] sm:$0xff] }
 0x1e1   : > { %8822 = vmatprep.subr.bf16.mxu0 %v8821_v46 }
 0x1e3   : > { %7617 = vmatmul.mubr.f32.gmra.mrb[10].mxu0 %v10651_v24 }
 0x1e4   : > { %7619 = vmatprep.mubr.f32.mxu0 %v12903_v39  ;;  %8824 = vmatpush3.bf16.msra.mxu0 %v8821_v46  ;;  %v8837_v46 = vpack.c.bf16 %v2385_v22, %v2384_v19  ;;  %v12924_v19 = vld [vmem:[#allocation19_spill] sm:$0xff]  ;;  %v12927_v22 = vld [vmem:[#allocation22_spill] sm:$0xff] }
 0x1e5   : > { %8826 = vmatprep.subr.bf16.mxu0 %v8825_v35 }
 0x1e7   : > { %7620 = vmatmul.mubr.f32.gmra.mrb[12].mxu0 %v10664_v9 }
 0x1e8   : > { %7622 = vmatprep.mubr.f32.mxu0 %v10669_v52  ;;  %8828 = vmatpush3.bf16.msra.mxu0 %v8825_v35  ;;  %v8841_v35 = vpack.c.bf16 %v2387_v28, %v2386_v17  ;;  %v12930_v17 = vld [vmem:[#allocation25_spill] sm:$0xff]  ;;  %v12931_v28 = vld [vmem:[#allocation26_spill] sm:$0xff] }
 0x1e9   : > { %8830 = vmatprep.subr.bf16.mxu0 %v8829_v18 }
 0x1eb   : > { %7623 = vmatmul.mubr.f32.gmra.mrb[14].mxu0 %v12904_v34 }
 0x1ec   : > { %7625 = vmatprep.mubr.f32.mxu0 %v12905_v48  ;;  %8832 = vmatpush3.bf16.msra.mxu0 %v8829_v18  ;;  %v8845_v18 = vpack.c.bf16 %v2389_v56, %v2388_v30  ;;  %v2657_v30 = vld [vmem:[#allocation5 + $0x410] sm:$0xff]  ;;  %v2658_v56 = vld [vmem:[#allocation5 + $0x418] sm:$0xff] }
 0x1ed   : > { %8834 = vmatprep.subr.bf16.mxu0 %v8833_v44 }
 0x1ef   : > { %7626 = vmatmul.mubr.f32.gmra.mrb[16].mxu0 %v12906_v49 }
 0x1f0   : > { %7628 = vmatprep.mubr.f32.mxu0 %v12907_v31 }
 0x1f3   : > { %7629 = vmatmul.mubr.f32.gmra.mrb[18].mxu0 %v12908_v53 }
 0x1f4   : > { %7631 = vmatprep.mubr.f32.mxu0 %v12909_v54 }
 0x1f7   : > { %7632 = vmatmul.mubr.f32.gmra.mrb[20].mxu0 %v12910_v58 }
 0x1f8   : > { %7634 = vmatprep.mubr.f32.mxu0 %v12911_v59 }
 0x1fb   : > { %7635 = vmatmul.mubr.f32.gmra.mrb[22].mxu0 %v12912_v63 }
 0x1fc   : > { %7637 = vmatprep.mubr.f32.mxu0 %v12913_v0 }
 0x1ff   : > { %7638 = vmatmul.mubr.f32.gmra.mrb[24].mxu0 %v12914_v2 }
 0x200   : > { %7640 = vmatprep.mubr.f32.mxu0 %v12915_v3 }
 0x203   : > { %7641 = vmatmul.mubr.f32.gmra.mrb[26].mxu0 %v12916_v6 }
 0x204   : > { %7643 = vmatprep.mubr.f32.mxu0 %v12917_v7 }
 0x207   : > { %7644 = vmatmul.mubr.f32.gmra.mrb[28].mxu0 %v10767_v36 }
 0x208   : > { %7646 = vmatprep.mubr.f32.mxu0 %v10886_v12 }
 0x20b   : > { %7647 = vmatmul.mubr.f32.gmra.mrb[30].mxu0 %v10893_v16 }
 0x20c   : > { %7681 = vmatprep.mubr.f32.mxu0 %v10347_v21  ;;  %v2390_v21 = vld [vmem:[#allocation5 + $0x3c0] sm:$0xff] }
 0x20f   : > { %7682 = vmatmul.mubr.f32.vlgmr.msra.gmra.mrb[0].mxu0 %v10356_v26  ;;  %v8849_v26 = vpack.c.bf16 %v2391_v1, %v2390_v21  ;;  %v8869_v21 = vpack.c.bf16 %v2658_v56, %v2657_v30  ;;  %v2659_v1 = vld [vmem:[#allocation5 + $0x420] sm:$0xff]  ;;  %v9784_v30 = vld [vmem:[%s10210_s25 + $0x70] sm:$0xff] }
 0x210   : > { %8836 = vmatpush3.bf16.msra.mxu0 %v8833_v44  ;;  %7684 = vmatprep.mubr.f32.mxu0 %v10379_v45  ;;  %v2392_v45 = vld [vmem:[#allocation5 + $0x3d0] sm:$0xff]  ;;  %v2395_v44 = vld [vmem:[#allocation5 + $0x3e8] sm:$0xff] }
 0x211   : > { %8838 = vmatprep.subr.bf16.mxu0 %v8837_v46 }
 0x213   : > { %7685 = vmatmul.mubr.f32.gmra.mrb[2].mxu0 %v10388_v55  ;;  %v8853_v55 = vpack.c.bf16 %v2393_v43, %v2392_v45  ;;  %v9773_v45 = vld [vmem:[%s10210_s25 + $0x18] sm:$0xff]  ;;  %v9774_v43 = vld [vmem:[%s10210_s25 + $0x20] sm:$0xff] }
 0x214   : > { %7687 = vmatprep.mubr.f32.mxu0 %v10394_v57  ;;  %8840 = vmatpush3.bf16.msra.mxu0 %v8837_v46  ;;  %v2394_v57 = vld [vmem:[#allocation5 + $0x3e0] sm:$0xff] }
 0x215   : > { %8842 = vmatprep.subr.bf16.mxu0 %v8841_v35  ;;  %v12929_v46 = vld [vmem:[#allocation24_spill] sm:$0xff] }
 0x217   : > { %7688 = vmatmul.mubr.f32.gmra.mrb[4].mxu0 %v10403_v23  ;;  %v8857_v23 = vpack.c.bf16 %v2395_v44, %v2394_v57  ;;  %v2662_v57 = vld [vmem:[#allocation5 + $0x438] sm:$0xff]  ;;  %v9775_v44 = vld [vmem:[%s10210_s25 + $0x28] sm:$0xff] }
 0x218   : > { %7690 = vmatprep.mubr.f32.mxu0 %v10409_v25  ;;  %8844 = vmatpush3.bf16.msra.mxu0 %v8841_v35  ;;  %v2396_v25 = vld [vmem:[#allocation5 + $0x3f0] sm:$0xff]  ;;  %v12932_v35 = vld [vmem:[#allocation52_spill] sm:$0xff] }
 0x219   : > { %8846 = vmatprep.subr.bf16.mxu0 %v8845_v18 }
 0x21b   : > { %7691 = vmatmul.mubr.f32.gmra.mrb[6].mxu0 %v10418_v40  ;;  %v8861_v40 = vpack.c.bf16 %v2397_v5, %v2396_v25  ;;  %v2663_v5 = vld [vmem:[#allocation5 + $0x440] sm:$0xff] }
 0x21c   : > { %7693 = vmatprep.mubr.f32.mxu0 %v10424_v47  ;;  %8848 = vmatpush3.bf16.msra.mxu0 %v8845_v18  ;;  %v2655_v47 = vld [vmem:[#allocation5 + $0x400] sm:$0xff]  ;;  %v9772_v18 = vld [vmem:[%s10210_s25 + $0x10] sm:$0xff] }
 0x21d   : > { %8850 = vmatprep.subr.bf16.mxu0 %v8849_v26 }
 0x21f   : > { %7694 = vmatmul.mubr.f32.gmra.mrb[8].mxu0 %v10433_v61  ;;  %v12920_v61 = vld [vmem:[#allocation15_spill] sm:$0xff] }
 0x220   : > { %7696 = vmatprep.mubr.f32.mxu0 %v10439_v29  ;;  %8852 = vmatpush3.bf16.msra.mxu0 %v8849_v26  ;;  %v8865_v29 = vpack.c.bf16 %v2656_v11, %v2655_v47  ;;  %v2660_v26 = vld [vmem:[#allocation5 + $0x428] sm:$0xff]  ;;  %v9777_v47 = vld [vmem:[%s10210_s25 + $0x38] sm:$0xff]  ;;  %v9778_v11 = vld [vmem:[%s10210_s25 + $0x40] sm:$0xff] }
 0x221   : > { %8854 = vmatprep.subr.bf16.mxu0 %v8853_v55 }
 0x223   : > { %7697 = vmatmul.mubr.f32.gmra.mrb[10].mxu0 %v10448_v32  ;;  %v12921_v32 = vld [vmem:[#allocation16_spill] sm:$0xff] }
 0x224   : > { %7699 = vmatprep.mubr.f32.mxu0 %v10454_v50  ;;  %8856 = vmatpush3.bf16.msra.mxu0 %v8853_v55  ;;  %v12922_v50 = vld [vmem:[#allocation17_spill] sm:$0xff]  ;;  %v2661_v55 = vld [vmem:[#allocation5 + $0x430] sm:$0xff] }
 0x225   : > { %8858 = vmatprep.subr.bf16.mxu0 %v8857_v23  ;;  %v8877_v25 = vpack.c.bf16 %v2662_v57, %v2661_v55  ;;  %v9792_v55 = vld [vmem:[%s10210_s25 + $0xb0] sm:$0xff]  ;;  %v9793_v57 = vld [vmem:[%s10210_s25 + $0xb8] sm:$0xff] }
 0x227   : > { %7700 = vmatmul.mubr.f32.gmra.mrb[12].mxu0 %v10465_v51  ;;  %v12925_v51 = vld [vmem:[#allocation20_spill] sm:$0xff] }
 0x228   : > { %7702 = vmatprep.mubr.f32.mxu0 %v10471_v37  ;;  %8860 = vmatpush3.bf16.msra.mxu0 %v8857_v23  ;;  %v12926_v37 = vld [vmem:[#allocation21_spill] sm:$0xff]  ;;  %v9776_v23 = vld [vmem:[%s10210_s25 + $0x30] sm:$0xff] }
 0x229   : > { %8862 = vmatprep.subr.bf16.mxu0 %v8861_v40 }
 0x22b   : > { %7703 = vmatmul.mubr.f32.gmra.mrb[14].mxu0 %v10481_v38  ;;  %v12928_v38 = vld [vmem:[#allocation23_spill] sm:$0xff] }
 0x22c   : > { %7705 = vmatprep.mubr.f32.mxu0 %v12920_v61  ;;  %8864 = vmatpush3.bf16.msra.mxu0 %v8861_v40  ;;  %v2664_v40 = vld [vmem:[#allocation5 + $0x448] sm:$0xff]  ;;  %v2665_v61 = vld [vmem:[#allocation5 + $0x450] sm:$0xff] }
 0x22d   : > { %8866 = vmatprep.subr.bf16.mxu0 %v8865_v29 }
 0x22f   : > { %7706 = vmatmul.mubr.f32.gmra.mrb[16].mxu0 %v12921_v32  ;;  %v2666_v32 = vld [vmem:[#allocation5 + $0x458] sm:$0xff] }
 0x230   : > { %7708 = vmatprep.mubr.f32.mxu0 %v12922_v50  ;;  %v9779_v50 = vld [vmem:[%s10210_s25 + $0x48] sm:$0xff] }
 0x233   : > { %7709 = vmatmul.mubr.f32.gmra.mrb[18].mxu0 %v12923_v13  ;;  %v9780_v13 = vld [vmem:[%s10210_s25 + $0x50] sm:$0xff] }
 0x234   : > { %7711 = vmatprep.mubr.f32.mxu0 %v12924_v19  ;;  %v8885_v19 = vpack.c.bf16 %v2666_v32, %v2665_v61 }
 0x237   : > { %7712 = vmatmul.mubr.f32.gmra.mrb[20].mxu0 %v12925_v51  ;;  %v2667_v51 = vld [vmem:[#allocation5 + $0x460] sm:$0xff] }
 0x238   : > { %7714 = vmatprep.mubr.f32.mxu0 %v12926_v37  ;;  %v2668_v37 = vld [vmem:[#allocation5 + $0x468] sm:$0xff] }
 0x23b   : > { %7715 = vmatmul.mubr.f32.gmra.mrb[22].mxu0 %v12927_v22  ;;  %v9781_v22 = vld [vmem:[%s10210_s25 + $0x58] sm:$0xff] }
 0x23c   : > { %7717 = vmatprep.mubr.f32.mxu0 %v12928_v38  ;;  %v9782_v38 = vld [vmem:[%s10210_s25 + $0x60] sm:$0xff] }
 0x23f   : > { %7718 = vmatmul.mubr.f32.gmra.mrb[24].mxu0 %v12929_v46  ;;  %v8889_v46 = vpack.c.bf16 %v2668_v37, %v2667_v51 }
 0x240   : > { %7720 = vmatprep.mubr.f32.mxu0 %v12930_v17 }
 0x243   : > { %7721 = vmatmul.mubr.f32.gmra.mrb[26].mxu0 %v12931_v28 }
 0x244   : > { %7723 = vmatprep.mubr.f32.mxu0 %v12932_v35  ;;  %v9783_v35 = vld [vmem:[%s10210_s25 + $0x68] sm:$0xff] }
 0x247   : > { %7724 = vmatmul.mubr.f32.gmra.mrb[28].mxu0 %v10818_v33  ;;  %v8873_v33 = vpack.c.bf16 %v2660_v26, %v2659_v1  ;;  %v9787_v1 = vld [vmem:[%s10210_s25 + $0x88] sm:$0xff]  ;;  %v9788_v26 = vld [vmem:[%s10210_s25 + $0x90] sm:$0xff] }
 0x248   : > { %7726 = vmatprep.mubr.f32.mxu0 %v12930_v17  ;;  %v2669_v17 = vld [vmem:[#allocation5 + $0x470] sm:$0xff] }
 0x24b   : > { %7727 = vmatmul.mubr.f32.gmra.mrb[30].mxu0 %v12931_v28  ;;  %v2670_v28 = vld [vmem:[#allocation5 + $0x478] sm:$0xff] }
 0x24c   : > { %7761 = vmatprep.mubr.f32.mxu0 %v9772_v18  ;;  %v8893_v56 = vpack.c.bf16 %v2670_v28, %v2669_v17  ;;  %v9785_v18 = vld [vmem:[%s10210_s25 + $0x78] sm:$0xff] }
 0x24f   : > { %7762 = vmatmul.mubr.f32.vlgmr.msra.gmra.mrb[0].mxu0 %v9773_v45  ;;  %v9789_v45 = vld [vmem:[%s10210_s25 + $0x98] sm:$0xff] }
 0x250   : > { %8868 = vmatpush3.bf16.msra.mxu0 %v8865_v29  ;;  %7764 = vmatprep.mubr.f32.mxu0 %v9774_v43  ;;  %v8881_v29 = vpack.c.bf16 %v2664_v40, %v2663_v5  ;;  %v9790_v43 = vld [vmem:[%s10210_s25 + $0xa0] sm:$0xff]  ;;  %v9797_v5 = vld [vmem:[%s10210_s25 + $0xd8] sm:$0xff] }
 0x251   : > { %8870 = vmatprep.subr.bf16.mxu0 %v8869_v21  ;;  %v9798_v40 = vld [vmem:[%s10210_s25 + $0xe0] sm:$0xff] }
 0x253   : > { %7765 = vmatmul.mubr.f32.gmra.mrb[2].mxu0 %v9775_v44  ;;  %v9794_v44 = vld [vmem:[%s10210_s25 + $0xc0] sm:$0xff] }
 0x254   : > { %7767 = vmatprep.mubr.f32.mxu0 %v9776_v23  ;;  %8872 = vmatpush3.bf16.msra.mxu0 %v8869_v21  ;;  %v9786_v21 = vld [vmem:[%s10210_s25 + $0x80] sm:$0xff]  ;;  %v9795_v23 = vld [vmem:[%s10210_s25 + $0xc8] sm:$0xff] }
 0x255   : > { %8874 = vmatprep.subr.bf16.mxu0 %v8873_v33 }
 0x257   : > { %7768 = vmatmul.mubr.f32.gmra.mrb[4].mxu0 %v9777_v47  ;;  %v9799_v47 = vld [vmem:[%s10210_s25 + $0xe8] sm:$0xff] }
 0x258   : > { %7770 = vmatprep.mubr.f32.mxu0 %v9778_v11  ;;  %8876 = vmatpush3.bf16.msra.mxu0 %v8873_v33  ;;  %v9791_v33 = vld [vmem:[%s10210_s25 + $0xa8] sm:$0xff] }
 0x259   : > { %8878 = vmatprep.subr.bf16.mxu0 %v8877_v25 }
 0x25b   : > { %7771 = vmatmul.mubr.f32.gmra.mrb[6].mxu0 %v9779_v50 }
 0x25c   : > { %7773 = vmatprep.mubr.f32.mxu0 %v9780_v13  ;;  %8880 = vmatpush3.bf16.msra.mxu0 %v8877_v25  ;;  %v9796_v25 = vld [vmem:[%s10210_s25 + $0xd0] sm:$0xff] }
 0x25d   : > { %8882 = vmatprep.subr.bf16.mxu0 %v8881_v29 }
 0x25f   : > { %7774 = vmatmul.mubr.f32.gmra.mrb[8].mxu0 %v9781_v22 }
 0x260   : > { %7776 = vmatprep.mubr.f32.mxu0 %v9782_v38  ;;  %8884 = vmatpush3.bf16.msra.mxu0 %v8881_v29 }
 0x261   : > { %8886 = vmatprep.subr.bf16.mxu0 %v8885_v19 }
 0x263   : > { %7777 = vmatmul.mubr.f32.gmra.mrb[10].mxu0 %v9783_v35 }
 0x264   : > { %7779 = vmatprep.mubr.f32.mxu0 %v9784_v30  ;;  %8888 = vmatpush3.bf16.msra.mxu0 %v8885_v19 }
 0x265   : > { %8890 = vmatprep.subr.bf16.mxu0 %v8889_v46 }
 0x267   : > { %7780 = vmatmul.mubr.f32.gmra.mrb[12].mxu0 %v9785_v18 }
 0x268   : > { %7782 = vmatprep.mubr.f32.mxu0 %v9786_v21  ;;  %8892 = vmatpush3.bf16.msra.mxu0 %v8889_v46 }
 0x269   : > { %8894 = vmatprep.subr.bf16.mxu0 %v8893_v56 }
 0x26b   : > { %7783 = vmatmul.mubr.f32.gmra.mrb[14].mxu0 %v9787_v1 }
 0x26c   : > { %7785 = vmatprep.mubr.f32.mxu0 %v9788_v26  ;;  %8896 = vmatpush3.bf16.msra.mxu0 %v8893_v56 }
 0x26f   : > { %7786 = vmatmul.mubr.f32.gmra.mrb[16].mxu0 %v9789_v45 }
 0x270   : > { %7788 = vmatprep.mubr.f32.mxu0 %v9790_v43 }
 0x273   : > { %7789 = vmatmul.mubr.f32.gmra.mrb[18].mxu0 %v9791_v33 }
 0x274   : > { %7791 = vmatprep.mubr.f32.mxu0 %v9792_v55 }
 0x277   : > { %7792 = vmatmul.mubr.f32.gmra.mrb[20].mxu0 %v9793_v57 }
 0x278   : > { %7794 = vmatprep.mubr.f32.mxu0 %v9794_v44 }
 0x27b   : > { %7795 = vmatmul.mubr.f32.gmra.mrb[22].mxu0 %v9795_v23 }
 0x27c   : > { %7797 = vmatprep.mubr.f32.mxu0 %v9796_v25 }
 0x27f   : > { %7798 = vmatmul.mubr.f32.gmra.mrb[24].mxu0 %v9797_v5 }
 0x280   : > { %7800 = vmatprep.mubr.f32.mxu0 %v9798_v40 }
 0x283   : > { %7801 = vmatmul.mubr.f32.gmra.mrb[26].mxu0 %v9799_v47 }
 0x284   : > { %7803 = vmatprep.mubr.f32.mxu0 %v10796_v27  ;;  %v3486_v27 = vld [vmem:[#allocation7 + $0x98] sm:$0xff] }
 0x287   : > { %7804 = vmatmul.mubr.f32.gmra.mrb[28].mxu0 %v10803_v41 }
 0x288   : > { %7806 = vmatprep.mubr.f32.mxu0 %v9798_v40 }
 0x28b   : > { %7807 = vmatmul.mubr.f32.gmra.mrb[30].mxu0 %v9799_v47 }
 0x28c   : > { %7841 = vmatprep.mubr.f32.mxu0 %v12895_v4  ;;  %v3487_v4 = vld [vmem:[#allocation7 + $0xa0] sm:$0xff] }
 0x28f   : > { %7842 = vmatmul.mubr.f32.vlgmr.msra.gmra.mrb[0].mxu0 %v12896_v8  ;;  %v3488_v8 = vld [vmem:[#allocation7 + $0xa8] sm:$0xff] }
 0x290   : > { %7844 = vmatprep.mubr.f32.mxu0 %v12897_v10  ;;  %v8905_v10 = vpack.c.bf16 %v3488_v8, %v3487_v4 }
 0x293   : > { %7845 = vmatmul.mubr.f32.gmra.mrb[2].mxu0 %v12898_v14  ;;  %v3489_v14 = vld [vmem:[#allocation7 + $0xb0] sm:$0xff] }
 0x294   : > { %7847 = vmatprep.mubr.f32.mxu0 %v12899_v15  ;;  %v3490_v15 = vld [vmem:[#allocation7 + $0xb8] sm:$0xff] }
 0x297   : > { %7848 = vmatmul.mubr.f32.gmra.mrb[4].mxu0 %v12900_v20  ;;  %v8909_v20 = vpack.c.bf16 %v3490_v15, %v3489_v14 }
 0x298   : > { %7850 = vmatprep.mubr.f32.mxu0 %v12901_v42  ;;  %v3492_v42 = vld [vmem:[#allocation7 + $0xc8] sm:$0xff] }
 0x29b   : > { %7851 = vmatmul.mubr.f32.gmra.mrb[6].mxu0 %v10638_v62  ;;  %v3483_v62 = vld [vmem:[#allocation7 + $0x80] sm:$0xff] }
 0x29c   : > { %7853 = vmatprep.mubr.f32.mxu0 %v12902_v60 }
 0x29f   : > { %7854 = vmatmul.mubr.f32.gmra.mrb[8].mxu0 %v10651_v24  ;;  %v3484_v24 = vld [vmem:[#allocation7 + $0x88] sm:$0xff] }
 0x2a0   : > { %7856 = vmatprep.mubr.f32.mxu0 %v12903_v39  ;;  %v3493_v39 = vld [vmem:[#allocation7 + $0xd0] sm:$0xff] }
 0x2a3   : > { %7857 = vmatmul.mubr.f32.gmra.mrb[10].mxu0 %v10664_v9  ;;  %v8897_v9 = vpack.c.bf16 %v3484_v24, %v3483_v62 }
 0x2a4   : > { %7859 = vmatprep.mubr.f32.mxu0 %v10669_v52  ;;  %v3485_v52 = vld [vmem:[#allocation7 + $0x90] sm:$0xff] }
 0x2a5   : > { %8898 = vmatprep.subr.bf16.mxu1 %v8897_v9  ;;  %v8901_v41 = vpack.c.bf16 %v3486_v27, %v3485_v52 }
 0x2a6   : > { %8900 = vmatpush3.bf16.msra.mxu1 %v8897_v9 }
 0x2a7   : > { %7860 = vmatmul.mubr.f32.gmra.mrb[12].mxu0 %v12904_v34  ;;  %8902 = vmatprep.subr.bf16.mxu1 %v8901_v41  ;;  %v3494_v34 = vld [vmem:[#allocation7 + $0xd8] sm:$0xff] }
 0x2a8   : > { %7862 = vmatprep.mubr.f32.mxu0 %v12905_v48  ;;  %v8917_v48 = vpack.c.bf16 %v3494_v34, %v3493_v39 }
 0x2aa   : > { %8904 = vmatpush3.bf16.msra.mxu1 %v8901_v41 }
 0x2ab   : > { %7863 = vmatmul.mubr.f32.gmra.mrb[14].mxu0 %v12906_v49  ;;  %8906 = vmatprep.subr.bf16.mxu1 %v8905_v10  ;;  %v3495_v49 = vld [vmem:[#allocation7 + $0xe0] sm:$0xff] }
 0x2ac   : > { %7865 = vmatprep.mubr.f32.mxu0 %v12907_v31  ;;  %v3496_v31 = vld [vmem:[#allocation7 + $0xe8] sm:$0xff] }
 0x2ae   : > { %8908 = vmatpush3.bf16.msra.mxu1 %v8905_v10 }
 0x2af   : > { %7866 = vmatmul.mubr.f32.gmra.mrb[16].mxu0 %v12908_v53  ;;  %8910 = vmatprep.subr.bf16.mxu1 %v8909_v20  ;;  %v8921_v53 = vpack.c.bf16 %v3496_v31, %v3495_v49 }
 0x2b0   : > { %7868 = vmatprep.mubr.f32.mxu0 %v12909_v54  ;;  %v3497_v54 = vld [vmem:[#allocation7 + $0xf0] sm:$0xff] }
 0x2b2   : > { %8912 = vmatpush3.bf16.msra.mxu1 %v8909_v20 }
 0x2b3   : > { %7869 = vmatmul.mubr.f32.gmra.mrb[18].mxu0 %v12910_v58  ;;  %v3498_v58 = vld [vmem:[#allocation7 + $0xf8] sm:$0xff] }
 0x2b4   : > { %7871 = vmatprep.mubr.f32.mxu0 %v12911_v59  ;;  %v8925_v59 = vpack.c.bf16 %v3498_v58, %v3497_v54 }
 0x2b7   : > { %7872 = vmatmul.mubr.f32.gmra.mrb[20].mxu0 %v12912_v63 }
 0x2b8   : > { %7874 = vmatprep.mubr.f32.mxu0 %v12913_v0 }
 0x2bb   : > { %7875 = vmatmul.mubr.f32.gmra.mrb[22].mxu0 %v12914_v2 }
 0x2bc   : > { %7877 = vmatprep.mubr.f32.mxu0 %v12915_v3  ;;  %v3467_v3 = vld [vmem:[#allocation7] sm:$0xff] }
 0x2bf   : > { %7878 = vmatmul.mubr.f32.gmra.mrb[24].mxu0 %v12916_v6  ;;  %v3468_v6 = vld [vmem:[#allocation7 + $0x8] sm:$0xff] }
 0x2c0   : > { %7880 = vmatprep.mubr.f32.mxu0 %v12917_v7 }
 0x2c3   : > { %7881 = vmatmul.mubr.f32.gmra.mrb[26].mxu0 %v10767_v36 }
 0x2c4   : > { %7883 = vmatprep.mubr.f32.mxu0 %v10886_v12 }
 0x2c7   : > { %7884 = vmatmul.mubr.f32.gmra.mrb[28].mxu0 %v10893_v16  ;;  %v11000_v16 = vpack.c.bf16 %v3468_v6, %v3467_v3 }
 0x2c8   : > { %7886 = vmatprep.mubr.f32.mxu0 %v12917_v7 }
 0x2cb   : > { %7887 = vmatmul.mubr.f32.gmra.mrb[30].mxu0 %v10767_v36  ;;  %v3491_v36 = vld [vmem:[#allocation7 + $0xc0] sm:$0xff] }
 0x2cc   : > { %v8913_v60 = vpack.c.bf16 %v3492_v42, %v3491_v36 }
 0x2ce   : > { %8914 = vmatprep.subr.bf16.mxu1 %v8913_v60 }
 0x2cf   : > { %8916 = vmatpush3.bf16.msra.mxu1 %v8913_v60 }
 0x2d0   : > { %8918 = vmatprep.subr.bf16.mxu1 %v8917_v48 }
 0x2d3   : > { %8920 = vmatpush3.bf16.msra.mxu1 %v8917_v48 }
 0x2d4   : > { %8922 = vmatprep.subr.bf16.mxu1 %v8921_v53 }
 0x2d7   : > { %8924 = vmatpush3.bf16.msra.mxu1 %v8921_v53 }
 0x2d8   : > { %8926 = vmatprep.subr.bf16.mxu1 %v8925_v59 }
 0x2db   : > { %8928 = vmatpush3.bf16.msra.mxu1 %v8925_v59 }
 0x2dc   : > { %8930 = vmatprep.subr.bf16.mxu1 %v11000_v16 }
 0x362   : > { %v10990_v63 = vpop.f32.mrb[0].mxu0 }
 0x363   : > { %v2969_v0 = vmul.f32 %v10990_v63, %v10990_v63  ;;  %v10994_v2 = vpop.f32.mrb[1].mxu0 }
 0x364   : > { %v2930_v7 = vadd.f32 %v10990_v63, %v10994_v2  ;;  %v2968_v12 = vmul.f32 %v10994_v2, %v10994_v2 }
 0x366   : > { %v3000_v11 = vadd.f32 %v2969_v0, %v2968_v12  ;;  %v11002_v29 = vpop.f32.mrb[2].mxu0 }
 0x367   : > { %v11005_v61 = vpop.f32.mrb[3].mxu0  ;;  %v2971_v13 = vmul.f32 %v11002_v29, %v11002_v29 }
 0x368   : > { %v2931_v32 = vadd.f32 %v2930_v7, %v11005_v61  ;;  %v2970_v50 = vmul.f32 %v11005_v61, %v11005_v61 }
 0x36a   : > { %v3001_v19 = vadd.f32 %v3000_v11, %v2970_v50  ;;  %v11012_v51 = vpop.f32.mrb[4].mxu0  ;;  %v2932_v37 = vadd.f32 %v11002_v29, %v2931_v32 }
 0x36b   : > { %v11015_v22 = vpop.f32.mrb[5].mxu0  ;;  %v2973_v28 = vmul.f32 %v11012_v51, %v11012_v51 }
 0x36c   : > { %v2933_v38 = vadd.f32 %v2932_v37, %v11015_v22  ;;  %v2972_v46 = vmul.f32 %v11015_v22, %v11015_v22  ;;  %v3002_v17 = vadd.f32 %v3001_v19, %v2971_v13 }
 0x36e   : > { %v3003_v35 = vadd.f32 %v3002_v17, %v2972_v46  ;;  %v11022_v30 = vpop.f32.mrb[6].mxu0  ;;  %v2934_v56 = vadd.f32 %v11012_v51, %v2933_v38 }
 0x36f   : > { %v11025_v18 = vpop.f32.mrb[7].mxu0  ;;  %v2975_v45 = vmul.f32 %v11022_v30, %v11022_v30 }
 0x370   : > { %v2935_v21 = vadd.f32 %v2934_v56, %v11025_v18  ;;  %v2974_v1 = vmul.f32 %v11025_v18, %v11025_v18  ;;  %v3004_v26 = vadd.f32 %v3003_v35, %v2973_v28 }
 0x372   : > { %v3005_v43 = vadd.f32 %v3004_v26, %v2974_v1  ;;  %v11032_v33 = vpop.f32.mrb[8].mxu0  ;;  %v2936_v55 = vadd.f32 %v11022_v30, %v2935_v21 }
 0x373   : > { %v11035_v57 = vpop.f32.mrb[9].mxu0  ;;  %v2977_v5 = vmul.f32 %v11032_v33, %v11032_v33 }
 0x374   : > { %v2937_v44 = vadd.f32 %v2936_v55, %v11035_v57  ;;  %v2976_v23 = vmul.f32 %v11035_v57, %v11035_v57  ;;  %v3006_v25 = vadd.f32 %v3005_v43, %v2975_v45 }
 0x376   : > { %v3007_v40 = vadd.f32 %v3006_v25, %v2976_v23  ;;  %v11042_v47 = vpop.f32.mrb[10].mxu0  ;;  %v2938_v62 = vadd.f32 %v11032_v33, %v2937_v44 }
 0x377   : > { %v11045_v24 = vpop.f32.mrb[11].mxu0  ;;  %v2979_v41 = vmul.f32 %v11042_v47, %v11042_v47 }
 0x378   : > { %v2939_v9 = vadd.f32 %v2938_v62, %v11045_v24  ;;  %v2978_v52 = vmul.f32 %v11045_v24, %v11045_v24  ;;  %v3008_v27 = vadd.f32 %v3007_v40, %v2977_v5 }
 0x37a   : > { %v3009_v4 = vadd.f32 %v3008_v27, %v2978_v52  ;;  %v11052_v8 = vpop.f32.mrb[12].mxu0  ;;  %v2940_v10 = vadd.f32 %v11042_v47, %v2939_v9 }
 0x37b   : > { %v11055_v14 = vpop.f32.mrb[13].mxu0  ;;  %v2981_v42 = vmul.f32 %v11052_v8, %v11052_v8 }
 0x37c   : > { %v2941_v15 = vadd.f32 %v2940_v10, %v11055_v14  ;;  %v2980_v20 = vmul.f32 %v11055_v14, %v11055_v14  ;;  %v3010_v36 = vadd.f32 %v3009_v4, %v2979_v41 }
 0x37e   : > { %v3011_v60 = vadd.f32 %v3010_v36, %v2980_v20  ;;  %v11062_v39 = vpop.f32.mrb[14].mxu0  ;;  %v2942_v34 = vadd.f32 %v11052_v8, %v2941_v15 }
 0x37f   : > { %v11065_v48 = vpop.f32.mrb[15].mxu0  ;;  %v2983_v54 = vmul.f32 %v11062_v39, %v11062_v39 }
 0x380   : > { %v2943_v49 = vadd.f32 %v2942_v34, %v11065_v48  ;;  %v2982_v31 = vmul.f32 %v11065_v48, %v11065_v48  ;;  %v3012_v53 = vadd.f32 %v3011_v60, %v2981_v42 }
 0x382   : > { %v3013_v58 = vadd.f32 %v3012_v53, %v2982_v31  ;;  %v11072_v59 = vpop.f32.mrb[16].mxu0  ;;  %v2944_v0 = vadd.f32 %v11062_v39, %v2943_v49 }
 0x383   : > { %v11075_v3 = vpop.f32.mrb[17].mxu0  ;;  %v2985_v11 = vmul.f32 %v11072_v59, %v11072_v59 }
 0x384   : > { %v2945_v6 = vadd.f32 %v2944_v0, %v11075_v3  ;;  %v2984_v7 = vmul.f32 %v11075_v3, %v11075_v3  ;;  %v3014_v12 = vadd.f32 %v3013_v58, %v2983_v54 }
 0x386   : > { %v3015_v32 = vadd.f32 %v3014_v12, %v2984_v7  ;;  %v11082_v50 = vpop.f32.mrb[18].mxu0  ;;  %v2946_v13 = vadd.f32 %v11072_v59, %v2945_v6 }
 0x387   : > { %v11085_v19 = vpop.f32.mrb[19].mxu0  ;;  %v2987_v17 = vmul.f32 %v11082_v50, %v11082_v50 }
 0x388   : > { %v2947_v37 = vadd.f32 %v2946_v13, %v11085_v19  ;;  %v2986_v38 = vmul.f32 %v11085_v19, %v11085_v19  ;;  %v3016_v46 = vadd.f32 %v3015_v32, %v2985_v11 }
 0x38a   : > { %v3017_v28 = vadd.f32 %v3016_v46, %v2986_v38  ;;  %v11092_v35 = vpop.f32.mrb[20].mxu0  ;;  %v2948_v56 = vadd.f32 %v11082_v50, %v2947_v37 }
 0x38b   : > { %v11095_v21 = vpop.f32.mrb[21].mxu0  ;;  %v2989_v43 = vmul.f32 %v11092_v35, %v11092_v35 }
 0x38c   : > { %v2949_v1 = vadd.f32 %v2948_v56, %v11095_v21  ;;  %v2988_v26 = vmul.f32 %v11095_v21, %v11095_v21  ;;  %v3018_v45 = vadd.f32 %v3017_v28, %v2987_v17 }
 0x38e   : > { %v3019_v55 = vadd.f32 %v3018_v45, %v2988_v26  ;;  %v11102_v44 = vpop.f32.mrb[22].mxu0  ;;  %v2950_v23 = vadd.f32 %v11092_v35, %v2949_v1 }
 0x38f   : > { %v11105_v25 = vpop.f32.mrb[23].mxu0  ;;  %v2991_v9 = vmul.f32 %v11102_v44, %v11102_v44 }
 0x390   : > { %v2951_v5 = vadd.f32 %v2950_v23, %v11105_v25  ;;  %v2990_v40 = vmul.f32 %v11105_v25, %v11105_v25  ;;  %v3020_v62 = vadd.f32 %v3019_v55, %v2989_v43 }
 0x392   : > { %v3021_v52 = vadd.f32 %v3020_v62, %v2990_v40  ;;  %v11112_v27 = vpop.f32.mrb[24].mxu0  ;;  %v2952_v41 = vadd.f32 %v11102_v44, %v2951_v5 }
 0x393   : > { %v11115_v4 = vpop.f32.mrb[25].mxu0  ;;  %v2993_v36 = vmul.f32 %v11112_v27, %v11112_v27 }
 0x394   : > { %v2953_v10 = vadd.f32 %v2952_v41, %v11115_v4  ;;  %v2992_v15 = vmul.f32 %v11115_v4, %v11115_v4  ;;  %v3022_v20 = vadd.f32 %v3021_v52, %v2991_v9 }
 0x396   : > { %v3023_v42 = vadd.f32 %v3022_v20, %v2992_v15  ;;  %v11122_v60 = vpop.f32.mrb[26].mxu0  ;;  %v2954_v34 = vadd.f32 %v11112_v27, %v2953_v10 }
 0x397   : > { %v11125_v49 = vpop.f32.mrb[27].mxu0  ;;  %v2995_v58 = vmul.f32 %v11122_v60, %v11122_v60 }
 0x398   : > { %v2955_v31 = vadd.f32 %v2954_v34, %v11125_v49  ;;  %v2994_v53 = vmul.f32 %v11125_v49, %v11125_v49  ;;  %v3024_v54 = vadd.f32 %v3023_v42, %v2993_v36 }
 0x39a   : > { %v3025_v0 = vadd.f32 %v3024_v54, %v2994_v53  ;;  %v11132_v6 = vpop.f32.mrb[28].mxu0  ;;  %v2956_v7 = vadd.f32 %v11122_v60, %v2955_v31 }
 0x39b   : > { %v11135_v12 = vpop.f32.mrb[29].mxu0  ;;  %v2997_v37 = vmul.f32 %v11132_v6, %v11132_v6 }
 0x39c   : > { %v2957_v11 = vadd.f32 %v2956_v7, %v11135_v12  ;;  %v2996_v32 = vmul.f32 %v11135_v12, %v11135_v12  ;;  %v3026_v13 = vadd.f32 %v3025_v0, %v2995_v58 }
 0x39e   : > { %v3027_v38 = vadd.f32 %v3026_v13, %v2996_v32  ;;  %v11142_v46 = vpop.f32.mrb[30].mxu0  ;;  %v2958_v17 = vadd.f32 %v11132_v6, %v2957_v11 }
 0x39f   : > { %v2887_v28 = vpop.f32.mrb[31].mxu0  ;;  %v2999_v45 = vmul.f32 %v11142_v46, %v11142_v46 }
 0x3a0   : > { %v2959_v56 = vadd.f32 %v2958_v17, %v2887_v28  ;;  %v2998_v1 = vmul.f32 %v2887_v28, %v2887_v28  ;;  %v3028_v26 = vadd.f32 %v3027_v38, %v2997_v37 }
 0x3a2   : > { %v2960_v43 = vadd.f32 %v11142_v46, %v2959_v56  ;;  %v3029_v55 = vadd.f32 %v3028_v26, %v2998_v1 }
 0x3a4   : > { %v2961_v23 = vrot.slane %v2960_v43, 4  ;;  %v3030_v5 = vadd.f32 %v3029_v55, %v2999_v45 }
 0x3a6   : > { %v2962_v40 = vadd.f32 %v2961_v23, %v2960_v43  ;;  %v3031_v62 = vrot.slane %v3030_v5, 4 }
 0x3a8   : > { %v2963_v9 = vrot.slane %v2962_v40, 2  ;;  %v3032_v52 = vadd.f32 %v3031_v62, %v3030_v5 }
 0x3aa   : > { %v2964_v41 = vadd.f32 %v2963_v9, %v2962_v40  ;;  %v3033_v10 = vrot.slane %v3032_v52, 2 }
 0x3ac   : > { %v2965_v15 = vrot.slane %v2964_v41, 1  ;;  %v3034_v20 = vadd.f32 %v3033_v10, %v3032_v52 }
 0x3ae   : > { %v2966_v36 = vadd.f32 %v2965_v15, %v2964_v41  ;;  %v3035_v42 = vrot.slane %v3034_v20, 1 }
 0x3b0   : > { %v11148_v34 = vmul.f32 0.00390625, %v2966_v36  ;;  %v3036_v31 = vadd.f32 %v3035_v42, %v3034_v20 }
 0x3b2   : > { %v3037_v53 = vmul.f32 0.00390625, %v3036_v31  ;;  %v3038_v54 = vmul.f32 %v11148_v34, %v11148_v34  ;;  %v3071_v58 = vsub.f32 %v2887_v28, %v11148_v34  ;;  %v3041_v0 = vsub.f32 %v10994_v2, %v11148_v34 }
 0x3b3   : > { %v3042_v7 = vsub.f32 %v10990_v63, %v11148_v34  ;;  %v3043_v11 = vsub.f32 %v11005_v61, %v11148_v34  ;;  %v3044_v32 = vsub.f32 %v11002_v29, %v11148_v34  ;;  %v3045_v13 = vsub.f32 %v11015_v22, %v11148_v34 }
 0x3b4   : > { %v3039_v37 = vsub.f32 %v3037_v53, %v3038_v54  ;;  %v3046_v38 = vsub.f32 %v11012_v51, %v11148_v34  ;;  %v3047_v17 = vsub.f32 %v11025_v18, %v11148_v34  ;;  %v3048_v2 = vsub.f32 %v11022_v30, %v11148_v34 }
 0x3b5   : > { %v3049_v63 = vsub.f32 %v11035_v57, %v11148_v34  ;;  %v3050_v61 = vsub.f32 %v11032_v33, %v11148_v34  ;;  %v3051_v29 = vsub.f32 %v11045_v24, %v11148_v34  ;;  %v3052_v22 = vsub.f32 %v11042_v47, %v11148_v34 }
 0x3b6   : > { %v3040_v28 = vmax.f32 %v3039_v37, 0.0  ;;  %v3053_v51 = vsub.f32 %v11055_v14, %v11148_v34  ;;  %v3054_v18 = vsub.f32 %v11052_v8, %v11148_v34  ;;  %v3055_v30 = vsub.f32 %v11065_v48, %v11148_v34 }
 0x3b7   : > { %v3056_v57 = vsub.f32 %v11062_v39, %v11148_v34  ;;  %v3057_v33 = vsub.f32 %v11075_v3, %v11148_v34  ;;  %v3058_v24 = vsub.f32 %v11072_v59, %v11148_v34  ;;  %v3059_v47 = vsub.f32 %v11085_v19, %v11148_v34 }
 0x3b8   : > { %v3073_v56 = vadd.f32 1e-05, %v3040_v28  ;;  %v3060_v14 = vsub.f32 %v11082_v50, %v11148_v34  ;;  %v3061_v8 = vsub.f32 %v11095_v21, %v11148_v34  ;;  %v3062_v48 = vsub.f32 %v11092_v35, %v11148_v34 }
 0x3b9   : > { %v3063_v39 = vsub.f32 %v11105_v25, %v11148_v34  ;;  %v3064_v3 = vsub.f32 %v11102_v44, %v11148_v34  ;;  %v3065_v59 = vsub.f32 %v11115_v4, %v11148_v34  ;;  %v3066_v19 = vsub.f32 %v11112_v27, %v11148_v34  ;;  %v11218_v27 = vld [vmem:[%s12573_s3] ss:$0 sm:$0xff] }
 0x3ba   : > { %9768 = vrsqrt.f32 %v3073_v56  ;;  %v3067_v50 = vsub.f32 %v11125_v49, %v11148_v34  ;;  %v3068_v21 = vsub.f32 %v11122_v60, %v11148_v34  ;;  %v3069_v35 = vsub.f32 %v11135_v12, %v11148_v34  ;;  %v11223_v60 = vld [vmem:[%s12573_s3 + $0x1] ss:$0 sm:$0xff] }
 0x3bb   : > { %v3070_v25 = vsub.f32 %v11132_v6, %v11148_v34  ;;  %v3072_v44 = vsub.f32 %v11142_v46, %v11148_v34 }
 0x3c4   : > { %v9769_v4 = vpop.eup %9768 }
 0x3c5   : > { %v3105_v1 = vmul.f32 %v9769_v4, %v3071_v58  ;;  %v3075_v49 = vmul.f32 %v9769_v4, %v3041_v0  ;;  %v3076_v26 = vmul.f32 %v9769_v4, %v3042_v7  ;;  %v3077_v45 = vmul.f32 %v9769_v4, %v3043_v11 }
 0x3c6   : > { %v3078_v12 = vmul.f32 %v9769_v4, %v3044_v32  ;;  %v3079_v6 = vmul.f32 %v9769_v4, %v3045_v13  ;;  %v11225_v43 = vmul.f32 %v9769_v4, %v3046_v38  ;;  %v11227_v46 = vmul.f32 %v9769_v4, %v3047_v17 }
 0x3c7   : > { %v3141_v55 = vmul.f32 %v11218_v27, %v3105_v1  ;;  %v11230_v23 = vmul.f32 %v9769_v4, %v3048_v2  ;;  %v11232_v5 = vmul.f32 %v9769_v4, %v3049_v63  ;;  %v11234_v40 = vmul.f32 %v9769_v4, %v3050_v61  ;;  %v3475_v1 = vld [vmem:[#allocation7 + $0x40] sm:$0xff] }
 0x3c8   : > { %v11236_v62 = vmul.f32 %v9769_v4, %v3051_v29  ;;  %v11238_v9 = vmul.f32 %v9769_v4, %v3052_v22  ;;  %v11240_v52 = vmul.f32 %v9769_v4, %v3053_v51  ;;  %v11242_v41 = vmul.f32 %v9769_v4, %v3054_v18  ;;  %v3469_v18 = vld [vmem:[#allocation7 + $0x10] sm:$0xff] }
 0x3c9   : > { %v11245_v10 = vadd.f32 %v11223_v60, %v3141_v55  ;;  %v11247_v15 = vmul.f32 %v9769_v4, %v3055_v30  ;;  %v11249_v20 = vmul.f32 %v9769_v4, %v3056_v57  ;;  %v11251_v36 = vmul.f32 %v9769_v4, %v3057_v33  ;;  %v3470_v30 = vld [vmem:[#allocation7 + $0x18] sm:$0xff]  ;;  %v3477_v55 = vld [vmem:[#allocation7 + $0x50] sm:$0xff] }
 0x3ca   : > { %v11253_v42 = vmul.f32 %v9769_v4, %v3058_v24  ;;  %v11255_v34 = vmul.f32 %v9769_v4, %v3059_v47  ;;  %v11257_v31 = vmul.f32 %v9769_v4, %v3060_v14  ;;  %v11259_v53 = vmul.f32 %v9769_v4, %v3061_v8  ;;  %v3471_v8 = vld [vmem:[#allocation7 + $0x20] sm:$0xff] }
 0x3cb   : > { %12933 = vst [vmem:[#allocation14_spill] sm:$0xff] %v11245_v10  ;;  %v11261_v54 = vmul.f32 %v9769_v4, %v3062_v48  ;;  %v11263_v58 = vmul.f32 %v9769_v4, %v3063_v39  ;;  %v11265_v0 = vmul.f32 %v9769_v4, %v3064_v3  ;;  %v11267_v7 = vmul.f32 %v9769_v4, %v3065_v59  ;;  %v3472_v48 = vld [vmem:[#allocation7 + $0x28] sm:$0xff] }
 0x3cc   : > { %v11269_v11 = vmul.f32 %v9769_v4, %v3066_v19  ;;  %v11271_v32 = vmul.f32 %v9769_v4, %v3067_v50  ;;  %v11273_v13 = vmul.f32 %v9769_v4, %v3068_v21  ;;  %v3103_v37 = vmul.f32 %v9769_v4, %v3069_v35  ;;  %v3473_v19 = vld [vmem:[#allocation7 + $0x30] sm:$0xff]  ;;  %v3474_v50 = vld [vmem:[#allocation7 + $0x38] sm:$0xff] }
 0x3cd   : > { %v3104_v38 = vmul.f32 %v9769_v4, %v3070_v25  ;;  %v3106_v17 = vmul.f32 %v9769_v4, %v3072_v44  ;;  %v3113_v2 = vmul.f32 %v11218_v27, %v3077_v45  ;;  %v3114_v61 = vmul.f32 %v11218_v27, %v3078_v12 }
 0x3ce   : > { %v3139_v63 = vmul.f32 %v11218_v27, %v3103_v37  ;;  %v8933_v14 = vpack.c.bf16 %v3470_v30, %v3469_v18  ;;  %v3111_v39 = vmul.f32 %v11218_v27, %v3075_v49  ;;  %v3112_v3 = vmul.f32 %v11218_v27, %v3076_v26  ;;  %v3476_v49 = vld [vmem:[#allocation7 + $0x48] sm:$0xff]  ;;  %v3478_v37 = vld [vmem:[#allocation7 + $0x58] sm:$0xff] }
 0x3cf   : > { %v3140_v29 = vmul.f32 %v11218_v27, %v3104_v38  ;;  %v3142_v22 = vmul.f32 %v11218_v27, %v3106_v17  ;;  %v3149_v28 = vadd.f32 %v11223_v60, %v3113_v2  ;;  %v3150_v51 = vadd.f32 %v11223_v60, %v3114_v61  ;;  %v3479_v61 = vld [vmem:[#allocation7 + $0x60] sm:$0xff] }
 0x3d0   : > { %v11283_v57 = vadd.f32 %v11223_v60, %v3139_v63  ;;  %v8937_v59 = vpack.c.bf16 %v3472_v48, %v3471_v8  ;;  %v3115_v21 = vmul.f32 %v11218_v27, %v3079_v6  ;;  %v3147_v35 = vadd.f32 %v11223_v60, %v3111_v39 }
 0x3d1   : > { %v11286_v33 = vadd.f32 %v11223_v60, %v3140_v29  ;;  %v11289_v24 = vadd.f32 %v11223_v60, %v3142_v22  ;;  %v11291_v47 = vmax.f32 %v3149_v28, 0.0  ;;  %v11293_v56 = vmax.f32 %v3150_v51, 0.0  ;;  %v3480_v29 = vld [vmem:[#allocation7 + $0x68] sm:$0xff] }
 0x3d2   : > { %v3148_v25 = vadd.f32 %v11223_v60, %v3112_v3  ;;  %v8941_v44 = vpack.c.bf16 %v3474_v50, %v3473_v19  ;;  %v11303_v4 = vmax.f32 %v3147_v35, 0.0  ;;  %v3117_v45 = vmul.f32 %v11218_v27, %v11227_v46  ;;  %v3949_v50 = vld [vmem:[#allocation7 + $0x100] sm:$0xff] }
 0x3d3   : > { %12934 = vst [vmem:[#allocation12_spill] sm:$0xff] %v11289_v24  ;;  %12935 = vst [vmem:[#allocation13_spill] sm:$0xff] %v11291_v47  ;;  %7921 = vmatprep.mubr.f32.mxu1 %v11291_v47  ;;  %v3151_v12 = vadd.f32 %v11223_v60, %v3115_v21  ;;  %v8945_v6 = vpack.c.bf16 %v3476_v49, %v3475_v1  ;;  %v3119_v46 = vmul.f32 %v11218_v27, %v11232_v5 }
 0x3d4   : > { %12936 = vst [vmem:[#allocation29_spill] sm:$0xff] %v11293_v56  ;;  %7922 = vmatmul.mubr.f32.vlgmr.msra.gmra.mrb[0].mxu1 %v11293_v56  ;;  %v11307_v26 = vmax.f32 %v3148_v25, 0.0  ;;  %v3153_v17 = vadd.f32 %v11223_v60, %v3117_v45  ;;  %v8949_v63 = vpack.c.bf16 %v3478_v37, %v3477_v55  ;;  %v3121_v5 = vmul.f32 %v11218_v27, %v11236_v62 }
 0x3d5   : > { %8932 = vmatpush3.bf16.msra.mxu1 %v11000_v16  ;;  %v3116_v16 = vmul.f32 %v11218_v27, %v11225_v43  ;;  %7924 = vmatprep.mubr.f32.mxu1 %v11303_v4  ;;  %v3118_v43 = vmul.f32 %v11218_v27, %v11230_v23  ;;  %v11321_v2 = vmax.f32 %v3151_v12, 0.0  ;;  %v3120_v23 = vmul.f32 %v11218_v27, %v11234_v40  ;;  %v3482_v40 = vld [vmem:[#allocation7 + $0x78] sm:$0xff] }
 0x3d6   : > { %8934 = vmatprep.subr.bf16.mxu1 %v8933_v14  ;;  %v3155_v51 = vadd.f32 %v11223_v60, %v3119_v46  ;;  %v11333_v18 = vmax.f32 %v3153_v17, 0.0  ;;  %v8953_v30 = vpack.c.bf16 %v3480_v29, %v3479_v61  ;;  %v3122_v8 = vmul.f32 %v11218_v27, %v11238_v9  ;;  %v3950_v9 = vld [vmem:[#allocation7 + $0x108] sm:$0xff] }
 0x3d7   : > { %v3152_v38 = vadd.f32 %v11223_v60, %v3116_v16  ;;  %v3154_v22 = vadd.f32 %v11223_v60, %v3118_v43  ;;  %v3156_v48 = vadd.f32 %v11223_v60, %v3120_v23  ;;  %v3123_v62 = vmul.f32 %v11218_v27, %v11240_v52 }
 0x3d8   : > { %7925 = vmatmul.mubr.f32.gmra.mrb[2].mxu1 %v11307_v26  ;;  %v3157_v3 = vadd.f32 %v11223_v60, %v3121_v5  ;;  %v3124_v21 = vmul.f32 %v11218_v27, %v11242_v41  ;;  %v3158_v35 = vadd.f32 %v11223_v60, %v3122_v8  ;;  %v3125_v52 = vmul.f32 %v11218_v27, %v11247_v15 }
 0x3d9   : > { %8936 = vmatpush3.bf16.msra.mxu1 %v8933_v14  ;;  %7927 = vmatprep.mubr.f32.mxu1 %v11291_v47  ;;  %v11328_v28 = vmax.f32 %v3152_v38, 0.0  ;;  %v3481_v14 = vld [vmem:[#allocation7 + $0x70] sm:$0xff]  ;;  %v11340_v39 = vmax.f32 %v3154_v22, 0.0  ;;  %v11352_v25 = vmax.f32 %v3156_v48, 0.0  ;;  %v11360_v49 = vpack.c.bf16 %v3950_v9, %v3949_v50 }
 0x3da   : > { %8938 = vmatprep.subr.bf16.mxu1 %v8937_v59  ;;  %v8957_v19 = vpack.c.bf16 %v3482_v40, %v3481_v14  ;;  %v11357_v1 = vmax.f32 %v3157_v3, 0.0  ;;  %v3126_v41 = vmul.f32 %v11218_v27, %v11249_v20  ;;  %v3160_v16 = vadd.f32 %v11223_v60, %v3124_v21 }
 0x3db   : > { %v11366_v45 = vmax.f32 %v3158_v35, 0.0  ;;  %v3127_v15 = vmul.f32 %v11218_v27, %v11251_v36  ;;  %v3161_v12 = vadd.f32 %v11223_v60, %v3125_v52  ;;  %v3128_v20 = vmul.f32 %v11218_v27, %v11253_v42 }
 0x3dc   : > { %7928 = vmatmul.mubr.f32.gmra.mrb[4].mxu1 %v11293_v56  ;;  %v3162_v55 = vadd.f32 %v11223_v60, %v3126_v41  ;;  %v11379_v37 = vmax.f32 %v3160_v16, 0.0  ;;  %v3129_v36 = vmul.f32 %v11218_v27, %v11255_v34  ;;  %v3130_v46 = vmul.f32 %v11218_v27, %v11257_v31 }
 0x3dd   : > { %8940 = vmatpush3.bf16.msra.mxu1 %v8937_v59  ;;  %7930 = vmatprep.mubr.f32.mxu1 %v11321_v2  ;;  %v11345_v59 = vmax.f32 %v3155_v51, 0.0  ;;  %v3163_v43 = vadd.f32 %v11223_v60, %v3127_v15  ;;  %v11384_v38 = vmax.f32 %v3161_v12, 0.0  ;;  %v3164_v42 = vadd.f32 %v11223_v60, %v3128_v20  ;;  %v3951_v15 = vld [vmem:[#allocation7 + $0x110] sm:$0xff]  ;;  %v3952_v12 = vld [vmem:[#allocation7 + $0x118] sm:$0xff] }
 0x3de   : > { %8942 = vmatprep.subr.bf16.mxu1 %v8941_v44  ;;  %v11391_v17 = vmax.f32 %v3162_v55, 0.0  ;;  %v3165_v34 = vadd.f32 %v11223_v60, %v3129_v36  ;;  %v3132_v29 = vmul.f32 %v11218_v27, %v11261_v54  ;;  %v3166_v31 = vadd.f32 %v11223_v60, %v3130_v46  ;;  %v3953_v46 = vld [vmem:[#allocation7 + $0x120] sm:$0xff] }
 0x3df   : > { %v11396_v61 = vmax.f32 %v3163_v43, 0.0  ;;  %v11403_v23 = vmax.f32 %v3164_v42, 0.0  ;;  %v3133_v22 = vmul.f32 %v11218_v27, %v11263_v58  ;;  %v3134_v51 = vmul.f32 %v11218_v27, %v11265_v0  ;;  %v3954_v42 = vld [vmem:[#allocation7 + $0x128] sm:$0xff] }
 0x3e0   : > { %7931 = vmatmul.mubr.f32.gmra.mrb[6].mxu1 %v11328_v28  ;;  %v11408_v5 = vmax.f32 %v3165_v34, 0.0  ;;  %v3168_v54 = vadd.f32 %v11223_v60, %v3132_v29  ;;  %v3135_v14 = vmul.f32 %v11218_v27, %v11267_v7  ;;  %v3136_v8 = vmul.f32 %v11218_v27, %v11269_v11 }
 0x3e1   : > { %8944 = vmatpush3.bf16.msra.mxu1 %v8941_v44  ;;  %7933 = vmatprep.mubr.f32.mxu1 %v11333_v18  ;;  %v3159_v44 = vadd.f32 %v11223_v60, %v3123_v62  ;;  %v3169_v58 = vadd.f32 %v11223_v60, %v3133_v22  ;;  %v3170_v0 = vadd.f32 %v11223_v60, %v3134_v51  ;;  %v3275_v41 = vrot.slane %v11291_v47, 7  ;;  %v3956_v22 = vld [vmem:[#allocation7 + $0x138] sm:$0xff] }
 0x3e2   : > { %8946 = vmatprep.subr.bf16.mxu1 %v8945_v6  ;;  %v11427_v48 = vmax.f32 %v3168_v54, 0.0  ;;  %v3137_v62 = vmul.f32 %v11218_v27, %v11271_v32  ;;  %v3171_v7 = vadd.f32 %v11223_v60, %v3135_v14  ;;  %v3172_v11 = vadd.f32 %v11223_v60, %v3136_v8  ;;  %v3957_v14 = vld [vmem:[#allocation7 + $0x140] sm:$0xff] }
 0x3e3   : > { %v11432_v3 = vmax.f32 %v3169_v58, 0.0  ;;  %v11439_v50 = vmax.f32 %v3170_v0, 0.0  ;;  %v12702_v16 = vrot.slane %v11293_v56, 7  ;;  %v12701_v20 = vrot.slane %v11303_v4, 1  ;;  %v3958_v58 = vld [vmem:[#allocation7 + $0x148] sm:$0xff] }
 0x3e4   : > { %7934 = vmatmul.mubr.f32.gmra.mrb[8].mxu1 %v11340_v39  ;;  %v3173_v9 = vadd.f32 %v11223_v60, %v3137_v62  ;;  %v11442_v21 = vmax.f32 %v3171_v7, 0.0  ;;  %v11447_v35 = vmax.f32 %v3172_v11, 0.0  ;;  %v3278_v55 = vrot.slane %v11303_v4, 7 }
 0x3e5   : > { %8948 = vmatpush3.bf16.msra.mxu1 %v8945_v6  ;;  %7936 = vmatprep.mubr.f32.mxu1 %v11345_v59  ;;  %v11371_v6 = vmax.f32 %v3159_v44, 0.0  ;;  %v12705_v44 = vrot.slane %v11291_v47, 1  ;;  %v8965_v36 = vpack.c.bf16 %v3952_v12, %v3951_v15  ;;  %v12698_v43 = vrot.slane %v11307_v26, 7 }
 0x3e6   : > { %8950 = vmatprep.subr.bf16.mxu1 %v8949_v63  ;;  %v11449_v52 = vmax.f32 %v3173_v9, 0.0  ;;  %v8969_v34 = vpack.c.bf16 %v3954_v42, %v3953_v46  ;;  %v3281_v51 = vrot.slane %v11321_v2, 7  ;;  %v12694_v54 = vrot.slane %v11328_v28, 7  ;;  %v3959_v9 = vld [vmem:[#allocation7 + $0x150] sm:$0xff]  ;;  %v3961_v42 = vld [vmem:[#allocation7 + $0x160] sm:$0xff] }
 0x3e7   : > { %v11492_v29 = vsel %vm341_vm0, %v3278_v55, %v12698_v43  ;;  %v12689_v0 = vrot.slane %v11333_v18, 1  ;;  %v3284_v62 = vrot.slane %v11333_v18, 7  ;;  %v8977_v7 = vpack.c.bf16 %v3958_v58, %v3957_v14 }
 0x3e8   : > { %7937 = vmatmul.mubr.f32.gmra.mrb[10].mxu1 %v11352_v25  ;;  %12937 = vst [vmem:[#allocation30_spill] sm:$0xff] %v11449_v52  ;;  %v12685_v11 = vrot.slane %v11340_v39, 7  ;;  %v12684_v15 = vrot.slane %v11345_v59, 1  ;;  %v3287_v12 = vrot.slane %v11345_v59, 7  ;;  %v12683_v46 = vrot.slane %v11352_v25, 7 }
 0x3e9   : > { %8952 = vmatpush3.bf16.msra.mxu1 %v8949_v63  ;;  %7939 = vmatprep.mubr.f32.mxu1 %v11357_v1  ;;  %v3131_v63 = vmul.f32 %v11218_v27, %v11259_v53  ;;  %v12687_v58 = vrot.slane %v11366_v45, 7  ;;  %v3308_v43 = vrot.slane %v11432_v3, 7  ;;  %v3314_v24 = vrot.slane %v11449_v52, 7 }
 0x3ea   : > { %8954 = vmatprep.subr.bf16.mxu1 %v8953_v30  ;;  %v11541_v14 = vsel %vm341_vm0, %v3287_v12, %v12683_v46  ;;  %v12693_v46 = vrot.slane %v11379_v37, 7 }
 0x3eb   : > { %v3167_v53 = vadd.f32 %v11223_v60, %v3131_v63  ;;  %v11485_v63 = vsel %vm341_vm0, %v12701_v20, %v3278_v55  ;;  %v12707_v20 = vrot.slane %v11442_v21, 1 }
 0x3ec   : > { %7940 = vmatmul.mubr.f32.gmra.mrb[12].mxu1 %v11366_v45 }
 0x3ed   : > { %8956 = vmatpush3.bf16.msra.mxu1 %v8953_v30  ;;  %7942 = vmatprep.mubr.f32.mxu1 %v11371_v6  ;;  %v11415_v30 = vmax.f32 %v3166_v31, 0.0  ;;  %v11420_v40 = vmax.f32 %v3167_v53, 0.0  ;;  %v3955_v31 = vld [vmem:[#allocation7 + $0x130] sm:$0xff]  ;;  %v12697_v53 = vrot.slane %v11321_v2, 1 }
 0x3ee   : > { %8958 = vmatprep.subr.bf16.mxu1 %v8957_v19 }
 0x3ef   : > { %v11503_v8 = vsel %vm341_vm0, %v12697_v53, %v3281_v51  ;;  %v12704_v53 = vrot.slane %v11432_v3, 1 }
 0x3f0   : > { %7943 = vmatmul.mubr.f32.gmra.mrb[14].mxu1 %v11379_v37 }
 0x3f1   : > { %8960 = vmatpush3.bf16.msra.mxu1 %v8957_v19  ;;  %7945 = vmatprep.mubr.f32.mxu1 %v11384_v38  ;;  %v3138_v19 = vmul.f32 %v11218_v27, %v11273_v13  ;;  %v11456_v13 = vmax.f32 %v11283_v57, 0.0  ;;  %v11470_v57 = vsel %vm341_vm0, %v12705_v44, %v3275_v41  ;;  %v12711_v44 = vrot.slane %v11449_v52, 1 }
 0x3f2   : > { %8962 = vmatprep.subr.bf16.mxu1 %v11360_v49 }
 0x3f3   : > { %v3174_v32 = vadd.f32 %v11223_v60, %v3138_v19  ;;  %12939 = vst [vmem:[#allocation28_spill] sm:$0xff] %v11456_v13  ;;  %v11463_v60 = vmax.f32 %v11286_v33, 0.0  ;;  %v11478_v33 = vsel %vm341_vm0, %v3275_v41, %v12702_v16  ;;  %v11511_v19 = vsel %vm341_vm0, %v3281_v51, %v12694_v54 }
 0x3f4   : > { %7946 = vmatmul.mubr.f32.gmra.mrb[16].mxu1 %v11391_v17  ;;  %v11518_v41 = vsel %vm341_vm0, %v12689_v0, %v3284_v62  ;;  %v3290_v51 = vrot.slane %v11357_v1, 7  ;;  %v12692_v0 = vrot.slane %v11396_v61, 1  ;;  %v3305_v54 = vrot.slane %v11420_v40, 7 }
 0x3f5   : > { %7948 = vmatprep.mubr.f32.mxu1 %v11396_v61  ;;  %v11453_v27 = vmax.f32 %v3174_v32, 0.0  ;;  %12940 = vst [vmem:[#allocation31_spill] sm:$0xff] %v11463_v60  ;;  %v3960_v32 = vld [vmem:[#allocation7 + $0x158] sm:$0xff]  ;;  %v3311_v16 = vrot.slane %v11442_v21, 7  ;;  %v12721_v10 = vrot.slane %v11456_v13, 1 }
 0x3f6   : > { %v8981_v55 = vpack.c.bf16 %v3960_v32, %v3959_v9  ;;  %v3964_v9 = vld [vmem:[#allocation7 + $0x178] sm:$0xff] }
 0x3f7   : > { %12938 = vst [vmem:[#allocation27_spill] sm:$0xff] %v11453_v27 }
 0x3f8   : > { %7949 = vmatmul.mubr.f32.gmra.mrb[18].mxu1 %v11403_v23 }
 0x3f9   : > { %7951 = vmatprep.mubr.f32.mxu1 %v11408_v5 }
 0x3fc   : > { %7952 = vmatmul.mubr.f32.gmra.mrb[20].mxu1 %v11415_v30 }
 0x3fd   : > { %7954 = vmatprep.mubr.f32.mxu1 %v11420_v40 }
 0x400   : > { %7955 = vmatmul.mubr.f32.gmra.mrb[22].mxu1 %v11427_v48 }
 0x401   : > { %7957 = vmatprep.mubr.f32.mxu1 %v11432_v3 }
 0x404   : > { %7958 = vmatmul.mubr.f32.gmra.mrb[24].mxu1 %v11439_v50 }
 0x405   : > { %7960 = vmatprep.mubr.f32.mxu1 %v11442_v21 }
 0x408   : > { %7961 = vmatmul.mubr.f32.gmra.mrb[26].mxu1 %v11447_v35 }
 0x409   : > { %7963 = vmatprep.mubr.f32.mxu1 %v11449_v52 }
 0x40c   : > { %7964 = vmatmul.mubr.f32.gmra.mrb[28].mxu1 %v11453_v27 }
 0x40d   : > { %7966 = vmatprep.mubr.f32.mxu1 %v11456_v13 }
 0x410   : > { %7967 = vmatmul.mubr.f32.gmra.mrb[30].mxu1 %v11463_v60 }
 0x411   : > { %8001 = vmatprep.mubr.f32.mxu1 %v11470_v57 }
 0x414   : > { %8002 = vmatmul.mubr.f32.vlgmr.msra.gmra.mrb[0].mxu1 %v11478_v33 }
 0x415   : > { %8004 = vmatprep.mubr.f32.mxu1 %v11485_v63  ;;  %8964 = vmatpush3.bf16.msra.mxu1 %v11360_v49  ;;  %v8973_v49 = vpack.c.bf16 %v3956_v22, %v3955_v31  ;;  %v11533_v31 = vsel %vm341_vm0, %v12684_v15, %v3287_v12  ;;  %v12686_v22 = vrot.slane %v11357_v1, 1  ;;  %v4222_v15 = vld [vmem:[#allocation7 + $0x180] sm:$0xff] }
 0x416   : > { %8966 = vmatprep.subr.bf16.mxu1 %v8965_v36 }
 0x417   : > { %v11548_v32 = vsel %vm341_vm0, %v12686_v22, %v3290_v51 }
 0x418   : > { %8005 = vmatmul.mubr.f32.gmra.mrb[2].mxu1 %v11492_v29 }
 0x419   : > { %8007 = vmatprep.mubr.f32.mxu1 %v11470_v57  ;;  %8968 = vmatpush3.bf16.msra.mxu1 %v8965_v36  ;;  %v11526_v36 = vsel %vm341_vm0, %v3284_v62, %v12685_v11  ;;  %v3963_v62 = vld [vmem:[#allocation7 + $0x170] sm:$0xff]  ;;  %v4223_v11 = vld [vmem:[#allocation7 + $0x188] sm:$0xff] }
 0x41a   : > { %8970 = vmatprep.subr.bf16.mxu1 %v8969_v34  ;;  %v8989_v12 = vpack.c.bf16 %v3964_v9, %v3963_v62  ;;  %v3296_v62 = vrot.slane %v11384_v38, 7 }
 0x41c   : > { %8008 = vmatmul.mubr.f32.gmra.mrb[4].mxu1 %v11478_v33 }
 0x41d   : > { %8010 = vmatprep.mubr.f32.mxu1 %v11503_v8  ;;  %8972 = vmatpush3.bf16.msra.mxu1 %v8969_v34  ;;  %v3962_v34 = vld [vmem:[#allocation7 + $0x168] sm:$0xff] }
 0x41e   : > { %8974 = vmatprep.subr.bf16.mxu1 %v8973_v49 }
 0x420   : > { %8011 = vmatmul.mubr.f32.gmra.mrb[6].mxu1 %v11511_v19 }
 0x421   : > { %8013 = vmatprep.mubr.f32.mxu1 %v11518_v41  ;;  %8976 = vmatpush3.bf16.msra.mxu1 %v8973_v49  ;;  %v8985_v49 = vpack.c.bf16 %v3962_v34, %v3961_v42  ;;  %v3293_v42 = vrot.slane %v11371_v6, 7  ;;  %v11556_v34 = vsel %vm341_vm0, %v3290_v51, %v12687_v58  ;;  %v11568_v51 = vpack.c.bf16 %v4223_v11, %v4222_v15 }
 0x422   : > { %8978 = vmatprep.subr.bf16.mxu1 %v8977_v7  ;;  %v12691_v58 = vrot.slane %v11391_v17, 7  ;;  %v12695_v15 = vrot.slane %v11403_v23, 7 }
 0x423   : > { %v11573_v9 = vsel %vm341_vm0, %v3293_v42, %v12693_v46  ;;  %v12700_v46 = vrot.slane %v11420_v40, 1 }
 0x424   : > { %8014 = vmatmul.mubr.f32.gmra.mrb[8].mxu1 %v11526_v36  ;;  %v11589_v11 = vsel %vm341_vm0, %v3296_v62, %v12691_v58  ;;  %v12699_v58 = vrot.slane %v11415_v30, 7 }
 0x425   : > { %8016 = vmatprep.mubr.f32.mxu1 %v11533_v31  ;;  %8980 = vmatpush3.bf16.msra.mxu1 %v8977_v7  ;;  %v12688_v7 = vrot.slane %v11371_v6, 1 }
 0x426   : > { %8982 = vmatprep.subr.bf16.mxu1 %v8981_v55 }
 0x427   : > { %v11563_v22 = vsel %vm341_vm0, %v12688_v7, %v3293_v42 }
 0x428   : > { %8017 = vmatmul.mubr.f32.gmra.mrb[10].mxu1 %v11541_v14 }
 0x429   : > { %8019 = vmatprep.mubr.f32.mxu1 %v11548_v32  ;;  %8984 = vmatpush3.bf16.msra.mxu1 %v8981_v55  ;;  %v12690_v55 = vrot.slane %v11384_v38, 1 }
 0x42a   : > { %8986 = vmatprep.subr.bf16.mxu1 %v8985_v49 }
 0x42b   : > { %v11580_v7 = vsel %vm341_vm0, %v12690_v55, %v3296_v62  ;;  %v12696_v55 = vrot.slane %v11408_v5, 1 }
 0x42c   : > { %8020 = vmatmul.mubr.f32.gmra.mrb[12].mxu1 %v11556_v34 }
 0x42d   : > { %8022 = vmatprep.mubr.f32.mxu1 %v11563_v22  ;;  %8988 = vmatpush3.bf16.msra.mxu1 %v8985_v49  ;;  %v3299_v49 = vrot.slane %v11396_v61, 7 }
 0x42e   : > { %8990 = vmatprep.subr.bf16.mxu1 %v8989_v12 }
 0x42f   : > { %v11596_v42 = vsel %vm341_vm0, %v12692_v0, %v3299_v49  ;;  %v11604_v62 = vsel %vm341_vm0, %v3299_v49, %v12695_v15  ;;  %v12703_v15 = vrot.slane %v11427_v48, 7 }
 0x430   : > { %8023 = vmatmul.mubr.f32.gmra.mrb[14].mxu1 %v11573_v9 }
 0x431   : > { %8025 = vmatprep.mubr.f32.mxu1 %v11580_v7  ;;  %8992 = vmatpush3.bf16.msra.mxu1 %v8989_v12  ;;  %v3302_v12 = vrot.slane %v11408_v5, 7 }
 0x432   : > { %8994 = vmatprep.subr.bf16.mxu1 %v11568_v51 }
 0x433   : > { %v11611_v0 = vsel %vm341_vm0, %v12696_v55, %v3302_v12  ;;  %v11619_v49 = vsel %vm341_vm0, %v3302_v12, %v12699_v58  ;;  %v11626_v55 = vsel %vm341_vm0, %v12700_v46, %v3305_v54  ;;  %v11634_v12 = vsel %vm341_vm0, %v3305_v54, %v12703_v15 }
 0x434   : > { %8026 = vmatmul.mubr.f32.gmra.mrb[16].mxu1 %v11589_v11  ;;  %12941 = vst [vmem:[#allocation32_spill] sm:$0xff] %v11619_v49  ;;  %12942 = vst [vmem:[#allocation33_spill] sm:$0xff] %v11626_v55  ;;  %v12706_v58 = vrot.slane %v11439_v50, 7  ;;  %v11641_v46 = vsel %vm341_vm0, %v12704_v53, %v3308_v43  ;;  %v12710_v15 = vrot.slane %v11447_v35, 7  ;;  %v11656_v53 = vsel %vm341_vm0, %v12707_v20, %v3311_v16 }
 0x435   : > { %8028 = vmatprep.mubr.f32.mxu1 %v11596_v42  ;;  %12943 = vst [vmem:[#allocation34_spill] sm:$0xff] %v11634_v12  ;;  %12944 = vst [vmem:[#allocation35_spill] sm:$0xff] %v11641_v46  ;;  %v11671_v20 = vsel %vm341_vm0, %v12711_v44, %v3314_v24 }
 0x436   : > { %v11649_v54 = vsel %vm341_vm0, %v3308_v43, %v12706_v58  ;;  %12946 = vst [vmem:[#allocation37_spill] sm:$0xff] %v11656_v53  ;;  %v11664_v43 = vsel %vm341_vm0, %v3311_v16, %v12710_v15  ;;  %v12716_v58 = vrot.slane %v11453_v27, 7  ;;  %12948 = vst [vmem:[#allocation39_spill] sm:$0xff] %v11671_v20  ;;  %v12728_v15 = vrot.slane %v11463_v60, 7 }
 0x437   : > { %12945 = vst [vmem:[#allocation36_spill] sm:$0xff] %v11649_v54  ;;  %12947 = vst [vmem:[#allocation38_spill] sm:$0xff] %v11664_v43 }
 0x438   : > { %8029 = vmatmul.mubr.f32.gmra.mrb[18].mxu1 %v11604_v62  ;;  %v11679_v16 = vsel %vm341_vm0, %v3314_v24, %v12716_v58  ;;  %v4224_v24 = vld [vmem:[#allocation7 + $0x190] sm:$0xff]  ;;  %v4225_v58 = vld [vmem:[#allocation7 + $0x198] sm:$0xff] }
 0x439   : > { %8031 = vmatprep.mubr.f32.mxu1 %v11611_v0  ;;  %12949 = vst [vmem:[#allocation40_spill] sm:$0xff] %v11679_v16 }
 0x43c   : > { %8032 = vmatmul.mubr.f32.gmra.mrb[20].mxu1 %v11619_v49 }
 0x43d   : > { %8034 = vmatprep.mubr.f32.mxu1 %v11626_v55 }
 0x440   : > { %8035 = vmatmul.mubr.f32.gmra.mrb[22].mxu1 %v11634_v12 }
 0x441   : > { %8037 = vmatprep.mubr.f32.mxu1 %v11641_v46  ;;  %v8997_v46 = vpack.c.bf16 %v4225_v58, %v4224_v24  ;;  %v4229_v24 = vld [vmem:[#allocation7 + $0x1b8] sm:$0xff] }
 0x444   : > { %8038 = vmatmul.mubr.f32.gmra.mrb[24].mxu1 %v11649_v54  ;;  %v3317_v54 = vrot.slane %v11456_v13, 7 }
 0x445   : > { %8040 = vmatprep.mubr.f32.mxu1 %v11656_v53 }
 0x446   : > { %v11686_v44 = vsel %vm341_vm0, %v12721_v10, %v3317_v54  ;;  %v3373_v10 = vrot.slane %v11307_v26, 1 }
 0x447   : > { %12950 = vst [vmem:[#allocation41_spill] sm:$0xff] %v11686_v44 }
 0x448   : > { %8041 = vmatmul.mubr.f32.gmra.mrb[26].mxu1 %v11664_v43  ;;  %v3371_v43 = vrot.slane %v11293_v56, 1 }
 0x449   : > { %8043 = vmatprep.mubr.f32.mxu1 %v11671_v20  ;;  %v11693_v20 = vsel %vm341_vm0, %v3317_v54, %v12728_v15  ;;  %v4226_v54 = vld [vmem:[#allocation7 + $0x1a0] sm:$0xff]  ;;  %v4227_v15 = vld [vmem:[#allocation7 + $0x1a8] sm:$0xff] }
 0x44a   : > { %12951 = vst [vmem:[#allocation42_spill] sm:$0xff] %v11693_v20  ;;  %v9001_v58 = vpack.c.bf16 %v4227_v15, %v4226_v54  ;;  %v12960_v15 = vrot.slane %v11321_v2, 1  ;;  %v3377_v54 = vrot.slane %v11340_v39, 1 }
 0x44c   : > { %8044 = vmatmul.mubr.f32.gmra.mrb[28].mxu1 %v11679_v16  ;;  %v12952_v16 = vrot.slane %v11291_v47, 1 }
 0x44d   : > { %8046 = vmatprep.mubr.f32.mxu1 %v11686_v44  ;;  %v12954_v44 = vrot.slane %v11293_v56, 7  ;;  %v3375_v56 = vrot.slane %v11328_v28, 1 }
 0x44e   : > { %v11699_v53 = vsel %vm438_vm1, %v12952_v16, %v3371_v43  ;;  %v12958_v16 = vrot.slane %v11307_v26, 7 }
 0x44f   : > { %12953 = vst [vmem:[#allocation43_spill] sm:$0xff] %v11699_v53  ;;  %v11706_v12 = vsel %vm438_vm1, %v3371_v43, %v12954_v44  ;;  %v4228_v43 = vld [vmem:[#allocation7 + $0x1b0] sm:$0xff] }
 0x450   : > { %8047 = vmatmul.mubr.f32.gmra.mrb[30].mxu1 %v11693_v20  ;;  %12955 = vst [vmem:[#allocation44_spill] sm:$0xff] %v11706_v12  ;;  %v12956_v20 = vrot.slane %v11303_v4, 1  ;;  %v11719_v44 = vsel %vm438_vm1, %v3373_v10, %v12958_v16 }
 0x451   : > { %8081 = vmatprep.mubr.f32.mxu1 %v11699_v53  ;;  %12959 = vst [vmem:[#allocation46_spill] sm:$0xff] %v11719_v44 }
 0x452   : > { %v11712_v47 = vsel %vm438_vm1, %v12956_v20, %v3373_v10  ;;  %v9005_v20 = vpack.c.bf16 %v4229_v24, %v4228_v43  ;;  %v11728_v10 = vsel %vm438_vm1, %v12960_v15, %v3375_v56  ;;  %v4232_v24 = vld [vmem:[#allocation7 + $0x1d0] sm:$0xff] }
 0x453   : > { %12957 = vst [vmem:[#allocation45_spill] sm:$0xff] %v11712_v47  ;;  %12961 = vst [vmem:[#allocation47_spill] sm:$0xff] %v11728_v10 }
 0x454   : > { %8082 = vmatmul.mubr.f32.vlgmr.msra.gmra.mrb[0].mxu1 %v11706_v12 }
 0x455   : > { %8084 = vmatprep.mubr.f32.mxu1 %v11712_v47  ;;  %8996 = vmatpush3.bf16.msra.mxu1 %v11568_v51  ;;  %v4230_v47 = vld [vmem:[#allocation7 + $0x1c0] sm:$0xff]  ;;  %v4231_v51 = vld [vmem:[#allocation7 + $0x1c8] sm:$0xff] }
 0x456   : > { %8998 = vmatprep.subr.bf16.mxu1 %v8997_v46  ;;  %v9009_v16 = vpack.c.bf16 %v4231_v51, %v4230_v47  ;;  %v4234_v51 = vld [vmem:[#allocation7 + $0x1e0] sm:$0xff] }
 0x458   : > { %8085 = vmatmul.mubr.f32.gmra.mrb[2].mxu1 %v11719_v44  ;;  %v3379_v44 = vrot.slane %v11352_v25, 1 }
 0x459   : > { %8087 = vmatprep.mubr.f32.mxu1 %v11699_v53  ;;  %9000 = vmatpush3.bf16.msra.mxu1 %v8997_v46  ;;  %v12962_v46 = vrot.slane %v11328_v28, 7  ;;  %v4233_v53 = vld [vmem:[#allocation7 + $0x1d8] sm:$0xff] }
 0x45a   : > { %9002 = vmatprep.subr.bf16.mxu1 %v9001_v58  ;;  %v9013_v47 = vpack.c.bf16 %v4233_v53, %v4232_v24  ;;  %v4236_v24 = vld [vmem:[#allocation7 + $0x1f0] sm:$0xff] }
 0x45b   : > { %v11735_v43 = vsel %vm438_vm1, %v3375_v56, %v12962_v46  ;;  %v4235_v46 = vld [vmem:[#allocation7 + $0x1e8] sm:$0xff] }
 0x45c   : > { %8088 = vmatmul.mubr.f32.gmra.mrb[4].mxu1 %v11706_v12  ;;  %12963 = vst [vmem:[#allocation48_spill] sm:$0xff] %v11735_v43  ;;  %v12964_v12 = vrot.slane %v11333_v18, 1  ;;  %v9017_v53 = vpack.c.bf16 %v4235_v46, %v4234_v51  ;;  %v12974_v51 = vrot.slane %v11366_v45, 7  ;;  %v4495_v46 = vld [vmem:[#allocation7 + $0x200] sm:$0xff] }
 0x45d   : > { %8090 = vmatprep.mubr.f32.mxu1 %v11728_v10  ;;  %9004 = vmatpush3.bf16.msra.mxu1 %v9001_v58  ;;  %v12966_v58 = vrot.slane %v11340_v39, 7  ;;  %v3381_v10 = vrot.slane %v11366_v45, 1 }
 0x45e   : > { %9006 = vmatprep.subr.bf16.mxu1 %v9005_v20  ;;  %v11741_v15 = vsel %vm438_vm1, %v12964_v12, %v3377_v54 }
 0x45f   : > { %12965 = vst [vmem:[#allocation49_spill] sm:$0xff] %v11741_v15  ;;  %v11748_v56 = vsel %vm438_vm1, %v3377_v54, %v12966_v58  ;;  %v4237_v58 = vld [vmem:[#allocation7 + $0x1f8] sm:$0xff] }
 0x460   : > { %8091 = vmatmul.mubr.f32.gmra.mrb[6].mxu1 %v11735_v43  ;;  %12967 = vst [vmem:[#allocation50_spill] sm:$0xff] %v11748_v56  ;;  %v12968_v43 = vrot.slane %v11345_v59, 1 }
 0x461   : > { %8093 = vmatprep.mubr.f32.mxu1 %v11741_v15  ;;  %9008 = vmatpush3.bf16.msra.mxu1 %v9005_v20  ;;  %v12970_v20 = vrot.slane %v11352_v25, 7  ;;  %v3383_v15 = vrot.slane %v11379_v37, 1 }
 0x462   : > { %9010 = vmatprep.subr.bf16.mxu1 %v9009_v16  ;;  %v11754_v12 = vsel %vm438_vm1, %v12968_v43, %v3379_v44 }
 0x463   : > { %12969 = vst [vmem:[#allocation51_spill] sm:$0xff] %v11754_v12  ;;  %v11761_v54 = vsel %vm438_vm1, %v3379_v44, %v12970_v20  ;;  %v11774_v44 = vsel %vm438_vm1, %v3381_v10, %v12974_v51  ;;  %v4496_v20 = vld [vmem:[#allocation7 + $0x208] sm:$0xff] }
 0x464   : > { %8094 = vmatmul.mubr.f32.gmra.mrb[8].mxu1 %v11748_v56  ;;  %12971 = vst [vmem:[#allocation15_spill] sm:$0xff] %v11761_v54  ;;  %v12972_v56 = vrot.slane %v11357_v1, 1 }
 0x465   : > { %8096 = vmatprep.mubr.f32.mxu1 %v11754_v12  ;;  %9012 = vmatpush3.bf16.msra.mxu1 %v9009_v16  ;;  %v9021_v16 = vpack.c.bf16 %v4237_v58, %v4236_v24  ;;  %v3385_v12 = vrot.slane %v11391_v17, 1  ;;  %v12976_v24 = vrot.slane %v11379_v37, 7  ;;  %v12978_v58 = vrot.slane %v11384_v38, 1 }
 0x466   : > { %9014 = vmatprep.subr.bf16.mxu1 %v9013_v47  ;;  %v11767_v43 = vsel %vm438_vm1, %v12972_v56, %v3381_v10 }
 0x467   : > { %12973 = vst [vmem:[#allocation16_spill] sm:$0xff] %v11767_v43  ;;  %v11787_v10 = vsel %vm438_vm1, %v3383_v15, %v12976_v24  ;;  %v11793_v51 = vsel %vm438_vm1, %v12978_v58, %v3385_v12  ;;  %v3389_v24 = vrot.slane %v11415_v30, 1  ;;  %v12984_v58 = vrot.slane %v11403_v23, 7 }
 0x468   : > { %8097 = vmatmul.mubr.f32.gmra.mrb[10].mxu1 %v11761_v54  ;;  %v12975_v54 = vrot.slane %v11371_v6, 1  ;;  %12977 = vst [vmem:[#allocation17_spill] sm:$0xff] %v11787_v10  ;;  %12979 = vst [vmem:[#allocation18_spill] sm:$0xff] %v11793_v51 }
 0x469   : > { %8099 = vmatprep.mubr.f32.mxu1 %v11767_v43  ;;  %9016 = vmatpush3.bf16.msra.mxu1 %v9013_v47  ;;  %v9025_v47 = vpack.c.bf16 %v4496_v20, %v4495_v46 }
 0x46a   : > { %9018 = vmatprep.subr.bf16.mxu1 %v9017_v53  ;;  %v11780_v56 = vsel %vm438_vm1, %v12975_v54, %v3383_v15  ;;  %v3387_v54 = vrot.slane %v11403_v23, 1  ;;  %v12982_v15 = vrot.slane %v11396_v61, 1 }
 0x46c   : > { %8100 = vmatmul.mubr.f32.gmra.mrb[12].mxu1 %v11774_v44  ;;  %v11806_v20 = vsel %vm438_vm1, %v12982_v15, %v3387_v54  ;;  %v12988_v15 = vrot.slane %v11415_v30, 7 }
 0x46d   : > { %8102 = vmatprep.mubr.f32.mxu1 %v11780_v56  ;;  %9020 = vmatpush3.bf16.msra.mxu1 %v9017_v53  ;;  %v12980_v53 = vrot.slane %v11391_v17, 7  ;;  %12983 = vst [vmem:[#allocation20_spill] sm:$0xff] %v11806_v20 }
 0x46e   : > { %9022 = vmatprep.subr.bf16.mxu1 %v9021_v16 }
 0x46f   : > { %v11800_v46 = vsel %vm438_vm1, %v3385_v12, %v12980_v53  ;;  %v12986_v12 = vrot.slane %v11408_v5, 1 }
 0x470   : > { %8103 = vmatmul.mubr.f32.gmra.mrb[14].mxu1 %v11787_v10  ;;  %12981 = vst [vmem:[#allocation19_spill] sm:$0xff] %v11800_v46  ;;  %v4502_v10 = vld [vmem:[#allocation7 + $0x238] sm:$0xff] }
 0x471   : > { %8105 = vmatprep.mubr.f32.mxu1 %v11793_v51  ;;  %9024 = vmatpush3.bf16.msra.mxu1 %v9021_v16  ;;  %v11813_v16 = vsel %vm438_vm1, %v3387_v54, %v12984_v58  ;;  %v11819_v53 = vsel %vm438_vm1, %v12986_v12, %v3389_v24  ;;  %v12990_v54 = vrot.slane %v11420_v40, 1  ;;  %v12992_v12 = vrot.slane %v11427_v48, 7  ;;  %v4498_v51 = vld [vmem:[#allocation7 + $0x218] sm:$0xff] }
 0x472   : > { %9026 = vmatprep.subr.bf16.mxu1 %v9025_v47  ;;  %12985 = vst [vmem:[#allocation21_spill] sm:$0xff] %v11813_v16  ;;  %12987 = vst [vmem:[#allocation22_spill] sm:$0xff] %v11819_v53 }
 0x474   : > { %8106 = vmatmul.mubr.f32.gmra.mrb[16].mxu1 %v11800_v46  ;;  %v3391_v46 = vrot.slane %v11427_v48, 1 }
 0x475   : > { %8108 = vmatprep.mubr.f32.mxu1 %v11806_v20  ;;  %v11826_v20 = vsel %vm438_vm1, %v3389_v24, %v12988_v15  ;;  %v12994_v24 = vrot.slane %v11432_v3, 1 }
 0x476   : > { %12989 = vst [vmem:[#allocation23_spill] sm:$0xff] %v11826_v20  ;;  %v11832_v58 = vsel %vm438_vm1, %v12990_v54, %v3391_v46  ;;  %v12996_v54 = vrot.slane %v11439_v50, 7 }
 0x477   : > { %12991 = vst [vmem:[#allocation24_spill] sm:$0xff] %v11832_v58 }
 0x478   : > { %8109 = vmatmul.mubr.f32.gmra.mrb[18].mxu1 %v11813_v16  ;;  %v3393_v16 = vrot.slane %v11439_v50, 1 }
 0x479   : > { %8111 = vmatprep.mubr.f32.mxu1 %v11819_v53  ;;  %v11839_v53 = vsel %vm438_vm1, %v3391_v46, %v12992_v12  ;;  %v12998_v46 = vrot.slane %v11442_v21, 1 }
 0x47a   : > { %12993 = vst [vmem:[#allocation25_spill] sm:$0xff] %v11839_v53  ;;  %v11845_v15 = vsel %vm438_vm1, %v12994_v24, %v3393_v16  ;;  %v13000_v24 = vrot.slane %v11447_v35, 7 }
 0x47b   : > { %12995 = vst [vmem:[#allocation26_spill] sm:$0xff] %v11845_v15 }
 0x47c   : > { %8112 = vmatmul.mubr.f32.gmra.mrb[20].mxu1 %v11826_v20  ;;  %v3395_v20 = vrot.slane %v11447_v35, 1 }
 0x47d   : > { %8114 = vmatprep.mubr.f32.mxu1 %v11832_v58  ;;  %v11852_v58 = vsel %vm438_vm1, %v3393_v16, %v12996_v54  ;;  %v13002_v16 = vrot.slane %v11449_v52, 1 }
 0x47e   : > { %12997 = vst [vmem:[#allocation52_spill] sm:$0xff] %v11852_v58  ;;  %v11858_v12 = vsel %vm438_vm1, %v12998_v46, %v3395_v20  ;;  %v13004_v46 = vrot.slane %v11453_v27, 7 }
 0x47f   : > { %12999 = vst [vmem:[#allocation53_spill] sm:$0xff] %v11858_v12 }
 0x480   : > { %8115 = vmatmul.mubr.f32.gmra.mrb[22].mxu1 %v11839_v53  ;;  %v3397_v53 = vrot.slane %v11453_v27, 1 }
 0x481   : > { %8117 = vmatprep.mubr.f32.mxu1 %v11845_v15  ;;  %v11865_v15 = vsel %vm438_vm1, %v3395_v20, %v13000_v24  ;;  %v13006_v20 = vrot.slane %v11456_v13, 1 }
 0x482   : > { %13001 = vst [vmem:[#allocation54_spill] sm:$0xff] %v11865_v15  ;;  %v11871_v54 = vsel %vm438_vm1, %v13002_v16, %v3397_v53  ;;  %v13008_v16 = vrot.slane %v11463_v60, 7 }
 0x483   : > { %13003 = vst [vmem:[#allocation55_spill] sm:$0xff] %v11871_v54 }
 0x484   : > { %8118 = vmatmul.mubr.f32.gmra.mrb[24].mxu1 %v11852_v58  ;;  %v3399_v58 = vrot.slane %v11463_v60, 1 }
 0x485   : > { %8120 = vmatprep.mubr.f32.mxu1 %v11858_v12  ;;  %v11878_v12 = vsel %vm438_vm1, %v3397_v53, %v13004_v46  ;;  %v4499_v46 = vld [vmem:[#allocation7 + $0x220] sm:$0xff] }
 0x486   : > { %13005 = vst [vmem:[#allocation56_spill] sm:$0xff] %v11878_v12  ;;  %v11884_v24 = vsel %vm438_vm1, %v13006_v20, %v3399_v58 }
 0x487   : > { %13007 = vst [vmem:[#allocation57_spill] sm:$0xff] %v11884_v24 }
 0x488   : > { %8121 = vmatmul.mubr.f32.gmra.mrb[26].mxu1 %v11865_v15  ;;  %v11890_v15 = vsel %vm438_vm1, %v3399_v58, %v13008_v16  ;;  %v4507_v16 = vld [vmem:[#allocation7 + $0x260] sm:$0xff] }
 0x489   : > { %8123 = vmatprep.mubr.f32.mxu1 %v11871_v54  ;;  %13009 = vst [vmem:[#allocation58_spill] sm:$0xff] %v11890_v15  ;;  %v4497_v54 = vld [vmem:[#allocation7 + $0x210] sm:$0xff] }
 0x48a   : > { %v9029_v53 = vpack.c.bf16 %v4498_v51, %v4497_v54  ;;  %v4504_v51 = vld [vmem:[#allocation7 + $0x248] sm:$0xff] }
 0x48c   : > { %8124 = vmatmul.mubr.f32.gmra.mrb[28].mxu1 %v11878_v12  ;;  %v4500_v12 = vld [vmem:[#allocation7 + $0x228] sm:$0xff] }
 0x48d   : > { %8126 = vmatprep.mubr.f32.mxu1 %v11884_v24  ;;  %v9033_v20 = vpack.c.bf16 %v4500_v12, %v4499_v46  ;;  %v4501_v24 = vld [vmem:[#allocation7 + $0x230] sm:$0xff]  ;;  %v4506_v12 = vld [vmem:[#allocation7 + $0x258] sm:$0xff] }
 0x48e   : > { %v9037_v58 = vpack.c.bf16 %v4502_v10, %v4501_v24  ;;  %v4508_v10 = vld [vmem:[#allocation7 + $0x268] sm:$0xff]  ;;  %v4510_v46 = vld [vmem:[#allocation7 + $0x278] sm:$0xff] }
 0x48f   : > { %v9049_v24 = vpack.c.bf16 %v4508_v10, %v4507_v16  ;;  %v13014_v16 = vld [vmem:[#allocation14_spill] sm:$0xff] }
 0x490   : > { %8127 = vmatmul.mubr.f32.gmra.mrb[30].mxu1 %v11890_v15  ;;  %v11919_v10 = vmax.f32 %v13014_v16, 0.0 }
 0x491   : > { %8161 = vmatprep.mubr.f32.mxu1 %v11485_v63  ;;  %v4503_v63 = vld [vmem:[#allocation7 + $0x240] sm:$0xff] }
 0x494   : > { %8162 = vmatmul.mubr.f32.vlgmr.msra.gmra.mrb[0].mxu1 %v11492_v29  ;;  %v9041_v29 = vpack.c.bf16 %v4504_v51, %v4503_v63  ;;  %v4769_v63 = vld [vmem:[#allocation7 + $0x288] sm:$0xff] }
 0x495   : > { %8164 = vmatprep.mubr.f32.mxu1 %v11470_v57  ;;  %9028 = vmatpush3.bf16.msra.mxu1 %v9025_v47  ;;  %v4505_v47 = vld [vmem:[#allocation7 + $0x250] sm:$0xff] }
 0x496   : > { %9030 = vmatprep.subr.bf16.mxu1 %v9029_v53  ;;  %v9045_v54 = vpack.c.bf16 %v4506_v12, %v4505_v47  ;;  %v13011_v47 = vld [vmem:[#allocation35_spill] sm:$0xff]  ;;  %v13012_v12 = vld [vmem:[#allocation36_spill] sm:$0xff] }
 0x498   : > { %8165 = vmatmul.mubr.f32.gmra.mrb[2].mxu1 %v11478_v33 }
 0x499   : > { %8167 = vmatprep.mubr.f32.mxu1 %v11503_v8  ;;  %9032 = vmatpush3.bf16.msra.mxu1 %v9029_v53  ;;  %v4509_v53 = vld [vmem:[#allocation7 + $0x270] sm:$0xff] }
 0x49a   : > { %9034 = vmatprep.subr.bf16.mxu1 %v9033_v20 }
 0x49c   : > { %8168 = vmatmul.mubr.f32.gmra.mrb[4].mxu1 %v11511_v19 }
 0x49d   : > { %8170 = vmatprep.mubr.f32.mxu1 %v11518_v41  ;;  %9036 = vmatpush3.bf16.msra.mxu1 %v9033_v20  ;;  %v9053_v20 = vpack.c.bf16 %v4510_v46, %v4509_v53  ;;  %v13016_v53 = vld [vmem:[#allocation39_spill] sm:$0xff]  ;;  %v13017_v46 = vld [vmem:[#allocation12_spill] sm:$0xff] }
 0x49e   : > { %9038 = vmatprep.subr.bf16.mxu1 %v9037_v58 }
 0x4a0   : > { %8171 = vmatmul.mubr.f32.gmra.mrb[6].mxu1 %v11526_v36 }
 0x4a1   : > { %8173 = vmatprep.mubr.f32.mxu1 %v11533_v31  ;;  %9040 = vmatpush3.bf16.msra.mxu1 %v9037_v58  ;;  %v4768_v58 = vld [vmem:[#allocation7 + $0x280] sm:$0xff] }
 0x4a2   : > { %9042 = vmatprep.subr.bf16.mxu1 %v9041_v29  ;;  %v9057_v51 = vpack.c.bf16 %v4769_v63, %v4768_v58  ;;  %v13018_v58 = vld [vmem:[#allocation40_spill] sm:$0xff]  ;;  %v12785_v63 = vrot.slane %v11919_v10, 1 }
 0x4a4   : > { %8174 = vmatmul.mubr.f32.gmra.mrb[8].mxu1 %v11541_v14 }
 0x4a5   : > { %8176 = vmatprep.mubr.f32.mxu1 %v11548_v32  ;;  %9044 = vmatpush3.bf16.msra.mxu1 %v9041_v29  ;;  %v13010_v29 = vld [vmem:[#allocation34_spill] sm:$0xff] }
 0x4a6   : > { %9046 = vmatprep.subr.bf16.mxu1 %v9045_v54 }
 0x4a8   : > { %8177 = vmatmul.mubr.f32.gmra.mrb[10].mxu1 %v11556_v34 }
 0x4a9   : > { %8179 = vmatprep.mubr.f32.mxu1 %v11563_v22  ;;  %9048 = vmatpush3.bf16.msra.mxu1 %v9045_v54  ;;  %v13013_v54 = vld [vmem:[#allocation37_spill] sm:$0xff] }
 0x4aa   : > { %9050 = vmatprep.subr.bf16.mxu1 %v9049_v24 }
 0x4ac   : > { %8180 = vmatmul.mubr.f32.gmra.mrb[12].mxu1 %v11573_v9 }
 0x4ad   : > { %8182 = vmatprep.mubr.f32.mxu1 %v11580_v7  ;;  %9052 = vmatpush3.bf16.msra.mxu1 %v9049_v24  ;;  %v13015_v24 = vld [vmem:[#allocation38_spill] sm:$0xff] }
 0x4ae   : > { %9054 = vmatprep.subr.bf16.mxu1 %v9053_v20 }
 0x4b0   : > { %8183 = vmatmul.mubr.f32.gmra.mrb[14].mxu1 %v11589_v11 }
 0x4b1   : > { %8185 = vmatprep.mubr.f32.mxu1 %v11596_v42  ;;  %9056 = vmatpush3.bf16.msra.mxu1 %v9053_v20  ;;  %v11924_v20 = vmax.f32 %v13017_v46, 0.0 }
 0x4b2   : > { %9058 = vmatprep.subr.bf16.mxu1 %v9057_v51 }
 0x4b4   : > { %8186 = vmatmul.mubr.f32.gmra.mrb[16].mxu1 %v11604_v62 }
 0x4b5   : > { %8188 = vmatprep.mubr.f32.mxu1 %v11611_v0 }
 0x4b8   : > { %8189 = vmatmul.mubr.f32.gmra.mrb[18].mxu1 %v11619_v49  ;;  %v4775_v49 = vld [vmem:[#allocation7 + $0x2b8] sm:$0xff] }
 0x4b9   : > { %8191 = vmatprep.mubr.f32.mxu1 %v11626_v55  ;;  %v4774_v55 = vld [vmem:[#allocation7 + $0x2b0] sm:$0xff] }
 0x4bc   : > { %8192 = vmatmul.mubr.f32.gmra.mrb[20].mxu1 %v13010_v29  ;;  %v13019_v29 = vld [vmem:[#allocation41_spill] sm:$0xff] }
 0x4bd   : > { %8194 = vmatprep.mubr.f32.mxu1 %v13011_v47  ;;  %v3320_v47 = vrot.slane %v11919_v10, 7 }
 0x4bf   : > { %v11935_v16 = vsel %vm341_vm0, %v12785_v63, %v3320_v47  ;;  %v13022_v63 = vld [vmem:[#allocation13_spill] sm:$0xff] }
 0x4c0   : > { %8195 = vmatmul.mubr.f32.gmra.mrb[22].mxu1 %v13012_v12  ;;  %v13020_v12 = vld [vmem:[#allocation42_spill] sm:$0xff]  ;;  %13021 = vst [vmem:[#allocation14_spill] sm:$0xff] %v11935_v16 }
 0x4c1   : > { %8197 = vmatprep.mubr.f32.mxu1 %v13013_v54  ;;  %v12789_v54 = vrot.slane %v11924_v20, 7 }
 0x4c3   : > { %v11941_v46 = vsel %vm341_vm0, %v3320_v47, %v12789_v54  ;;  %v13023_v47 = vld [vmem:[#allocation29_spill] sm:$0xff]  ;;  %v9069_v54 = vpack.c.bf16 %v4775_v49, %v4774_v55 }
 0x4c4   : > { %8198 = vmatmul.mubr.f32.gmra.mrb[24].mxu1 %v13015_v24  ;;  %v4773_v24 = vld [vmem:[#allocation7 + $0x2a8] sm:$0xff] }
 0x4c5   : > { %8200 = vmatprep.mubr.f32.mxu1 %v13016_v53  ;;  %v4771_v53 = vld [vmem:[#allocation7 + $0x298] sm:$0xff]  ;;  %v4781_v55 = vld [vmem:[#allocation7 + $0x2e8] sm:$0xff] }
 0x4c8   : > { %8201 = vmatmul.mubr.f32.gmra.mrb[26].mxu1 %v13018_v58  ;;  %v4770_v58 = vld [vmem:[#allocation7 + $0x290] sm:$0xff] }
 0x4c9   : > { %8203 = vmatprep.mubr.f32.mxu1 %v13019_v29  ;;  %v9061_v29 = vpack.c.bf16 %v4771_v53, %v4770_v58  ;;  %v4777_v53 = vld [vmem:[#allocation7 + $0x2c8] sm:$0xff]  ;;  %v4782_v58 = vld [vmem:[#allocation7 + $0x2f0] sm:$0xff] }
 0x4cc   : > { %8204 = vmatmul.mubr.f32.gmra.mrb[28].mxu1 %v13020_v12  ;;  %v4772_v12 = vld [vmem:[#allocation7 + $0x2a0] sm:$0xff] }
 0x4cd   : > { %8206 = vmatprep.mubr.f32.mxu1 %v11935_v16  ;;  %v9065_v16 = vpack.c.bf16 %v4773_v24, %v4772_v12  ;;  %v4779_v12 = vld [vmem:[#allocation7 + $0x2d8] sm:$0xff]  ;;  %v4780_v24 = vld [vmem:[#allocation7 + $0x2e0] sm:$0xff] }
 0x4ce   : > { %v9081_v49 = vpack.c.bf16 %v4781_v55, %v4780_v24  ;;  %v5045_v55 = vld [vmem:[#allocation7 + $0x320] sm:$0xff] }
 0x4d0   : > { %8207 = vmatmul.mubr.f32.gmra.mrb[30].mxu1 %v11941_v46 }
 0x4d1   : > { %8241 = vmatprep.mubr.f32.mxu1 %v11303_v4  ;;  %v4776_v4 = vld [vmem:[#allocation7 + $0x2c0] sm:$0xff] }
 0x4d4   : > { %8242 = vmatmul.mubr.f32.vlgmr.msra.gmra.mrb[0].mxu1 %v11307_v26  ;;  %v9073_v26 = vpack.c.bf16 %v4777_v53, %v4776_v4  ;;  %v5041_v4 = vld [vmem:[#allocation7 + $0x300] sm:$0xff]  ;;  %v5042_v53 = vld [vmem:[#allocation7 + $0x308] sm:$0xff] }
 0x4d5   : > { %8244 = vmatprep.mubr.f32.mxu1 %v13022_v63  ;;  %9060 = vmatpush3.bf16.msra.mxu1 %v9057_v51  ;;  %v4778_v51 = vld [vmem:[#allocation7 + $0x2d0] sm:$0xff] }
 0x4d6   : > { %9062 = vmatprep.subr.bf16.mxu1 %v9061_v29 }
 0x4d8   : > { %8245 = vmatmul.mubr.f32.gmra.mrb[2].mxu1 %v13023_v47 }
 0x4d9   : > { %8247 = vmatprep.mubr.f32.mxu1 %v11321_v2  ;;  %9064 = vmatpush3.bf16.msra.mxu1 %v9061_v29  ;;  %v9077_v29 = vpack.c.bf16 %v4779_v12, %v4778_v51  ;;  %v5043_v51 = vld [vmem:[#allocation7 + $0x310] sm:$0xff]  ;;  %v5044_v12 = vld [vmem:[#allocation7 + $0x318] sm:$0xff] }
 0x4da   : > { %9066 = vmatprep.subr.bf16.mxu1 %v9065_v16  ;;  %v9093_v24 = vpack.c.bf16 %v5044_v12, %v5043_v51  ;;  %v5050_v51 = vld [vmem:[#allocation7 + $0x348] sm:$0xff]  ;;  %v13029_v12 = vld [vmem:[#allocation48_spill] sm:$0xff] }
 0x4dc   : > { %8248 = vmatmul.mubr.f32.gmra.mrb[4].mxu1 %v11328_v28 }
 0x4dd   : > { %8250 = vmatprep.mubr.f32.mxu1 %v11333_v18  ;;  %9068 = vmatpush3.bf16.msra.mxu1 %v9065_v16  ;;  %v4783_v16 = vld [vmem:[#allocation7 + $0x2f8] sm:$0xff] }
 0x4de   : > { %9070 = vmatprep.subr.bf16.mxu1 %v9069_v54 }
 0x4e0   : > { %8251 = vmatmul.mubr.f32.gmra.mrb[6].mxu1 %v11340_v39 }
 0x4e1   : > { %8253 = vmatprep.mubr.f32.mxu1 %v11345_v59  ;;  %9072 = vmatpush3.bf16.msra.mxu1 %v9069_v54  ;;  %v9085_v54 = vpack.c.bf16 %v4783_v16, %v4782_v58  ;;  %v13025_v58 = vld [vmem:[#allocation46_spill] sm:$0xff]  ;;  %v13026_v16 = vld [vmem:[#allocation43_spill] sm:$0xff] }
 0x4e2   : > { %9074 = vmatprep.subr.bf16.mxu1 %v9073_v26 }
 0x4e4   : > { %8254 = vmatmul.mubr.f32.gmra.mrb[8].mxu1 %v11352_v25 }
 0x4e5   : > { %8256 = vmatprep.mubr.f32.mxu1 %v11357_v1  ;;  %9076 = vmatpush3.bf16.msra.mxu1 %v9073_v26  ;;  %v9089_v26 = vpack.c.bf16 %v5042_v53, %v5041_v4  ;;  %v5047_v4 = vld [vmem:[#allocation7 + $0x330] sm:$0xff]  ;;  %v5048_v53 = vld [vmem:[#allocation7 + $0x338] sm:$0xff] }
 0x4e6   : > { %9078 = vmatprep.subr.bf16.mxu1 %v9077_v29 }
 0x4e8   : > { %8257 = vmatmul.mubr.f32.gmra.mrb[10].mxu1 %v11366_v45 }
 0x4e9   : > { %8259 = vmatprep.mubr.f32.mxu1 %v11371_v6  ;;  %9080 = vmatpush3.bf16.msra.mxu1 %v9077_v29  ;;  %v13024_v29 = vld [vmem:[#allocation45_spill] sm:$0xff] }
 0x4ea   : > { %9082 = vmatprep.subr.bf16.mxu1 %v9081_v49 }
 0x4ec   : > { %8260 = vmatmul.mubr.f32.gmra.mrb[12].mxu1 %v11379_v37 }
 0x4ed   : > { %8262 = vmatprep.mubr.f32.mxu1 %v11384_v38  ;;  %9084 = vmatpush3.bf16.msra.mxu1 %v9081_v49  ;;  %v5046_v49 = vld [vmem:[#allocation7 + $0x328] sm:$0xff] }
 0x4ee   : > { %9086 = vmatprep.subr.bf16.mxu1 %v9085_v54 }
 0x4f0   : > { %8263 = vmatmul.mubr.f32.gmra.mrb[14].mxu1 %v11391_v17 }
 0x4f1   : > { %8265 = vmatprep.mubr.f32.mxu1 %v11396_v61  ;;  %9088 = vmatpush3.bf16.msra.mxu1 %v9085_v54  ;;  %v9097_v54 = vpack.c.bf16 %v5046_v49, %v5045_v55  ;;  %v5052_v55 = vld [vmem:[#allocation7 + $0x358] sm:$0xff]  ;;  %v13031_v49 = vld [vmem:[#allocation50_spill] sm:$0xff] }
 0x4f2   : > { %9090 = vmatprep.subr.bf16.mxu1 %v9089_v26 }
 0x4f4   : > { %8266 = vmatmul.mubr.f32.gmra.mrb[16].mxu1 %v11403_v23 }
 0x4f5   : > { %8268 = vmatprep.mubr.f32.mxu1 %v11408_v5 }
 0x4f8   : > { %8269 = vmatmul.mubr.f32.gmra.mrb[18].mxu1 %v11415_v30 }
 0x4f9   : > { %8271 = vmatprep.mubr.f32.mxu1 %v11420_v40 }
 0x4fc   : > { %8272 = vmatmul.mubr.f32.gmra.mrb[20].mxu1 %v11427_v48 }
 0x4fd   : > { %8274 = vmatprep.mubr.f32.mxu1 %v11432_v3 }
 0x500   : > { %8275 = vmatmul.mubr.f32.gmra.mrb[22].mxu1 %v11439_v50 }
 0x501   : > { %8277 = vmatprep.mubr.f32.mxu1 %v11442_v21 }
 0x504   : > { %8278 = vmatmul.mubr.f32.gmra.mrb[24].mxu1 %v11447_v35 }
 0x505   : > { %8280 = vmatprep.mubr.f32.mxu1 %v11449_v52  ;;  %v13030_v52 = vld [vmem:[#allocation49_spill] sm:$0xff] }
 0x508   : > { %8281 = vmatmul.mubr.f32.gmra.mrb[26].mxu1 %v11453_v27  ;;  %v9101_v27 = vpack.c.bf16 %v5048_v53, %v5047_v4  ;;  %v5054_v4 = vld [vmem:[#allocation7 + $0x368] sm:$0xff]  ;;  %v13033_v53 = vld [vmem:[#allocation15_spill] sm:$0xff] }
 0x509   : > { %8283 = vmatprep.mubr.f32.mxu1 %v11456_v13  ;;  %v13028_v13 = vld [vmem:[#allocation47_spill] sm:$0xff] }
 0x50c   : > { %8284 = vmatmul.mubr.f32.gmra.mrb[28].mxu1 %v11463_v60  ;;  %v13027_v60 = vld [vmem:[#allocation44_spill] sm:$0xff] }
 0x50d   : > { %8286 = vmatprep.mubr.f32.mxu1 %v11919_v10 }
 0x510   : > { %8287 = vmatmul.mubr.f32.gmra.mrb[30].mxu1 %v11924_v20 }
 0x511   : > { %8321 = vmatprep.mubr.f32.mxu1 %v13024_v29  ;;  %v5049_v29 = vld [vmem:[#allocation7 + $0x340] sm:$0xff] }
 0x514   : > { %8322 = vmatmul.mubr.f32.vlgmr.msra.gmra.mrb[0].mxu1 %v13025_v58  ;;  %v5051_v58 = vld [vmem:[#allocation7 + $0x350] sm:$0xff] }
 0x515   : > { %8324 = vmatprep.mubr.f32.mxu1 %v13026_v16  ;;  %9092 = vmatpush3.bf16.msra.mxu1 %v9089_v26  ;;  %v9105_v26 = vpack.c.bf16 %v5050_v51, %v5049_v29  ;;  %v13032_v16 = vld [vmem:[#allocation51_spill] sm:$0xff]  ;;  %v5314_v51 = vld [vmem:[#allocation7 + $0x380] sm:$0xff] }
 0x516   : > { %9094 = vmatprep.subr.bf16.mxu1 %v9093_v24  ;;  %v5056_v29 = vld [vmem:[#allocation7 + $0x378] sm:$0xff] }
 0x518   : > { %8325 = vmatmul.mubr.f32.gmra.mrb[2].mxu1 %v13027_v60 }
 0x519   : > { %8327 = vmatprep.mubr.f32.mxu1 %v13028_v13  ;;  %9096 = vmatpush3.bf16.msra.mxu1 %v9093_v24  ;;  %v9109_v24 = vpack.c.bf16 %v5052_v55, %v5051_v58  ;;  %v5053_v13 = vld [vmem:[#allocation7 + $0x360] sm:$0xff]  ;;  %v5315_v58 = vld [vmem:[#allocation7 + $0x388] sm:$0xff] }
 0x51a   : > { %9098 = vmatprep.subr.bf16.mxu1 %v9097_v54  ;;  %v13034_v55 = vld [vmem:[#allocation17_spill] sm:$0xff] }
 0x51c   : > { %8328 = vmatmul.mubr.f32.gmra.mrb[4].mxu1 %v13029_v12 }
 0x51d   : > { %8330 = vmatprep.mubr.f32.mxu1 %v13030_v52  ;;  %9100 = vmatpush3.bf16.msra.mxu1 %v9097_v54  ;;  %v9113_v54 = vpack.c.bf16 %v5054_v4, %v5053_v13  ;;  %v5055_v52 = vld [vmem:[#allocation7 + $0x370] sm:$0xff]  ;;  %v13037_v13 = vld [vmem:[#allocation20_spill] sm:$0xff]  ;;  %v13038_v4 = vld [vmem:[#allocation21_spill] sm:$0xff] }
 0x51e   : > { %9102 = vmatprep.subr.bf16.mxu1 %v9101_v27 }
 0x520   : > { %8331 = vmatmul.mubr.f32.gmra.mrb[6].mxu1 %v13031_v49 }
 0x521   : > { %8333 = vmatprep.mubr.f32.mxu1 %v13032_v16  ;;  %9104 = vmatpush3.bf16.msra.mxu1 %v9101_v27  ;;  %v9117_v27 = vpack.c.bf16 %v5056_v29, %v5055_v52  ;;  %v13035_v16 = vld [vmem:[#allocation18_spill] sm:$0xff]  ;;  %v13040_v52 = vld [vmem:[#allocation23_spill] sm:$0xff]  ;;  %v13041_v29 = vld [vmem:[#allocation24_spill] sm:$0xff] }
 0x522   : > { %9106 = vmatprep.subr.bf16.mxu1 %v9105_v26 }
 0x524   : > { %8334 = vmatmul.mubr.f32.gmra.mrb[8].mxu1 %v13033_v53 }
 0x525   : > { %8336 = vmatprep.mubr.f32.mxu1 %v11767_v43  ;;  %9108 = vmatpush3.bf16.msra.mxu1 %v9105_v26  ;;  %v9121_v26 = vpack.c.bf16 %v5315_v58, %v5314_v51  ;;  %v13036_v43 = vld [vmem:[#allocation19_spill] sm:$0xff]  ;;  %v13045_v51 = vld [vmem:[#allocation53_spill] sm:$0xff]  ;;  %v13046_v58 = vld [vmem:[#allocation54_spill] sm:$0xff] }
 0x526   : > { %9110 = vmatprep.subr.bf16.mxu1 %v9109_v24 }
 0x528   : > { %8337 = vmatmul.mubr.f32.gmra.mrb[10].mxu1 %v11774_v44 }
 0x529   : > { %8339 = vmatprep.mubr.f32.mxu1 %v11780_v56  ;;  %9112 = vmatpush3.bf16.msra.mxu1 %v9109_v24  ;;  %v13039_v24 = vld [vmem:[#allocation22_spill] sm:$0xff] }
 0x52a   : > { %9114 = vmatprep.subr.bf16.mxu1 %v9113_v54 }
 0x52c   : > { %8340 = vmatmul.mubr.f32.gmra.mrb[12].mxu1 %v13034_v55  ;;  %v13042_v55 = vld [vmem:[#allocation25_spill] sm:$0xff] }
 0x52d   : > { %8342 = vmatprep.mubr.f32.mxu1 %v13035_v16  ;;  %9116 = vmatpush3.bf16.msra.mxu1 %v9113_v54  ;;  %v13043_v16 = vld [vmem:[#allocation26_spill] sm:$0xff]  ;;  %v13044_v54 = vld [vmem:[#allocation52_spill] sm:$0xff] }
 0x52e   : > { %9118 = vmatprep.subr.bf16.mxu1 %v9117_v27 }
 0x530   : > { %8343 = vmatmul.mubr.f32.gmra.mrb[14].mxu1 %v13036_v43 }
 0x531   : > { %8345 = vmatprep.mubr.f32.mxu1 %v13037_v13  ;;  %9120 = vmatpush3.bf16.msra.mxu1 %v9117_v27  ;;  %v13047_v27 = vld [vmem:[#allocation55_spill] sm:$0xff]  ;;  %v13048_v13 = vld [vmem:[#allocation56_spill] sm:$0xff] }
 0x532   : > { %9122 = vmatprep.subr.bf16.mxu1 %v9121_v26 }
 0x534   : > { %8346 = vmatmul.mubr.f32.gmra.mrb[16].mxu1 %v13038_v4  ;;  %v13049_v4 = vld [vmem:[#allocation57_spill] sm:$0xff] }
 0x535   : > { %8348 = vmatprep.mubr.f32.mxu1 %v13039_v24  ;;  %v3401_v24 = vrot.slane %v11924_v20, 1 }
 0x538   : > { %8349 = vmatmul.mubr.f32.gmra.mrb[18].mxu1 %v13040_v52 }
 0x539   : > { %8351 = vmatprep.mubr.f32.mxu1 %v13041_v29  ;;  %v5321_v29 = vld [vmem:[#allocation7 + $0x3b8] sm:$0xff] }
 0x53c   : > { %8352 = vmatmul.mubr.f32.gmra.mrb[20].mxu1 %v13042_v55  ;;  %v13050_v55 = vrot.slane %v11919_v10, 1 }
 0x53d   : > { %8354 = vmatprep.mubr.f32.mxu1 %v13043_v16 }
 0x53e   : > { %v12010_v16 = vsel %vm438_vm1, %v13050_v55, %v3401_v24 }
 0x53f   : > { %13051 = vst [vmem:[#allocation12_spill] sm:$0xff] %v12010_v16 }
 0x540   : > { %8355 = vmatmul.mubr.f32.gmra.mrb[22].mxu1 %v13044_v54  ;;  %v5319_v54 = vld [vmem:[#allocation7 + $0x3a8] sm:$0xff] }
 0x541   : > { %8357 = vmatprep.mubr.f32.mxu1 %v13045_v51  ;;  %v13052_v51 = vrot.slane %v11924_v20, 7 }
 0x544   : > { %8358 = vmatmul.mubr.f32.gmra.mrb[24].mxu1 %v13046_v58  ;;  %v12016_v58 = vsel %vm438_vm1, %v3401_v24, %v13052_v51  ;;  %v13060_v51 = vld [vmem:[#allocation39_spill] sm:$0xff] }
 0x545   : > { %8360 = vmatprep.mubr.f32.mxu1 %v13047_v27  ;;  %v5316_v27 = vld [vmem:[#allocation7 + $0x390] sm:$0xff] }
 0x548   : > { %8361 = vmatmul.mubr.f32.gmra.mrb[26].mxu1 %v13048_v13  ;;  %v5317_v13 = vld [vmem:[#allocation7 + $0x398] sm:$0xff] }
 0x549   : > { %8363 = vmatprep.mubr.f32.mxu1 %v13049_v4  ;;  %v9125_v4 = vpack.c.bf16 %v5317_v13, %v5316_v27  ;;  %v5323_v13 = vld [vmem:[#allocation7 + $0x3c8] sm:$0xff]  ;;  %v13063_v27 = vld [vmem:[#allocation42_spill] sm:$0xff] }
 0x54c   : > { %8364 = vmatmul.mubr.f32.gmra.mrb[28].mxu1 %v11890_v15  ;;  %v5318_v15 = vld [vmem:[#allocation7 + $0x3a0] sm:$0xff] }
 0x54d   : > { %8366 = vmatprep.mubr.f32.mxu1 %v12010_v16  ;;  %v9129_v55 = vpack.c.bf16 %v5319_v54, %v5318_v15  ;;  %v5320_v16 = vld [vmem:[#allocation7 + $0x3b0] sm:$0xff]  ;;  %v5325_v15 = vld [vmem:[#allocation7 + $0x3d8] sm:$0xff] }
 0x54e   : > { %v9133_v24 = vpack.c.bf16 %v5321_v29, %v5320_v16  ;;  %v5327_v16 = vld [vmem:[#allocation7 + $0x3e8] sm:$0xff]  ;;  %v13056_v29 = vld [vmem:[#allocation35_spill] sm:$0xff]  ;;  %v13059_v54 = vld [vmem:[#allocation38_spill] sm:$0xff] }
 0x550   : > { %8367 = vmatmul.mubr.f32.gmra.mrb[30].mxu1 %v12016_v58 }
 0x551   : > { %8401 = vmatprep.mubr.f32.mxu1 %v11470_v57  ;;  %v5322_v57 = vld [vmem:[#allocation7 + $0x3c0] sm:$0xff] }
 0x554   : > { %8402 = vmatmul.mubr.f32.vlgmr.msra.gmra.mrb[0].mxu1 %v11478_v33  ;;  %v9137_v33 = vpack.c.bf16 %v5323_v13, %v5322_v57  ;;  %v5590_v57 = vld [vmem:[#allocation7 + $0x418] sm:$0xff] }
 0x555   : > { %8404 = vmatprep.mubr.f32.mxu1 %v11503_v8  ;;  %9124 = vmatpush3.bf16.msra.mxu1 %v9121_v26  ;;  %v5324_v8 = vld [vmem:[#allocation7 + $0x3d0] sm:$0xff]  ;;  %v5329_v26 = vld [vmem:[#allocation7 + $0x3f8] sm:$0xff] }
 0x556   : > { %9126 = vmatprep.subr.bf16.mxu1 %v9125_v4 }
 0x558   : > { %8405 = vmatmul.mubr.f32.gmra.mrb[2].mxu1 %v11511_v19  ;;  %v9141_v19 = vpack.c.bf16 %v5325_v15, %v5324_v8  ;;  %v5592_v8 = vld [vmem:[#allocation7 + $0x428] sm:$0xff] }
 0x559   : > { %8407 = vmatprep.mubr.f32.mxu1 %v11518_v41  ;;  %9128 = vmatpush3.bf16.msra.mxu1 %v9125_v4  ;;  %v5326_v41 = vld [vmem:[#allocation7 + $0x3e0] sm:$0xff]  ;;  %v5588_v4 = vld [vmem:[#allocation7 + $0x408] sm:$0xff] }
 0x55a   : > { %9130 = vmatprep.subr.bf16.mxu1 %v9129_v55 }
 0x55c   : > { %8408 = vmatmul.mubr.f32.gmra.mrb[4].mxu1 %v11526_v36  ;;  %v9145_v36 = vpack.c.bf16 %v5327_v16, %v5326_v41  ;;  %v5596_v16 = vld [vmem:[#allocation7 + $0x448] sm:$0xff] }
 0x55d   : > { %8410 = vmatprep.mubr.f32.mxu1 %v11533_v31  ;;  %9132 = vmatpush3.bf16.msra.mxu1 %v9129_v55  ;;  %v5328_v31 = vld [vmem:[#allocation7 + $0x3f0] sm:$0xff] }
 0x55e   : > { %9134 = vmatprep.subr.bf16.mxu1 %v9133_v24  ;;  %v13064_v55 = vld [vmem:[#allocation14_spill] sm:$0xff] }
 0x560   : > { %8411 = vmatmul.mubr.f32.gmra.mrb[6].mxu1 %v11541_v14  ;;  %v9149_v14 = vpack.c.bf16 %v5329_v26, %v5328_v31  ;;  %v5600_v31 = vld [vmem:[#allocation7 + $0x468] sm:$0xff]  ;;  %v5602_v26 = vld [vmem:[#allocation7 + $0x478] sm:$0xff] }
 0x561   : > { %8413 = vmatprep.mubr.f32.mxu1 %v11548_v32  ;;  %9136 = vmatpush3.bf16.msra.mxu1 %v9133_v24  ;;  %v5587_v32 = vld [vmem:[#allocation7 + $0x400] sm:$0xff]  ;;  %v5589_v24 = vld [vmem:[#allocation7 + $0x410] sm:$0xff] }
 0x562   : > { %9138 = vmatprep.subr.bf16.mxu1 %v9137_v33  ;;  %v9157_v13 = vpack.c.bf16 %v5590_v57, %v5589_v24 }
 0x564   : > { %8414 = vmatmul.mubr.f32.gmra.mrb[8].mxu1 %v11556_v34  ;;  %v13053_v34 = vld [vmem:[#allocation32_spill] sm:$0xff] }
 0x565   : > { %8416 = vmatprep.mubr.f32.mxu1 %v11563_v22  ;;  %9140 = vmatpush3.bf16.msra.mxu1 %v9137_v33  ;;  %v9153_v22 = vpack.c.bf16 %v5588_v4, %v5587_v32  ;;  %v5591_v33 = vld [vmem:[#allocation7 + $0x420] sm:$0xff] }
 0x566   : > { %9142 = vmatprep.subr.bf16.mxu1 %v9141_v19  ;;  %v9161_v15 = vpack.c.bf16 %v5592_v8, %v5591_v33 }
 0x568   : > { %8417 = vmatmul.mubr.f32.gmra.mrb[10].mxu1 %v11573_v9  ;;  %v13055_v9 = vld [vmem:[#allocation34_spill] sm:$0xff] }
 0x569   : > { %8419 = vmatprep.mubr.f32.mxu1 %v11580_v7  ;;  %9144 = vmatpush3.bf16.msra.mxu1 %v9141_v19  ;;  %v13054_v7 = vld [vmem:[#allocation33_spill] sm:$0xff]  ;;  %v5593_v19 = vld [vmem:[#allocation7 + $0x430] sm:$0xff] }
 0x56a   : > { %9146 = vmatprep.subr.bf16.mxu1 %v9145_v36 }
 0x56c   : > { %8420 = vmatmul.mubr.f32.gmra.mrb[12].mxu1 %v11589_v11  ;;  %v13057_v11 = vld [vmem:[#allocation36_spill] sm:$0xff] }
 0x56d   : > { %8422 = vmatprep.mubr.f32.mxu1 %v11596_v42  ;;  %9148 = vmatpush3.bf16.msra.mxu1 %v9145_v36  ;;  %v13058_v42 = vld [vmem:[#allocation37_spill] sm:$0xff]  ;;  %v5598_v36 = vld [vmem:[#allocation7 + $0x458] sm:$0xff] }
 0x56e   : > { %9150 = vmatprep.subr.bf16.mxu1 %v9149_v14 }
 0x570   : > { %8423 = vmatmul.mubr.f32.gmra.mrb[14].mxu1 %v11604_v62  ;;  %v13061_v62 = vld [vmem:[#allocation40_spill] sm:$0xff] }
 0x571   : > { %8425 = vmatprep.mubr.f32.mxu1 %v11611_v0  ;;  %9152 = vmatpush3.bf16.msra.mxu1 %v9149_v14  ;;  %v13062_v0 = vld [vmem:[#allocation41_spill] sm:$0xff] }
 0x572   : > { %9154 = vmatprep.subr.bf16.mxu1 %v9153_v22 }
 0x574   : > { %8426 = vmatmul.mubr.f32.gmra.mrb[16].mxu1 %v13053_v34 }
 0x575   : > { %8428 = vmatprep.mubr.f32.mxu1 %v13054_v7 }
 0x578   : > { %8429 = vmatmul.mubr.f32.gmra.mrb[18].mxu1 %v13055_v9 }
 0x579   : > { %8431 = vmatprep.mubr.f32.mxu1 %v13056_v29 }
 0x57c   : > { %8432 = vmatmul.mubr.f32.gmra.mrb[20].mxu1 %v13057_v11 }
 0x57d   : > { %8434 = vmatprep.mubr.f32.mxu1 %v13058_v42 }
 0x580   : > { %8435 = vmatmul.mubr.f32.gmra.mrb[22].mxu1 %v13059_v54 }
 0x581   : > { %8437 = vmatprep.mubr.f32.mxu1 %v13060_v51 }
 0x584   : > { %8438 = vmatmul.mubr.f32.gmra.mrb[24].mxu1 %v13061_v62 }
 0x585   : > { %8440 = vmatprep.mubr.f32.mxu1 %v13062_v0 }
 0x588   : > { %8441 = vmatmul.mubr.f32.gmra.mrb[26].mxu1 %v13063_v27 }
 0x589   : > { %8443 = vmatprep.mubr.f32.mxu1 %v13064_v55 }
 0x58c   : > { %8444 = vmatmul.mubr.f32.gmra.mrb[28].mxu1 %v11941_v46  ;;  %v5594_v46 = vld [vmem:[#allocation7 + $0x438] sm:$0xff] }
 0x58d   : > { %8446 = vmatprep.mubr.f32.mxu1 %v13062_v0  ;;  %v9165_v41 = vpack.c.bf16 %v5594_v46, %v5593_v19 }
 0x590   : > { %8447 = vmatmul.mubr.f32.gmra.mrb[30].mxu1 %v13063_v27 }
 0x591   : > { %8481 = vmatprep.mubr.f32.mxu1 %v13022_v63  ;;  %v5595_v63 = vld [vmem:[#allocation7 + $0x440] sm:$0xff] }
 0x594   : > { %8482 = vmatmul.mubr.f32.vlgmr.msra.gmra.mrb[0].mxu1 %v13023_v47  ;;  %v5597_v47 = vld [vmem:[#allocation7 + $0x450] sm:$0xff] }
 0x595   : > { %8484 = vmatprep.mubr.f32.mxu1 %v11321_v2  ;;  %9156 = vmatpush3.bf16.msra.mxu1 %v9153_v22  ;;  %v9169_v2 = vpack.c.bf16 %v5596_v16, %v5595_v63 }
 0x596   : > { %9158 = vmatprep.subr.bf16.mxu1 %v9157_v13 }
 0x598   : > { %8485 = vmatmul.mubr.f32.gmra.mrb[2].mxu1 %v11328_v28  ;;  %v9173_v28 = vpack.c.bf16 %v5598_v36, %v5597_v47 }
 0x599   : > { %8487 = vmatprep.mubr.f32.mxu1 %v11333_v18  ;;  %9160 = vmatpush3.bf16.msra.mxu1 %v9157_v13  ;;  %v5599_v18 = vld [vmem:[#allocation7 + $0x460] sm:$0xff] }
 0x59a   : > { %9162 = vmatprep.subr.bf16.mxu1 %v9161_v15 }
 0x59c   : > { %8488 = vmatmul.mubr.f32.gmra.mrb[4].mxu1 %v11340_v39  ;;  %v9177_v39 = vpack.c.bf16 %v5600_v31, %v5599_v18 }
 0x59d   : > { %8490 = vmatprep.mubr.f32.mxu1 %v11345_v59  ;;  %9164 = vmatpush3.bf16.msra.mxu1 %v9161_v15  ;;  %v5601_v59 = vld [vmem:[#allocation7 + $0x470] sm:$0xff] }
 0x59e   : > { %9166 = vmatprep.subr.bf16.mxu1 %v9165_v41 }
 0x5a0   : > { %8491 = vmatmul.mubr.f32.gmra.mrb[6].mxu1 %v11352_v25  ;;  %v9181_v25 = vpack.c.bf16 %v5602_v26, %v5601_v59 }
 0x5a1   : > { %8493 = vmatprep.mubr.f32.mxu1 %v11357_v1  ;;  %9168 = vmatpush3.bf16.msra.mxu1 %v9165_v41  ;;  %v13065_v1 = vld [vmem:[#allocation30_spill] sm:$0xff] }
 0x5a2   : > { %9170 = vmatprep.subr.bf16.mxu1 %v9169_v2 }
 0x5a4   : > { %8494 = vmatmul.mubr.f32.gmra.mrb[8].mxu1 %v11366_v45  ;;  %v13066_v45 = vld [vmem:[#allocation27_spill] sm:$0xff] }
 0x5a5   : > { %8496 = vmatprep.mubr.f32.mxu1 %v11371_v6  ;;  %9172 = vmatpush3.bf16.msra.mxu1 %v9169_v2  ;;  %v13067_v6 = vld [vmem:[#allocation28_spill] sm:$0xff] }
 0x5a6   : > { %9174 = vmatprep.subr.bf16.mxu1 %v9173_v28 }
 0x5a8   : > { %8497 = vmatmul.mubr.f32.gmra.mrb[10].mxu1 %v11379_v37  ;;  %v13068_v37 = vld [vmem:[#allocation31_spill] sm:$0xff] }
 0x5a9   : > { %8499 = vmatprep.mubr.f32.mxu1 %v11384_v38  ;;  %9176 = vmatpush3.bf16.msra.mxu1 %v9173_v28  ;;  %v13069_v38 = vld [vmem:[#allocation43_spill] sm:$0xff] }
 0x5aa   : > { %9178 = vmatprep.subr.bf16.mxu1 %v9177_v39 }
 0x5ac   : > { %8500 = vmatmul.mubr.f32.gmra.mrb[12].mxu1 %v11391_v17  ;;  %v13070_v17 = vld [vmem:[#allocation47_spill] sm:$0xff] }
 0x5ad   : > { %8502 = vmatprep.mubr.f32.mxu1 %v11396_v61  ;;  %9180 = vmatpush3.bf16.msra.mxu1 %v9177_v39  ;;  %v13071_v61 = vld [vmem:[#allocation49_spill] sm:$0xff] }
 0x5ae   : > { %9182 = vmatprep.subr.bf16.mxu1 %v9181_v25 }
 0x5b0   : > { %8503 = vmatmul.mubr.f32.gmra.mrb[14].mxu1 %v11403_v23  ;;  %v13072_v23 = vld [vmem:[#allocation51_spill] sm:$0xff] }
 0x5b1   : > { %8505 = vmatprep.mubr.f32.mxu1 %v11408_v5  ;;  %9184 = vmatpush3.bf16.msra.mxu1 %v9181_v25  ;;  %v13073_v5 = vld [vmem:[#allocation16_spill] sm:$0xff] }
 0x5b4   : > { %8506 = vmatmul.mubr.f32.gmra.mrb[16].mxu1 %v11415_v30  ;;  %v13074_v30 = vld [vmem:[#allocation17_spill] sm:$0xff] }
 0x5b5   : > { %8508 = vmatprep.mubr.f32.mxu1 %v11420_v40  ;;  %v13075_v40 = vld [vmem:[#allocation18_spill] sm:$0xff] }
 0x5b8   : > { %8509 = vmatmul.mubr.f32.gmra.mrb[18].mxu1 %v11427_v48  ;;  %v13076_v48 = vld [vmem:[#allocation20_spill] sm:$0xff] }
 0x5b9   : > { %8511 = vmatprep.mubr.f32.mxu1 %v11432_v3  ;;  %v13077_v3 = vld [vmem:[#allocation21_spill] sm:$0xff] }
 0x5bc   : > { %8512 = vmatmul.mubr.f32.gmra.mrb[20].mxu1 %v11439_v50  ;;  %v13078_v50 = vld [vmem:[#allocation22_spill] sm:$0xff] }
 0x5bd   : > { %8514 = vmatprep.mubr.f32.mxu1 %v11442_v21  ;;  %v13079_v21 = vld [vmem:[#allocation24_spill] sm:$0xff] }
 0x5c0   : > { %8515 = vmatmul.mubr.f32.gmra.mrb[22].mxu1 %v11447_v35  ;;  %v13080_v35 = vld [vmem:[#allocation25_spill] sm:$0xff] }
 0x5c1   : > { %8517 = vmatprep.mubr.f32.mxu1 %v13065_v1 }
 0x5c4   : > { %8518 = vmatmul.mubr.f32.gmra.mrb[24].mxu1 %v13066_v45 }
 0x5c5   : > { %8520 = vmatprep.mubr.f32.mxu1 %v13067_v6 }
 0x5c8   : > { %8521 = vmatmul.mubr.f32.gmra.mrb[26].mxu1 %v13068_v37 }
 0x5c9   : > { %8523 = vmatprep.mubr.f32.mxu1 %v11919_v10  ;;  %v13084_v10 = vld [vmem:[#allocation54_spill] sm:$0xff] }
 0x5cc   : > { %8524 = vmatmul.mubr.f32.gmra.mrb[28].mxu1 %v11924_v20  ;;  %v13086_v20 = vld [vmem:[#allocation56_spill] sm:$0xff] }
 0x5cd   : > { %8526 = vmatprep.mubr.f32.mxu1 %v13067_v6 }
 0x5d0   : > { %8527 = vmatmul.mubr.f32.gmra.mrb[30].mxu1 %v13068_v37 }
 0x5d1   : > { %8561 = vmatprep.mubr.f32.mxu1 %v13069_v38 }
 0x5d4   : > { %8562 = vmatmul.mubr.f32.vlgmr.msra.gmra.mrb[0].mxu1 %v13027_v60  ;;  %v13081_v60 = vld [vmem:[#allocation26_spill] sm:$0xff] }
 0x5d5   : > { %8564 = vmatprep.mubr.f32.mxu1 %v13070_v17 }
 0x5d8   : > { %8565 = vmatmul.mubr.f32.gmra.mrb[2].mxu1 %v13029_v12  ;;  %v13087_v12 = vld [vmem:[#allocation57_spill] sm:$0xff] }
 0x5d9   : > { %8567 = vmatprep.mubr.f32.mxu1 %v13071_v61 }
 0x5dc   : > { %8568 = vmatmul.mubr.f32.gmra.mrb[4].mxu1 %v13031_v49  ;;  %v13088_v49 = vld [vmem:[#allocation58_spill] sm:$0xff] }
 0x5dd   : > { %8570 = vmatprep.mubr.f32.mxu1 %v13072_v23 }
 0x5e0   : > { %8571 = vmatmul.mubr.f32.gmra.mrb[6].mxu1 %v13033_v53  ;;  %v13089_v53 = vld [vmem:[#allocation12_spill] sm:$0xff] }
 0x5e1   : > { %8573 = vmatprep.mubr.f32.mxu1 %v13073_v5 }
 0x5e4   : > { %8574 = vmatmul.mubr.f32.gmra.mrb[8].mxu1 %v11774_v44  ;;  %v13082_v44 = vld [vmem:[#allocation52_spill] sm:$0xff] }
 0x5e5   : > { %8576 = vmatprep.mubr.f32.mxu1 %v11780_v56  ;;  %v13083_v56 = vld [vmem:[#allocation53_spill] sm:$0xff] }
 0x5e8   : > { %8577 = vmatmul.mubr.f32.gmra.mrb[10].mxu1 %v13074_v30 }
 0x5e9   : > { %8579 = vmatprep.mubr.f32.mxu1 %v13075_v40 }
 0x5ec   : > { %8580 = vmatmul.mubr.f32.gmra.mrb[12].mxu1 %v13036_v43  ;;  %v13085_v43 = vld [vmem:[#allocation55_spill] sm:$0xff] }
 0x5ed   : > { %8582 = vmatprep.mubr.f32.mxu1 %v13076_v48 }
 0x5f0   : > { %8583 = vmatmul.mubr.f32.gmra.mrb[14].mxu1 %v13077_v3 }
 0x5f1   : > { %8585 = vmatprep.mubr.f32.mxu1 %v13078_v50 }
 0x5f4   : > { %8586 = vmatmul.mubr.f32.gmra.mrb[16].mxu1 %v13040_v52 }
 0x5f5   : > { %8588 = vmatprep.mubr.f32.mxu1 %v13079_v21 }
 0x5f8   : > { %8589 = vmatmul.mubr.f32.gmra.mrb[18].mxu1 %v13080_v35 }
 0x5f9   : > { %8591 = vmatprep.mubr.f32.mxu1 %v13081_v60 }
 0x5fc   : > { %8592 = vmatmul.mubr.f32.gmra.mrb[20].mxu1 %v13082_v44 }
 0x5fd   : > { %8594 = vmatprep.mubr.f32.mxu1 %v13083_v56 }
 0x600   : > { %8595 = vmatmul.mubr.f32.gmra.mrb[22].mxu1 %v13084_v10 }
 0x601   : > { %8597 = vmatprep.mubr.f32.mxu1 %v13085_v43 }
 0x604   : > { %8598 = vmatmul.mubr.f32.gmra.mrb[24].mxu1 %v13086_v20 }
 0x605   : > { %8600 = vmatprep.mubr.f32.mxu1 %v13087_v12 }
 0x608   : > { %8601 = vmatmul.mubr.f32.gmra.mrb[26].mxu1 %v13088_v49 }
 0x609   : > { %8603 = vmatprep.mubr.f32.mxu1 %v13089_v53 }
 0x60c   : > { %8604 = vmatmul.mubr.f32.gmra.mrb[28].mxu1 %v12016_v58 }
 0x60d   : > { %8606 = vmatprep.mubr.f32.mxu1 %v13087_v12 }
 0x610   : > { %8607 = vmatmul.mubr.f32.gmra.mrb[30].mxu1 %v13088_v49 }
 0x6a7   : > { %v12115_v52 = vpop.f32.mrb[0].mxu1 }
 0x6a8   : > { %v5901_v14 = vmul.f32 %v12115_v52, %v12115_v52  ;;  %v12119_v32 = vpop.f32.mrb[1].mxu1 }
 0x6a9   : > { %v5862_v4 = vadd.f32 %v12115_v52, %v12119_v32  ;;  %v5900_v22 = vmul.f32 %v12119_v32, %v12119_v32 }
 0x6ab   : > { %v5932_v34 = vadd.f32 %v5901_v14, %v5900_v22  ;;  %v12125_v7 = vpop.f32.mrb[2].mxu1 }
 0x6ac   : > { %v12127_v58 = vpop.f32.mrb[3].mxu1  ;;  %v5903_v11 = vmul.f32 %v12125_v7, %v12125_v7 }
 0x6ad   : > { %v5863_v9 = vadd.f32 %v5862_v4, %v12127_v58  ;;  %v5902_v29 = vmul.f32 %v12127_v58, %v12127_v58 }
 0x6af   : > { %v5933_v42 = vadd.f32 %v5932_v34, %v5902_v29  ;;  %v12134_v54 = vpop.f32.mrb[4].mxu1  ;;  %v5864_v51 = vadd.f32 %v12125_v7, %v5863_v9 }
 0x6b0   : > { %v12137_v62 = vpop.f32.mrb[5].mxu1  ;;  %v5905_v24 = vmul.f32 %v12134_v54, %v12134_v54 }
 0x6b1   : > { %v5865_v0 = vadd.f32 %v5864_v51, %v12137_v62  ;;  %v5904_v27 = vmul.f32 %v12137_v62, %v12137_v62  ;;  %v5934_v55 = vadd.f32 %v5933_v42, %v5903_v11 }
 0x6b3   : > { %v5935_v57 = vadd.f32 %v5934_v55, %v5904_v27  ;;  %v12144_v13 = vpop.f32.mrb[6].mxu1  ;;  %v5866_v33 = vadd.f32 %v12134_v54, %v5865_v0 }
 0x6b4   : > { %v12147_v8 = vpop.f32.mrb[7].mxu1  ;;  %v5907_v41 = vmul.f32 %v12144_v13, %v12144_v13 }
 0x6b5   : > { %v5867_v15 = vadd.f32 %v5866_v33, %v12147_v8  ;;  %v5906_v19 = vmul.f32 %v12147_v8, %v12147_v8  ;;  %v5936_v46 = vadd.f32 %v5935_v57, %v5905_v24 }
 0x6b7   : > { %v5937_v63 = vadd.f32 %v5936_v46, %v5906_v19  ;;  %v12154_v16 = vpop.f32.mrb[8].mxu1  ;;  %v5868_v2 = vadd.f32 %v12144_v13, %v5867_v15 }
 0x6b8   : > { %v12157_v47 = vpop.f32.mrb[9].mxu1  ;;  %v5909_v31 = vmul.f32 %v12154_v16, %v12154_v16 }
 0x6b9   : > { %v5869_v36 = vadd.f32 %v5868_v2, %v12157_v47  ;;  %v5908_v28 = vmul.f32 %v12157_v47, %v12157_v47  ;;  %v5938_v18 = vadd.f32 %v5937_v63, %v5907_v41 }
 0x6bb   : > { %v5939_v39 = vadd.f32 %v5938_v18, %v5908_v28  ;;  %v12164_v59 = vpop.f32.mrb[10].mxu1  ;;  %v5870_v26 = vadd.f32 %v12154_v16, %v5869_v36 }
 0x6bc   : > { %v12167_v25 = vpop.f32.mrb[11].mxu1  ;;  %v5911_v37 = vmul.f32 %v12164_v59, %v12164_v59 }
 0x6bd   : > { %v5871_v1 = vadd.f32 %v5870_v26, %v12167_v25  ;;  %v5910_v45 = vmul.f32 %v12167_v25, %v12167_v25  ;;  %v5940_v6 = vadd.f32 %v5939_v39, %v5909_v31 }
 0x6bf   : > { %v5941_v38 = vadd.f32 %v5940_v6, %v5910_v45  ;;  %v12174_v17 = vpop.f32.mrb[12].mxu1  ;;  %v5872_v61 = vadd.f32 %v12164_v59, %v5871_v1 }
 0x6c0   : > { %v12177_v23 = vpop.f32.mrb[13].mxu1  ;;  %v5913_v48 = vmul.f32 %v12174_v17, %v12174_v17 }
 0x6c1   : > { %v5873_v5 = vadd.f32 %v5872_v61, %v12177_v23  ;;  %v5912_v30 = vmul.f32 %v12177_v23, %v12177_v23  ;;  %v5942_v40 = vadd.f32 %v5941_v38, %v5911_v37 }
 0x6c3   : > { %v5943_v3 = vadd.f32 %v5942_v40, %v5912_v30  ;;  %v12184_v50 = vpop.f32.mrb[14].mxu1  ;;  %v5874_v21 = vadd.f32 %v12174_v17, %v5873_v5 }
 0x6c4   : > { %v12187_v35 = vpop.f32.mrb[15].mxu1  ;;  %v5915_v10 = vmul.f32 %v12184_v50, %v12184_v50 }
 0x6c5   : > { %v5875_v60 = vadd.f32 %v5874_v21, %v12187_v35  ;;  %v5914_v44 = vmul.f32 %v12187_v35, %v12187_v35  ;;  %v5944_v56 = vadd.f32 %v5943_v3, %v5913_v48 }
 0x6c7   : > { %v5945_v43 = vadd.f32 %v5944_v56, %v5914_v44  ;;  %v12194_v20 = vpop.f32.mrb[16].mxu1  ;;  %v5876_v12 = vadd.f32 %v12184_v50, %v5875_v60 }
 0x6c8   : > { %v12197_v49 = vpop.f32.mrb[17].mxu1  ;;  %v5917_v22 = vmul.f32 %v12194_v20, %v12194_v20 }
 0x6c9   : > { %v5877_v53 = vadd.f32 %v5876_v12, %v12197_v49  ;;  %v5916_v14 = vmul.f32 %v12197_v49, %v12197_v49  ;;  %v5946_v4 = vadd.f32 %v5945_v43, %v5915_v10 }
 0x6cb   : > { %v5947_v34 = vadd.f32 %v5946_v4, %v5916_v14  ;;  %v12204_v9 = vpop.f32.mrb[18].mxu1  ;;  %v5878_v29 = vadd.f32 %v12194_v20, %v5877_v53 }
 0x6cc   : > { %v12207_v11 = vpop.f32.mrb[19].mxu1  ;;  %v5919_v27 = vmul.f32 %v12204_v9, %v12204_v9 }
 0x6cd   : > { %v5879_v42 = vadd.f32 %v5878_v29, %v12207_v11  ;;  %v5918_v51 = vmul.f32 %v12207_v11, %v12207_v11  ;;  %v5948_v0 = vadd.f32 %v5947_v34, %v5917_v22 }
 0x6cf   : > { %v5949_v55 = vadd.f32 %v5948_v0, %v5918_v51  ;;  %v12214_v24 = vpop.f32.mrb[20].mxu1  ;;  %v5880_v57 = vadd.f32 %v12204_v9, %v5879_v42 }
 0x6d0   : > { %v12217_v33 = vpop.f32.mrb[21].mxu1  ;;  %v5921_v41 = vmul.f32 %v12214_v24, %v12214_v24 }
 0x6d1   : > { %v5881_v15 = vadd.f32 %v5880_v57, %v12217_v33  ;;  %v5920_v19 = vmul.f32 %v12217_v33, %v12217_v33  ;;  %v5950_v46 = vadd.f32 %v5949_v55, %v5919_v27 }
 0x6d3   : > { %v5951_v63 = vadd.f32 %v5950_v46, %v5920_v19  ;;  %v12224_v2 = vpop.f32.mrb[22].mxu1  ;;  %v5882_v36 = vadd.f32 %v12214_v24, %v5881_v15 }
 0x6d4   : > { %v12227_v28 = vpop.f32.mrb[23].mxu1  ;;  %v5923_v26 = vmul.f32 %v12224_v2, %v12224_v2 }
 0x6d5   : > { %v5883_v18 = vadd.f32 %v5882_v36, %v12227_v28  ;;  %v5922_v31 = vmul.f32 %v12227_v28, %v12227_v28  ;;  %v5952_v39 = vadd.f32 %v5951_v63, %v5921_v41 }
 0x6d7   : > { %v5953_v1 = vadd.f32 %v5952_v39, %v5922_v31  ;;  %v12234_v45 = vpop.f32.mrb[24].mxu1  ;;  %v5884_v6 = vadd.f32 %v12224_v2, %v5883_v18 }
 0x6d8   : > { %v12237_v37 = vpop.f32.mrb[25].mxu1  ;;  %v5925_v30 = vmul.f32 %v12234_v45, %v12234_v45 }
 0x6d9   : > { %v5885_v38 = vadd.f32 %v5884_v6, %v12237_v37  ;;  %v5924_v61 = vmul.f32 %v12237_v37, %v12237_v37  ;;  %v5954_v5 = vadd.f32 %v5953_v1, %v5923_v26 }
 0x6db   : > { %v5955_v40 = vadd.f32 %v5954_v5, %v5924_v61  ;;  %v12244_v48 = vpop.f32.mrb[26].mxu1  ;;  %v5886_v3 = vadd.f32 %v12234_v45, %v5885_v38 }
 0x6dc   : > { %v12247_v21 = vpop.f32.mrb[27].mxu1  ;;  %v5927_v10 = vmul.f32 %v12244_v48, %v12244_v48 }
 0x6dd   : > { %v5887_v60 = vadd.f32 %v5886_v3, %v12247_v21  ;;  %v5926_v44 = vmul.f32 %v12247_v21, %v12247_v21  ;;  %v5956_v56 = vadd.f32 %v5955_v40, %v5925_v30 }
 0x6df   : > { %v5957_v43 = vadd.f32 %v5956_v56, %v5926_v44  ;;  %v12254_v12 = vpop.f32.mrb[28].mxu1  ;;  %v5888_v53 = vadd.f32 %v12244_v48, %v5887_v60 }
 0x6e0   : > { %v12257_v14 = vpop.f32.mrb[29].mxu1  ;;  %v5929_v29 = vmul.f32 %v12254_v12, %v12254_v12 }
 0x6e1   : > { %v5889_v4 = vadd.f32 %v5888_v53, %v12257_v14  ;;  %v5928_v22 = vmul.f32 %v12257_v14, %v12257_v14  ;;  %v5958_v34 = vadd.f32 %v5957_v43, %v5927_v10 }
 0x6e3   : > { %v5959_v42 = vadd.f32 %v5958_v34, %v5928_v22  ;;  %v12264_v51 = vpop.f32.mrb[30].mxu1  ;;  %v5890_v0 = vadd.f32 %v12254_v12, %v5889_v4 }
 0x6e4   : > { %v5819_v27 = vpop.f32.mrb[31].mxu1  ;;  %v5931_v19 = vmul.f32 %v12264_v51, %v12264_v51 }
 0x6e5   : > { %v5891_v55 = vadd.f32 %v5890_v0, %v5819_v27  ;;  %v5930_v57 = vmul.f32 %v5819_v27, %v5819_v27  ;;  %v5960_v15 = vadd.f32 %v5959_v42, %v5929_v29 }
 0x6e7   : > { %v5892_v46 = vadd.f32 %v12264_v51, %v5891_v55  ;;  %v5961_v41 = vadd.f32 %v5960_v15, %v5930_v57 }
 0x6e9   : > { %v5893_v63 = vrot.slane %v5892_v46, 4  ;;  %v5962_v36 = vadd.f32 %v5961_v41, %v5931_v19 }
 0x6eb   : > { %v5894_v18 = vadd.f32 %v5893_v63, %v5892_v46  ;;  %v5963_v31 = vrot.slane %v5962_v36, 4 }
 0x6ed   : > { %v5895_v39 = vrot.slane %v5894_v18, 2  ;;  %v5964_v26 = vadd.f32 %v5963_v31, %v5962_v36 }
 0x6ef   : > { %v5896_v1 = vadd.f32 %v5895_v39, %v5894_v18  ;;  %v5965_v6 = vrot.slane %v5964_v26, 2 }
 0x6f1   : > { %v5897_v38 = vrot.slane %v5896_v1, 1  ;;  %v5966_v61 = vadd.f32 %v5965_v6, %v5964_v26 }
 0x6f3   : > { %v5898_v5 = vadd.f32 %v5897_v38, %v5896_v1  ;;  %v5967_v30 = vrot.slane %v5966_v61, 1 }
 0x6f5   : > { %v12270_v40 = vmul.f32 0.00390625, %v5898_v5  ;;  %v5968_v3 = vadd.f32 %v5967_v30, %v5966_v61 }
 0x6f7   : > { %v5969_v60 = vmul.f32 0.00390625, %v5968_v3  ;;  %v5970_v44 = vmul.f32 %v12270_v40, %v12270_v40  ;;  %v6003_v56 = vsub.f32 %v5819_v27, %v12270_v40  ;;  %v5973_v10 = vsub.f32 %v12119_v32, %v12270_v40 }
 0x6f8   : > { %v5974_v43 = vsub.f32 %v12115_v52, %v12270_v40  ;;  %v5975_v53 = vsub.f32 %v12127_v58, %v12270_v40  ;;  %v5976_v4 = vsub.f32 %v12125_v7, %v12270_v40  ;;  %v5977_v22 = vsub.f32 %v12137_v62, %v12270_v40 }
 0x6f9   : > { %v5971_v34 = vsub.f32 %v5969_v60, %v5970_v44  ;;  %v5978_v29 = vsub.f32 %v12134_v54, %v12270_v40  ;;  %v5979_v42 = vsub.f32 %v12147_v8, %v12270_v40  ;;  %v5980_v32 = vsub.f32 %v12144_v13, %v12270_v40  ;;  %v9800_v60 = vld [vmem:[%s10210_s25 + $0xf0] sm:$0xff] }
 0x6fa   : > { %v5981_v52 = vsub.f32 %v12157_v47, %v12270_v40  ;;  %v5982_v58 = vsub.f32 %v12154_v16, %v12270_v40  ;;  %v5983_v7 = vsub.f32 %v12167_v25, %v12270_v40  ;;  %v5984_v62 = vsub.f32 %v12164_v59, %v12270_v40 }
 0x6fb   : > { %v5972_v0 = vmax.f32 %v5971_v34, 0.0  ;;  %v5985_v54 = vsub.f32 %v12177_v23, %v12270_v40  ;;  %v5986_v8 = vsub.f32 %v12174_v17, %v12270_v40  ;;  %v5987_v13 = vsub.f32 %v12187_v35, %v12270_v40 }
 0x6fc   : > { %v5988_v47 = vsub.f32 %v12184_v50, %v12270_v40  ;;  %v5989_v16 = vsub.f32 %v12197_v49, %v12270_v40  ;;  %v5990_v25 = vsub.f32 %v12194_v20, %v12270_v40  ;;  %v5991_v59 = vsub.f32 %v12207_v11, %v12270_v40 }
 0x6fd   : > { %v6005_v27 = vadd.f32 1e-05, %v5972_v0  ;;  %v5992_v23 = vsub.f32 %v12204_v9, %v12270_v40  ;;  %v5993_v17 = vsub.f32 %v12217_v33, %v12270_v40  ;;  %v5994_v35 = vsub.f32 %v12214_v24, %v12270_v40 }
 0x6fe   : > { %v5995_v50 = vsub.f32 %v12227_v28, %v12270_v40  ;;  %v5996_v49 = vsub.f32 %v12224_v2, %v12270_v40  ;;  %v5997_v20 = vsub.f32 %v12237_v37, %v12270_v40  ;;  %v5998_v11 = vsub.f32 %v12234_v45, %v12270_v40  ;;  %v12340_v45 = vld [vmem:[%s12573_s3 + $0x2] ss:$0 sm:$0xff] }
 0x6ff   : > { %9770 = vrsqrt.f32 %v6005_v27  ;;  %v5999_v9 = vsub.f32 %v12247_v21, %v12270_v40  ;;  %v6000_v33 = vsub.f32 %v12244_v48, %v12270_v40  ;;  %v6001_v24 = vsub.f32 %v12257_v14, %v12270_v40  ;;  %v12345_v48 = vld [vmem:[%s12573_s3 + $0x3] ss:$0 sm:$0xff] }
 0x700   : > { %v6002_v28 = vsub.f32 %v12254_v12, %v12270_v40  ;;  %v6004_v2 = vsub.f32 %v12264_v51, %v12270_v40 }
 0x709   : > { %v9771_v37 = vpop.eup %9770 }
 0x70a   : > { %v6037_v55 = vmul.f32 %v9771_v37, %v6003_v56  ;;  %v6007_v21 = vmul.f32 %v9771_v37, %v5973_v10  ;;  %v6008_v57 = vmul.f32 %v9771_v37, %v5974_v43  ;;  %v6009_v15 = vmul.f32 %v9771_v37, %v5975_v53 }
 0x70b   : > { %v6010_v14 = vmul.f32 %v9771_v37, %v5976_v4  ;;  %v6011_v12 = vmul.f32 %v9771_v37, %v5977_v22  ;;  %v6012_v19 = vmul.f32 %v9771_v37, %v5978_v29  ;;  %v6013_v46 = vmul.f32 %v9771_v37, %v5979_v42 }
 0x70c   : > { %v6073_v51 = vmul.f32 %v12340_v45, %v6037_v55  ;;  %v6014_v41 = vmul.f32 %v9771_v37, %v5980_v32  ;;  %v6015_v63 = vmul.f32 %v9771_v37, %v5981_v52  ;;  %v6016_v36 = vmul.f32 %v9771_v37, %v5982_v58 }
 0x70d   : > { %v6017_v18 = vmul.f32 %v9771_v37, %v5983_v7  ;;  %v6018_v31 = vmul.f32 %v9771_v37, %v5984_v62  ;;  %v6019_v39 = vmul.f32 %v9771_v37, %v5985_v54  ;;  %v6020_v26 = vmul.f32 %v9771_v37, %v5986_v8 }
 0x70e   : > { %v6109_v1 = vadd.f32 %v12345_v48, %v6073_v51  ;;  %v6021_v6 = vmul.f32 %v9771_v37, %v5987_v13  ;;  %v6022_v38 = vmul.f32 %v9771_v37, %v5988_v47  ;;  %v6023_v61 = vmul.f32 %v9771_v37, %v5989_v16 }
 0x70f   : > { %v6024_v5 = vmul.f32 %v9771_v37, %v5990_v25  ;;  %v6025_v30 = vmul.f32 %v9771_v37, %v5991_v59  ;;  %v6026_v40 = vmul.f32 %v9771_v37, %v5992_v23  ;;  %v6027_v3 = vmul.f32 %v9771_v37, %v5993_v17 }
 0x710   : > { %v6141_v44 = vadd.f32 %v9800_v60, %v6109_v1  ;;  %v6028_v56 = vmul.f32 %v9771_v37, %v5994_v35  ;;  %v6029_v10 = vmul.f32 %v9771_v37, %v5995_v50  ;;  %v6030_v43 = vmul.f32 %v9771_v37, %v5996_v49 }
 0x711   : > { %v6031_v53 = vmul.f32 %v9771_v37, %v5997_v20  ;;  %v6032_v4 = vmul.f32 %v9771_v37, %v5998_v11  ;;  %v6033_v22 = vmul.f32 %v9771_v37, %v5999_v9  ;;  %v6034_v34 = vmul.f32 %v9771_v37, %v6000_v33 }
 0x712   : > { %6173 = vst [vmem:[%s12352_s27 + $0xf0] sm:$0xff] %v6141_v44  ;;  %v6035_v29 = vmul.f32 %v9771_v37, %v6001_v24  ;;  %v6036_v42 = vmul.f32 %v9771_v37, %v6002_v28  ;;  %v6038_v32 = vmul.f32 %v9771_v37, %v6004_v2  ;;  %v6043_v52 = vmul.f32 %v12340_v45, %v6007_v21 }
 0x713   : > { %v6044_v58 = vmul.f32 %v12340_v45, %v6008_v57  ;;  %v6045_v7 = vmul.f32 %v12340_v45, %v6009_v15  ;;  %v6046_v62 = vmul.f32 %v12340_v45, %v6010_v14  ;;  %v6047_v0 = vmul.f32 %v12340_v45, %v6011_v12 }
 0x714   : > { %v6048_v54 = vmul.f32 %v12340_v45, %v6012_v19  ;;  %v6049_v8 = vmul.f32 %v12340_v45, %v6013_v46  ;;  %v6050_v13 = vmul.f32 %v12340_v45, %v6014_v41  ;;  %v6051_v47 = vmul.f32 %v12340_v45, %v6015_v63 }
 0x715   : > { %v6052_v16 = vmul.f32 %v12340_v45, %v6016_v36  ;;  %v6053_v25 = vmul.f32 %v12340_v45, %v6017_v18  ;;  %v6054_v59 = vmul.f32 %v12340_v45, %v6018_v31  ;;  %v6055_v27 = vmul.f32 %v12340_v45, %v6019_v39 }
 0x716   : > { %v6056_v23 = vmul.f32 %v12340_v45, %v6020_v26  ;;  %v6057_v17 = vmul.f32 %v12340_v45, %v6021_v6  ;;  %v6058_v35 = vmul.f32 %v12340_v45, %v6022_v38  ;;  %v6059_v50 = vmul.f32 %v12340_v45, %v6023_v61 }
 0x717   : > { %v6060_v49 = vmul.f32 %v12340_v45, %v6024_v5  ;;  %v6061_v20 = vmul.f32 %v12340_v45, %v6025_v30  ;;  %v6062_v11 = vmul.f32 %v12340_v45, %v6026_v40  ;;  %v6063_v9 = vmul.f32 %v12340_v45, %v6027_v3 }
 0x718   : > { %v6064_v33 = vmul.f32 %v12340_v45, %v6028_v56  ;;  %v6065_v24 = vmul.f32 %v12340_v45, %v6029_v10  ;;  %v6066_v28 = vmul.f32 %v12340_v45, %v6030_v43  ;;  %v6067_v2 = vmul.f32 %v12340_v45, %v6031_v53 }
 0x719   : > { %v6068_v37 = vmul.f32 %v12340_v45, %v6032_v4  ;;  %v6069_v55 = vmul.f32 %v12340_v45, %v6033_v22  ;;  %v6070_v21 = vmul.f32 %v12340_v45, %v6034_v34  ;;  %v6071_v57 = vmul.f32 %v12340_v45, %v6035_v29 }
 0x71a   : > { %v6072_v15 = vmul.f32 %v12340_v45, %v6036_v42  ;;  %v6074_v14 = vmul.f32 %v12340_v45, %v6038_v32  ;;  %v6079_v12 = vadd.f32 %v12345_v48, %v6043_v52  ;;  %v6080_v19 = vadd.f32 %v12345_v48, %v6044_v58  ;;  %v9801_v32 = vld [vmem:[%s10210_s25] sm:$0xff]  ;;  %v9802_v58 = vld [vmem:[%s10210_s25 + $0x8] sm:$0xff] }
 0x71b   : > { %v6081_v46 = vadd.f32 %v12345_v48, %v6045_v7  ;;  %v6082_v51 = vadd.f32 %v12345_v48, %v6046_v62  ;;  %v6083_v41 = vadd.f32 %v12345_v48, %v6047_v0  ;;  %v6084_v63 = vadd.f32 %v12345_v48, %v6048_v54  ;;  %v9803_v62 = vld [vmem:[%s10210_s25 + $0x10] sm:$0xff]  ;;  %v9804_v54 = vld [vmem:[%s10210_s25 + $0x18] sm:$0xff] }
 0x71c   : > { %v6085_v36 = vadd.f32 %v12345_v48, %v6049_v8  ;;  %v6086_v18 = vadd.f32 %v12345_v48, %v6050_v13  ;;  %v6087_v31 = vadd.f32 %v12345_v48, %v6051_v47  ;;  %v6088_v45 = vadd.f32 %v12345_v48, %v6052_v16  ;;  %v9805_v13 = vld [vmem:[%s10210_s25 + $0x20] sm:$0xff]  ;;  %v9806_v16 = vld [vmem:[%s10210_s25 + $0x28] sm:$0xff] }
 0x71d   : > { %v6089_v39 = vadd.f32 %v12345_v48, %v6053_v25  ;;  %v6090_v26 = vadd.f32 %v12345_v48, %v6054_v59  ;;  %v6091_v1 = vadd.f32 %v12345_v48, %v6055_v27  ;;  %v6092_v6 = vadd.f32 %v12345_v48, %v6056_v23  ;;  %v9807_v25 = vld [vmem:[%s10210_s25 + $0x30] sm:$0xff]  ;;  %v9808_v27 = vld [vmem:[%s10210_s25 + $0x38] sm:$0xff] }
 0x71e   : > { %v6093_v38 = vadd.f32 %v12345_v48, %v6057_v17  ;;  %v6094_v61 = vadd.f32 %v12345_v48, %v6058_v35  ;;  %v6095_v5 = vadd.f32 %v12345_v48, %v6059_v50  ;;  %v6096_v30 = vadd.f32 %v12345_v48, %v6060_v49  ;;  %v9809_v17 = vld [vmem:[%s10210_s25 + $0x40] sm:$0xff]  ;;  %v9810_v50 = vld [vmem:[%s10210_s25 + $0x48] sm:$0xff] }
 0x71f   : > { %v6097_v40 = vadd.f32 %v12345_v48, %v6061_v20  ;;  %v12406_v3 = vadd.f32 %v12345_v48, %v6062_v11  ;;  %v12409_v60 = vadd.f32 %v12345_v48, %v6063_v9  ;;  %v12412_v44 = vadd.f32 %v12345_v48, %v6064_v33  ;;  %v9811_v20 = vld [vmem:[%s10210_s25 + $0x50] sm:$0xff]  ;;  %v9812_v9 = vld [vmem:[%s10210_s25 + $0x58] sm:$0xff] }
 0x720   : > { %v12415_v56 = vadd.f32 %v12345_v48, %v6065_v24  ;;  %v12418_v10 = vadd.f32 %v12345_v48, %v6066_v28  ;;  %v12421_v43 = vadd.f32 %v12345_v48, %v6067_v2  ;;  %v12424_v53 = vadd.f32 %v12345_v48, %v6068_v37  ;;  %v9813_v24 = vld [vmem:[%s10210_s25 + $0x60] sm:$0xff]  ;;  %v9814_v2 = vld [vmem:[%s10210_s25 + $0x68] sm:$0xff] }
 0x721   : > { %v12427_v4 = vadd.f32 %v12345_v48, %v6069_v55  ;;  %v12430_v22 = vadd.f32 %v12345_v48, %v6070_v21  ;;  %v12433_v34 = vadd.f32 %v12345_v48, %v6071_v57  ;;  %v12436_v29 = vadd.f32 %v12345_v48, %v6072_v15  ;;  %v9815_v55 = vld [vmem:[%s10210_s25 + $0x70] sm:$0xff]  ;;  %v9816_v57 = vld [vmem:[%s10210_s25 + $0x78] sm:$0xff] }
 0x722   : > { %v12439_v42 = vadd.f32 %v12345_v48, %v6074_v14  ;;  %v6111_v52 = vadd.f32 %v9801_v32, %v6079_v12  ;;  %v6112_v7 = vadd.f32 %v9802_v58, %v6080_v19  ;;  %v6113_v0 = vadd.f32 %v9803_v62, %v6081_v46  ;;  %v9817_v14 = vld [vmem:[%s10210_s25 + $0x80] sm:$0xff]  ;;  %v9818_v19 = vld [vmem:[%s10210_s25 + $0x88] sm:$0xff]  ;;  %v9831_v32 = vld [vmem:[%s10210_s25 + $0xf8] sm:$0xff] }
 0x723   : > { %v6114_v8 = vadd.f32 %v9804_v54, %v6082_v51  ;;  %v6115_v47 = vadd.f32 %v9805_v13, %v6083_v41  ;;  %v6116_v48 = vadd.f32 %v9806_v16, %v6084_v63  ;;  %v6117_v59 = vadd.f32 %v9807_v25, %v6085_v36  ;;  %v9819_v51 = vld [vmem:[%s10210_s25 + $0x90] sm:$0xff]  ;;  %v9820_v63 = vld [vmem:[%s10210_s25 + $0x98] sm:$0xff] }
 0x724   : > { %v6118_v23 = vadd.f32 %v9808_v27, %v6086_v18  ;;  %v6119_v35 = vadd.f32 %v9809_v17, %v6087_v31  ;;  %v6120_v49 = vadd.f32 %v9810_v50, %v6088_v45  ;;  %v6121_v11 = vadd.f32 %v9811_v20, %v6089_v39  ;;  %6143 = vst [vmem:[%s12352_s27] sm:$0xff] %v6111_v52  ;;  %v9821_v18 = vld [vmem:[%s10210_s25 + $0xa0] sm:$0xff]  ;;  %v9822_v45 = vld [vmem:[%s10210_s25 + $0xa8] sm:$0xff] }
 0x725   : > { %6144 = vst [vmem:[%s12352_s27 + $0x8] sm:$0xff] %v6112_v7  ;;  %6145 = vst [vmem:[%s12352_s27 + $0x10] sm:$0xff] %v6113_v0  ;;  %v6122_v33 = vadd.f32 %v9812_v9, %v6090_v26  ;;  %v6123_v28 = vadd.f32 %v9813_v24, %v6091_v1  ;;  %v6124_v37 = vadd.f32 %v9814_v2, %v6092_v6  ;;  %v9823_v26 = vld [vmem:[%s10210_s25 + $0xb0] sm:$0xff]  ;;  %v9824_v6 = vld [vmem:[%s10210_s25 + $0xb8] sm:$0xff] }
 0x726   : > { %v6125_v21 = vadd.f32 %v9815_v55, %v6093_v38  ;;  %6146 = vst [vmem:[%s12352_s27 + $0x18] sm:$0xff] %v6114_v8  ;;  %6147 = vst [vmem:[%s12352_s27 + $0x20] sm:$0xff] %v6115_v47  ;;  %v6126_v15 = vadd.f32 %v9816_v57, %v6094_v61  ;;  %v6127_v12 = vadd.f32 %v9817_v14, %v6095_v5  ;;  %v9825_v61 = vld [vmem:[%s10210_s25 + $0xc0] sm:$0xff] }
 0x727   : > { %6148 = vst [vmem:[%s12352_s27 + $0x28] sm:$0xff] %v6116_v48  ;;  %6149 = vst [vmem:[%s12352_s27 + $0x30] sm:$0xff] %v6117_v59  ;;  %v6128_v46 = vadd.f32 %v9818_v19, %v6096_v30  ;;  %v6129_v41 = vadd.f32 %v9819_v51, %v6097_v40  ;;  %v6130_v36 = vadd.f32 %v9820_v63, %v12406_v3  ;;  %v9826_v30 = vld [vmem:[%s10210_s25 + $0xc8] sm:$0xff]  ;;  %v9827_v3 = vld [vmem:[%s10210_s25 + $0xd0] sm:$0xff] }
 0x728   : > { %6150 = vst [vmem:[%s12352_s27 + $0x38] sm:$0xff] %v6118_v23  ;;  %6151 = vst [vmem:[%s12352_s27 + $0x40] sm:$0xff] %v6119_v35  ;;  %v6131_v31 = vadd.f32 %v9821_v18, %v12409_v60  ;;  %v6132_v39 = vadd.f32 %v9822_v45, %v12412_v44  ;;  %v6133_v1 = vadd.f32 %v9823_v26, %v12415_v56  ;;  %v9828_v44 = vld [vmem:[%s10210_s25 + $0xd8] sm:$0xff] }
 0x729   : > { %6152 = vst [vmem:[%s12352_s27 + $0x48] sm:$0xff] %v6120_v49  ;;  %6153 = vst [vmem:[%s12352_s27 + $0x50] sm:$0xff] %v6121_v11  ;;  %v6134_v38 = vadd.f32 %v9824_v6, %v12418_v10  ;;  %v6135_v5 = vadd.f32 %v9825_v61, %v12421_v43  ;;  %v6136_v40 = vadd.f32 %v9826_v30, %v12424_v53  ;;  %v9829_v10 = vld [vmem:[%s10210_s25 + $0xe0] sm:$0xff]  ;;  %v9830_v53 = vld [vmem:[%s10210_s25 + $0xe8] sm:$0xff]  ;;  %s9995_s25 = smov [#allocation8]  }
 0x72a   : > { %6154 = vst [vmem:[%s12352_s27 + $0x58] sm:$0xff] %v6122_v33  ;;  %6155 = vst [vmem:[%s12352_s27 + $0x60] sm:$0xff] %v6123_v28  ;;  %v6137_v60 = vadd.f32 %v9827_v3, %v12427_v4  ;;  %v6138_v56 = vadd.f32 %v9828_v44, %v12430_v22  ;;  %v6139_v43 = vadd.f32 %v9829_v10, %v12433_v34  ;;  %s9922_s21 = sshll.u32 %s9995_s25, 4  ;;  %s9923_s21 = int_to_ptr.vmem [resolvable:$false] %s9922_s21 }
 0x72b   : > { %6156 = vst [vmem:[%s12352_s27 + $0x68] sm:$0xff] %v6124_v37  ;;  %6157 = vst [vmem:[%s12352_s27 + $0x70] sm:$0xff] %v6125_v21  ;;  %v6140_v4 = vadd.f32 %v9830_v53, %v12436_v29  ;;  %v6142_v52 = vadd.f32 %v9831_v32, %v12439_v42  ;;  %s9924_s23 = scalar_lea.vmem %s9923_s21, 8192  ;;  %p9925_p7 = scmp.lt.s32.totalorder %s12506_s29, %s9923_s21 }
 0x72c   : > { %6158 = vst [vmem:[%s12352_s27 + $0x78] sm:$0xff] %v6126_v15  ;;  %6159 = vst [vmem:[%s12352_s27 + $0x80] sm:$0xff] %v6127_v12  ;;  %p9926_p9 = scmp.lt.s32.totalorder %s9924_s23, %s9918_s24 }
 0x72d   : > { %6160 = vst [vmem:[%s12352_s27 + $0x88] sm:$0xff] %v6128_v46  ;;  %6161 = vst [vmem:[%s12352_s27 + $0x90] sm:$0xff] %v6129_v41 }
 0x72e   : > { %6162 = vst [vmem:[%s12352_s27 + $0x98] sm:$0xff] %v6130_v36  ;;  %6163 = vst [vmem:[%s12352_s27 + $0xa0] sm:$0xff] %v6131_v31  ;;  %p9927_p12 = por %p9926_p9, %p9925_p7 }
 0x72f   : > { %6164 = vst [vmem:[%s12352_s27 + $0xa8] sm:$0xff] %v6132_v39  ;;  %6165 = vst [vmem:[%s12352_s27 + $0xb0] sm:$0xff] %v6133_v1 }
 0x730   : > { %6166 = vst [vmem:[%s12352_s27 + $0xb8] sm:$0xff] %v6134_v38  ;;  %6167 = vst [vmem:[%s12352_s27 + $0xc0] sm:$0xff] %v6135_v5  ;;  %p9928_p1 = pnand %p9927_p12, %p9921_p3 }
 0x731   : > { %6168 = vst [vmem:[%s12352_s27 + $0xc8] sm:$0xff] %v6136_v40  ;;  %6169 = vst [vmem:[%s12352_s27 + $0xd0] sm:$0xff] %v6137_v60 }
 0x732   : > { %6170 = vst [vmem:[%s12352_s27 + $0xd8] sm:$0xff] %v6138_v56  ;;  %6171 = vst [vmem:[%s12352_s27 + $0xe0] sm:$0xff] %v6139_v43 }
 0x733   : > { %6172 = vst [vmem:[%s12352_s27 + $0xe8] sm:$0xff] %v6140_v4  ;;  %6174 = vst [vmem:[%s12352_s27 + $0xf8] sm:$0xff] %v6142_v52 }
 0x734   : > { %9931 = shalt.err (!%p9928_p1)
}
 0x735   : > { %s9932_s11 = scalar_lea.hbm %s12502_s10, 4096  ;;  %s9936_s6 = scalar_lea.hbm %s12574_s4, 8192 }
 0x736   : > { %p9933_p13 = scmp.ne.s32.totalorder %s12502_s10, %s9932_s11  ;;  %p9937_p4 = scmp.lt.u32.totalorder %s12502_s10, %s12574_s4 }
 0x737   : > { %p9938_p5 = scmp.lt.u32.totalorder %s9936_s6, %s9932_s11  ;;  %p9940_p11 = scmp.lt.u32.totalorder %s9932_s11, %s12502_s10 }
 0x738   : > { %p9934_p6 = pnand %p9933_p13, %p13090_p0 }
 0x739   : > { %p9939_p8 = por %p9938_p5, %p9937_p4 }
 0x73a   : > { %p9935_p10 = pneg %p9934_p6 }
 0x73b   : > { %p9941_p2 = por %p9940_p11, %p9939_p8 }
 0x73d   : > { %p9942_p3 = pnand %p9941_p2, %p9935_p10 }
 0x73f   : > { %9945 = shalt.err (!%p9942_p3)
}
 0x740   : > { %s9996_s27 = smov 128   ;;  %s9997_s20 = smov 8  }
 0x741   : > { %9707 = dma.vmem_to_hbm [thread:$0]  (%p13090_p0), %s12506_s29, 4096, %s12502_s10, %s6176_s19, %s9996_s27, %s9996_s27, %s9997_s20  }
 0x742 PF: > { %s6204_s5 = sand.u32 1, %s9976_s15   ;;  %p13091_p7 = scmp.ne.s32.totalorder %s12801_s22, 0 }
 0x743   : > { %p13092_p9 = scmp.ge.s32.totalorder %s9988_s18, 2  ;;  %s6205_s9 = scalar_lea.sflag [#allocation4], %s6204_s5 }
 0x745   : > { %p9721_p12 = pnand %p13092_p9, %p13091_p7 }
 0x747   : > { %9971 = dma.done.wait (!%p9721_p12), %s6205_s9, 4096  }
 0x748   : > { %9973 = vsyncadd (!%p9721_p12), %s6205_s9, 4294963200  ;;  %p18_p1 = scmp.ge.s32.totalorder %s10139_s26, 4   ;;  %s13093_s15 = smov %s9980_s16 }
 0x749   : > { %s13094_s16 = smov %s9984_s17  ;;  %s13095_s17 = smov %s10155_s14 }
 0x74a   : > { %s13096_s18 = smov %s10139_s26  ;;  %20 = sbr.rel (!%p18_p1) target bundleno = 6 (0x6), region = 89 }
 0x751   :  { %6210 = vsyncpa [#allocation3], 1 }
 0x752   :  { %6212 = vsyncpa [#allocation3 + $0x1], 1 }
 0x753   :  { %6213 = vsyncpa [#allocation6], 1 }
 0x754   :  { %6214 = vsyncpa [#allocation4], 1 }
 0x755   :  { %6216 = vsyncpa [#allocation4 + $0x1], 1 }

</bundles_post_ra>
